<compile_context>
chip_gen: v5e
topology: v5e:2x2
jax: 0.10.0
libtpu: 0.0.40
codegen_flags: <defaults>
</compile_context>

<pallas_src>
from functools import partial

import numpy as np
import jax
import jax.numpy as jnp
from jax.experimental import pallas as pl
from jax.experimental.pallas import tpu as pltpu


# -----------------------------------------------------------------------------
# VMEM budget: half of physical VMEM, capped at 64 MiB
#   v5e/v6e (128 MiB physical) -> 64 MiB scoped;  v7x (64 MiB) -> 32 MiB.
# Falls back to a conservative 32 MiB if the hardware query fails.
# -----------------------------------------------------------------------------
_VMEM_LIMIT_CACHE = None


def _default_vmem_limit():
    global _VMEM_LIMIT_CACHE
    if _VMEM_LIMIT_CACHE is None:
        limit = 32 * 1024 * 1024
        try:
            cap = getattr(pltpu.get_tpu_info(), "vmem_capacity_bytes", None)
            if cap:
                limit = int(min(cap // 2, 64 * 1024 * 1024))
        except Exception:
            pass
        _VMEM_LIMIT_CACHE = limit
    return _VMEM_LIMIT_CACHE


def _pick_tn(ci, co, n, itemsize, vmem_limit, n_wide_blocks):
    """Pixel-tile size so that the double-buffered activation blocks use at
    most half of the scoped VMEM limit (weights/bias are tiny residents)."""
    per_tn = (ci + n_wide_blocks * co) * itemsize       # x + (f,) out per lane
    budget = vmem_limit // 2
    tn = budget // (2 * per_tn)                         # 2 = double buffering
    tn = min(tn, 16384)
    if tn >= n:
        return n
    return max(128, (tn // 128) * 128)


# -----------------------------------------------------------------------------
# Kernel 1: pointwise matmul + bias (fc0 / fc1), lane-dense output [Co, TN]
# -----------------------------------------------------------------------------
def _matmul_bias_kernel(x_ref, w_ref, b_ref, o_ref):
    # x: [1, Ci, TN], w: [Co, Ci], b: [Co, 1] -> o: [1, Co, TN]
    y = jnp.dot(w_ref[...], x_ref[0], preferred_element_type=jnp.float32)
    o_ref[0] = (y + b_ref[...]).astype(o_ref.dtype)


def matmul_bias(x, w, b, vmem_limit, out_dtype=None):
    """Per-pixel linear layer.  x: [B, Ci, N], w: [Co, Ci] (torch [out, in]),
    b: [Co] (f32) -> [B, Co, N]."""
    B, Ci, N = x.shape
    Co = w.shape[0]
    out_dtype = x.dtype if out_dtype is None else out_dtype
    tn = _pick_tn(Ci, Co, N, x.dtype.itemsize, vmem_limit, n_wide_blocks=1)
    grid = (B, pl.cdiv(N, tn))
    return pl.pallas_call(
        _matmul_bias_kernel,
        out_shape=jax.ShapeDtypeStruct((B, Co, N), out_dtype),
        grid=grid,
        in_specs=[
            pl.BlockSpec((1, Ci, tn), lambda bi, j: (bi, 0, j)),
            pl.BlockSpec((Co, Ci), lambda bi, j: (0, 0)),     # resident weight
            pl.BlockSpec((Co, 1), lambda bi, j: (0, 0)),      # resident bias
        ],
        out_specs=pl.BlockSpec((1, Co, tn), lambda bi, j: (bi, 0, j)),
        compiler_params=pltpu.CompilerParams(
            dimension_semantics=("parallel", "parallel"),
            vmem_limit_bytes=vmem_limit,
        ),
    )(x, w.astype(x.dtype), b.reshape(Co, 1).astype(jnp.float32))


# -----------------------------------------------------------------------------
# Kernel 2: fused 1x1 conv + fourier-branch add + exact GELU, lane-dense out
# -----------------------------------------------------------------------------
def _conv_add_gelu_kernel(x_ref, w_ref, b_ref, f_ref, o_ref):
    # x: [1, Ci, TN], w: [Co, Ci], b: [Co, 1], f: [1, Co, TN] -> o: [1, Co, TN]
    y = jnp.dot(w_ref[...], x_ref[0], preferred_element_type=jnp.float32)
    z = f_ref[0].astype(jnp.float32) + y + b_ref[...]
    # exact GELU (matches torch.nn.GELU default, erf-based)
    g = 0.5 * z * (1.0 + jax.lax.erf(z * 0.7071067811865476))
    o_ref[0] = g.astype(o_ref.dtype)


def conv_add_gelu(x, w, b, f, vmem_limit):
    """gelu(conv1x1(x) + f).  x: [B, Ci, N], w: [Co, Ci], b: [Co], f: [B, Co, N]."""
    B, Ci, N = x.shape
    Co = w.shape[0]
    tn = _pick_tn(Ci, Co, N, x.dtype.itemsize, vmem_limit, n_wide_blocks=2)
    grid = (B, pl.cdiv(N, tn))
    return pl.pallas_call(
        _conv_add_gelu_kernel,
        out_shape=jax.ShapeDtypeStruct((B, Co, N), x.dtype),
        grid=grid,
        in_specs=[
            pl.BlockSpec((1, Ci, tn), lambda bi, j: (bi, 0, j)),
            pl.BlockSpec((Co, Ci), lambda bi, j: (0, 0)),
            pl.BlockSpec((Co, 1), lambda bi, j: (0, 0)),
            pl.BlockSpec((1, Co, tn), lambda bi, j: (bi, 0, j)),
        ],
        out_specs=pl.BlockSpec((1, Co, tn), lambda bi, j: (bi, 0, j)),
        compiler_params=pltpu.CompilerParams(
            dimension_semantics=("parallel", "parallel"),
            vmem_limit_bytes=vmem_limit,
        ),
    )(x, w.astype(x.dtype), b.reshape(Co, 1).astype(jnp.float32), f)


# -----------------------------------------------------------------------------
# Kernel 3: packed spectral complex multiply.
#   X_pack [P, 2B, Ci]  (rows = [xr ; xi])  @  W_pack [P, Ci, 2Co]  ([wr | wi])
#   One einsum yields all four products; real/imag are formed with one VPU
#   add/sub and stored as a packed [P, B, 2Co] output (real | imag).
# -----------------------------------------------------------------------------
def _spectral_kernel(x_ref, w_ref, o_ref):
    y = jnp.einsum("pbi,pio->pbo", x_ref[...], w_ref[...],
                   preferred_element_type=jnp.float32)
    b = o_ref.shape[1]
    co = o_ref.shape[2] // 2
    rr = y[:, :b, :co]   # xr @ wr
    ri = y[:, :b, co:]   # xr @ wi
    ir = y[:, b:, :co]   # xi @ wr
    ii = y[:, b:, co:]   # xi @ wi
    o_ref[:, :, :co] = rr - ii       # real part
    o_ref[:, :, co:] = ri + ir       # imag part


def spectral_matmul(x_pack, w_pack, vmem_limit):
    """x_pack: [P, 2B, Ci] f32, w_pack: [P, Ci, 2Co] f32 -> [P, B, 2Co] f32."""
    P, B2, Ci = x_pack.shape
    Co2 = w_pack.shape[-1]
    B = B2 // 2
    # Block of modes per grid step, sized from the VMEM budget (weight block
    # dominates), double-buffered.
    per_p = (B2 * Ci + Ci * Co2 + B * Co2) * 4
    p_blk = int(max(1, min(P, (vmem_limit // 2) // (2 * per_p))))
    grid = (pl.cdiv(P, p_blk),)
    return pl.pallas_call(
        _spectral_kernel,
        out_shape=jax.ShapeDtypeStruct((P, B, Co2), jnp.float32),
        grid=grid,
        in_specs=[
            pl.BlockSpec((p_blk, B2, Ci), lambda p: (p, 0, 0)),
            pl.BlockSpec((p_blk, Ci, Co2), lambda p: (p, 0, 0)),
        ],
        out_specs=pl.BlockSpec((p_blk, B, Co2), lambda p: (p, 0, 0)),
        compiler_params=pltpu.CompilerParams(
            dimension_semantics=("parallel",),
            vmem_limit_bytes=vmem_limit,
        ),
    )(x_pack, w_pack)


# -----------------------------------------------------------------------------
# Truncated DFT matrices (static, built in float64 numpy, stored f32).
# Replaces rfft2 / zero-padded-spectrum / irfft2 exactly for the mode corner
# kept by the model (norm='ortho', last-axis Hermitian half-spectrum).
# -----------------------------------------------------------------------------
def _dft_matrices(H, W, M):
    assert M <= H and M <= W // 2 + 1, "modes must fit the rfft2 spectrum"
    k = np.arange(M, dtype=np.float64)
    hh = np.arange(H, dtype=np.float64)
    ww = np.arange(W, dtype=np.float64)
    ang_kh = 2.0 * np.pi * np.outer(k, hh) / H            # [M, H]
    ang_wl = 2.0 * np.pi * np.outer(ww, k) / W            # [W, M]
    ang_lw = 2.0 * np.pi * np.outer(k, ww) / W            # [M, W]
    # forward transform e^{-i..} split into cos / sin
    E1c, E1s = np.cos(ang_kh), np.sin(ang_kh)             # [M, H]
    E2c, E2s = np.cos(ang_wl), np.sin(ang_wl)             # [W, M]
    # inverse transform e^{+i..}
    D1c, D1s = np.cos(ang_kh.T), np.sin(ang_kh.T)         # [H, M]
    D2c, D2s = np.cos(ang_lw), np.sin(ang_lw)             # [M, W]
    # Hermitian-completion weights for the (half-spectrum) width axis.
    d = np.full((M,), 2.0)
    d[0] = 1.0
    if W % 2 == 0 and M > W // 2:
        d[W // 2] = 1.0
    j = lambda a: jnp.asarray(a, jnp.float32)
    return dict(M=M, scale=float(1.0 / np.sqrt(H * W)),
                E1c=j(E1c), E1s=j(E1s), E2c=j(E2c), E2s=j(E2s),
                D1c=j(D1c), D1s=j(D1s), D2c=j(D2c), D2s=j(D2s), d=j(d))


# -----------------------------------------------------------------------------
# FourierLayer forward (GELU of the FNO loop fused into the conv kernel)
# -----------------------------------------------------------------------------
def fourier_layer_apply(h, lp, dft, vmem_limit):
    B, C, H, W = h.shape
    Co = lp["conv_w"].shape[0]
    M = dft["M"]
    P = M * M
    s = dft["scale"]
    prec = (jax.lax.Precision.HIGHEST if h.dtype == jnp.float32
            else jax.lax.Precision.DEFAULT)
    ein = partial(jnp.einsum, precision=prec, preferred_element_type=jnp.float32)

    # ---- truncated forward DFT (== rfft2(norm='ortho')[:, :, :M, :M]) ----
    a_c = ein("bchw,wl->bchl", h, dft["E2c"])
    a_s = ein("bchw,wl->bchl", h, dft["E2s"])
    xr = s * (ein("kh,bchl->klbc", dft["E1c"], a_c)
              - ein("kh,bchl->klbc", dft["E1s"], a_s))
    xi = -s * (ein("kh,bchl->klbc", dft["E1c"], a_s)
               + ein("kh,bchl->klbc", dft["E1s"], a_c))
    x_pack = jnp.concatenate(
        [xr.reshape(P, B, C), xi.reshape(P, B, C)], axis=1).astype(jnp.float32)

    # ---- per-mode channel mixing (Pallas packed GEMM) ----
    out_pack = spectral_matmul(x_pack, lp["w_pack"], vmem_limit)    # [P, B, 2Co]

    # ---- truncated inverse DFT (== irfft2 of the zero-padded spectrum) ----
    op = out_pack.reshape(M, M, B, 2 * Co).transpose(2, 3, 0, 1)    # [B, 2Co, M, M]
    zr = op[:, :Co] * dft["d"]
    zi = op[:, Co:] * dft["d"]
    t_r = ein("bokl,lw->bokw", zr, dft["D2c"]) - ein("bokl,lw->bokw", zi, dft["D2s"])
    t_i = ein("bokl,lw->bokw", zr, dft["D2s"]) + ein("bokl,lw->bokw", zi, dft["D2c"])
    x_fourier = s * (ein("hk,bokw->bohw", dft["D1c"], t_r)
                     - ein("hk,bokw->bohw", dft["D1s"], t_i))        # [B, Co, H, W]

    # ---- fused 1x1 conv + fourier add + GELU on the flat [B, C, H*W] view ----
    y = conv_add_gelu(h.reshape(B, C, H * W), lp["conv_w"], lp["conv_b"],
                      x_fourier.reshape(B, Co, H * W).astype(h.dtype), vmem_limit)
    return y.reshape(B, Co, H, W)


# -----------------------------------------------------------------------------
# FNO forward
# -----------------------------------------------------------------------------
def fno_apply(x, params, modes, act_dtype=jnp.bfloat16, vmem_limit=None):
    if vmem_limit is None:
        vmem_limit = _default_vmem_limit()
    B, Cin, H, W = x.shape
    hidden = params["fc0_w"].shape[0]
    Cout = params["fc1_w"].shape[0]
    HW = H * W
    dft = _dft_matrices(H, W, modes)

    h = matmul_bias(x.reshape(B, Cin, HW).astype(act_dtype),
                    params["fc0_w"], params["fc0_b"], vmem_limit,
                    out_dtype=act_dtype)
    h = h.reshape(B, hidden, H, W)                     # free reshape (NCHW)

    for lp in params["layers"]:
        h = fourier_layer_apply(h, lp, dft, vmem_limit)   # includes GELU

    y = matmul_bias(h.reshape(B, hidden, HW), params["fc1_w"], params["fc1_b"],
                    vmem_limit, out_dtype=jnp.float32)
    return y.reshape(B, Cout, H, W)


# -----------------------------------------------------------------------------
# Deterministic parameter init (shapes mirror the PyTorch module; linear/conv
# weights stored torch-style [out, in]; spectral weights packed [P, Ci, 2Co]).
# -----------------------------------------------------------------------------
def init_params(key, in_channels, out_channels, hidden, num_layers, modes):
    keys = jax.random.split(key, 4 + 4 * num_layers)
    p = {}
    p["fc0_w"] = jax.random.normal(keys[0], (hidden, in_channels), jnp.float32) / np.sqrt(in_channels)
    p["fc0_b"] = 0.01 * jax.random.normal(keys[1], (hidden,), jnp.float32)

    layers = []
    for l in range(num_layers):
        k = keys[2 + 4 * l: 2 + 4 * l + 4]
        # torch shape: [in, out, modes, modes, 2], xavier_normal-ish scale
        scale = np.sqrt(2.0 / (hidden + hidden))
        w = scale * jax.random.normal(k[0], (hidden, hidden, modes, modes, 2), jnp.float32)
        wr = w[..., 0].transpose(2, 3, 0, 1).reshape(modes * modes, hidden, hidden)
        wi = w[..., 1].transpose(2, 3, 0, 1).reshape(modes * modes, hidden, hidden)
        w_pack = jnp.concatenate([wr, wi], axis=-1)     # [P, Ci, 2Co]
        conv_w = jax.random.normal(k[1], (hidden, hidden), jnp.float32) / np.sqrt(hidden)
        conv_b = 0.01 * jax.random.normal(k[2], (hidden,), jnp.float32)
        layers.append({"w_pack": w_pack, "conv_w": conv_w, "conv_b": conv_b})
    p["layers"] = layers

    p["fc1_w"] = jax.random.normal(keys[-2], (out_channels, hidden), jnp.float32) / np.sqrt(hidden)
    p["fc1_b"] = 0.01 * jax.random.normal(keys[-1], (out_channels,), jnp.float32)
    return p


# -----------------------------------------------------------------------------
# Pure-JAX reference (mirrors the PyTorch forward exactly, uses real FFTs)
# -----------------------------------------------------------------------------
def fno_reference(x, params, modes):
    hp = jax.lax.Precision.HIGHEST

    def gelu(z):
        return 0.5 * z * (1.0 + jax.lax.erf(z / np.sqrt(2.0)))

    B, Cin, H, W = x.shape
    hidden = params["fc0_w"].shape[0]
    M = modes

    h = jnp.einsum("bchw,dc->bdhw", x, params["fc0_w"], precision=hp) \
        + params["fc0_b"][None, :, None, None]
    for lp in params["layers"]:
        Co = lp["conv_w"].shape[0]
        wr = lp["w_pack"][..., :Co]
        wi = lp["w_pack"][..., Co:]
        wc = (wr + 1j * wi).reshape(M, M, hidden, Co).transpose(2, 3, 0, 1)
        x_ft = jnp.fft.rfft2(h, norm="ortho")
        blk = jnp.einsum("bixy,ioxy->boxy", x_ft[:, :, :M, :M], wc, precision=hp)
        out_ft = jnp.zeros((B, Co, H, W // 2 + 1), jnp.complex64).at[:, :, :M, :M].set(blk)
        x_fourier = jnp.fft.irfft2(out_ft, s=(H, W), norm="ortho")
        x_linear = jnp.einsum("bchw,dc->bdhw", h, lp["conv_w"], precision=hp) \
            + lp["conv_b"][None, :, None, None]
        h = gelu(x_fourier + x_linear)
    y = jnp.einsum("bchw,dc->bdhw", h, params["fc1_w"], precision=hp) \
        + params["fc1_b"][None, :, None, None]
    return y


if __name__ == "__main__":
    B, Cin, Cout, H, W = 2, 4, 3, 16, 16
    hidden, num_layers, modes = 32, 2, 8

    key = jax.random.PRNGKey(0)
    kx, kp = jax.random.split(key)
    x = jax.random.normal(kx, (B, Cin, H, W), jnp.float32)
    params = init_params(kp, Cin, Cout, hidden, num_layers, modes)

    ref = np.asarray(fno_reference(x, params, modes))

    # f32 activation path: validates kernels + truncated-DFT math tightly.
    out_f32 = jax.jit(partial(fno_apply, modes=modes, act_dtype=jnp.float32))(x, params)
    out_f32 = jax.block_until_ready(out_f32)
    assert out_f32.shape == (B, Cout, H, W), out_f32.shape
    np.testing.assert_allclose(np.asarray(out_f32), ref, rtol=2e-2, atol=2e-2)

    # default bf16 activation-stream path (~2x HBM on the pointwise kernels).
    out_bf16 = jax.jit(partial(fno_apply, modes=modes, act_dtype=jnp.bfloat16))(x, params)
    out_bf16 = jax.block_until_ready(out_bf16)
    assert out_bf16.shape == (B, Cout, H, W), out_bf16.shape
    np.testing.assert_allclose(np.asarray(out_bf16), ref, rtol=8e-2, atol=8e-2)

    print("KERNEL_OK")
</pallas_src>

<mosaic_0001>
module attributes {stable_mosaic.version = 11 : i64} {
  func.func @_matmul_bias_kernel(%arg0: i32, %arg1: i32, %arg2: memref<1x4x256xf32, #tpu.memory_space<vmem>>, %arg3: memref<32x4xf32, #tpu.memory_space<vmem>>, %arg4: memref<32x1xf32, #tpu.memory_space<vmem>>, %arg5: memref<1x32x256xf32, #tpu.memory_space<vmem>>) attributes {dimension_semantics = [#tpu.dimension_semantics<parallel>, #tpu.dimension_semantics<parallel>], iteration_bounds = array<i64: 2, 1>, scalar_prefetch = 0 : i64, scratch_operands = 0 : i64, tpu.core_type = #tpu.core_type<tc>, window_params = [{transform_indices = @transform_0, window_bounds = array<i64: 1, 4, 256>}, {pipeline_mode = #tpu.pipeline_mode<synchronous>, transform_indices = @transform_1, window_bounds = array<i64: 32, 4>}, {pipeline_mode = #tpu.pipeline_mode<synchronous>, transform_indices = @transform_2, window_bounds = array<i64: 32, 1>}, {transform_indices = @transform_3, window_bounds = array<i64: 1, 32, 256>}]} {
    %c0 = arith.constant 0 : index
    %c0_0 = arith.constant 0 : index
    %0 = vector.load %arg3[%c0, %c0_0] : memref<32x4xf32, #tpu.memory_space<vmem>>, vector<32x4xf32>
    %c0_1 = arith.constant 0 : index
    %c0_2 = arith.constant 0 : index
    %c0_3 = arith.constant 0 : index
    %1 = vector.load %arg2[%c0_1, %c0_2, %c0_3] : memref<1x4x256xf32, #tpu.memory_space<vmem>>, vector<1x4x256xf32>
    %2 = vector.shape_cast %1 : vector<1x4x256xf32> to vector<4x256xf32>
    %cst = arith.constant dense<0.000000e+00> : vector<32x256xf32>
    %3 = tpu.matmul %0, %2, %cst {dimension_numbers = #tpu.dot_dimension_numbers<[1], [0], [0], [1], [0, 0, 1, 1], [], []>} : vector<32x4xf32>, vector<4x256xf32>, vector<32x256xf32> -> vector<32x256xf32>
    %c0_4 = arith.constant 0 : index
    %c0_5 = arith.constant 0 : index
    %4 = vector.load %arg4[%c0_4, %c0_5] : memref<32x1xf32, #tpu.memory_space<vmem>>, vector<32x1xf32>
    %5 = vector.broadcast %4 : vector<32x1xf32> to vector<32x256xf32>
    %6 = arith.addf %3, %5 : vector<32x256xf32>
    %c0_6 = arith.constant 0 : index
    %c0_7 = arith.constant 0 : index
    %c0_8 = arith.constant 0 : index
    %7 = vector.load %arg5[%c0_6, %c0_7, %c0_8] : memref<1x32x256xf32, #tpu.memory_space<vmem>>, vector<1x32x256xf32>
    %8 = vector.shape_cast %7 : vector<1x32x256xf32> to vector<32x256xf32>
    %9 = vector.shape_cast %6 : vector<32x256xf32> to vector<1x32x256xf32>
    tpu.vector_store %arg5[%c0_6, %c0_7, %c0_8], %9 {strides = array<i32>} : memref<1x32x256xf32, #tpu.memory_space<vmem>>, vector<1x32x256xf32>,
    return
  }
  func.func @transform_0(%arg0: i32, %arg1: i32) -> (i32, i32, i32) {
    %c0_i32 = arith.constant 0 : i32
    %c0_i32_0 = arith.constant 0 : i32
    return %arg0, %c0_i32, %arg1 : i32, i32, i32
  }
  func.func @transform_1(%arg0: i32, %arg1: i32) -> (i32, i32) {
    %c0_i32 = arith.constant 0 : i32
    %c0_i32_0 = arith.constant 0 : i32
    %c0_i32_1 = arith.constant 0 : i32
    return %c0_i32, %c0_i32_0 : i32, i32
  }
  func.func @transform_2(%arg0: i32, %arg1: i32) -> (i32, i32) {
    %c0_i32 = arith.constant 0 : i32
    %c0_i32_0 = arith.constant 0 : i32
    %c0_i32_1 = arith.constant 0 : i32
    return %c0_i32, %c0_i32_0 : i32, i32
  }
  func.func @transform_3(%arg0: i32, %arg1: i32) -> (i32, i32, i32) {
    %c0_i32 = arith.constant 0 : i32
    %c0_i32_0 = arith.constant 0 : i32
    return %arg0, %c0_i32, %arg1 : i32, i32, i32
  }
}

module attributes {stable_mosaic.version = 11 : i64} {
  func.func @_spectral_kernel(%arg0: i32, %arg1: memref<64x4x32xf32, #tpu.memory_space<vmem>>, %arg2: memref<64x32x64xf32, #tpu.memory_space<vmem>>, %arg3: memref<64x2x64xf32, #tpu.memory_space<vmem>>) attributes {dimension_semantics = [#tpu.dimension_semantics<parallel>], iteration_bounds = array<i64: 1>, scalar_prefetch = 0 : i64, scratch_operands = 0 : i64, tpu.core_type = #tpu.core_type<tc>, window_params = [{transform_indices = @transform_0, window_bounds = array<i64: 64, 4, 32>}, {transform_indices = @transform_1, window_bounds = array<i64: 64, 32, 64>}, {transform_indices = @transform_2, window_bounds = array<i64: 64, 2, 64>}]} {
    %c0 = arith.constant 0 : index
    %c0_0 = arith.constant 0 : index
    %c0_1 = arith.constant 0 : index
    %0 = vector.load %arg1[%c0, %c0_0, %c0_1] : memref<64x4x32xf32, #tpu.memory_space<vmem>>, vector<64x4x32xf32>
    %c0_2 = arith.constant 0 : index
    %c0_3 = arith.constant 0 : index
    %c0_4 = arith.constant 0 : index
    %1 = vector.load %arg2[%c0_2, %c0_3, %c0_4] : memref<64x32x64xf32, #tpu.memory_space<vmem>>, vector<64x32x64xf32>
    "tpu.trace_start"() <{level = 10 : i32, message = "pbi,pio->pbo"}> : () -> ()
    %cst = arith.constant dense<0.000000e+00> : vector<64x4x64xf32>
    %2 = tpu.matmul %0, %1, %cst {dimension_numbers = #tpu.dot_dimension_numbers<[2], [1], [1], [2], [0, 0, 0, 1, 1, 2], [0], [0]>} : vector<64x4x32xf32>, vector<64x32x64xf32>, vector<64x4x64xf32> -> vector<64x4x64xf32>
    "tpu.trace_stop"() : () -> ()
    %3 = vector.extract_strided_slice %2 {offsets = [0, 0, 0], sizes = [64, 2, 32], strides = [1, 1, 1]} : vector<64x4x64xf32> to vector<64x2x32xf32>
    %4 = vector.extract_strided_slice %2 {offsets = [0, 0, 32], sizes = [64, 2, 32], strides = [1, 1, 1]} : vector<64x4x64xf32> to vector<64x2x32xf32>
    %5 = vector.extract_strided_slice %2 {offsets = [0, 2, 0], sizes = [64, 2, 32], strides = [1, 1, 1]} : vector<64x4x64xf32> to vector<64x2x32xf32>
    %6 = vector.extract_strided_slice %2 {offsets = [0, 2, 32], sizes = [64, 2, 32], strides = [1, 1, 1]} : vector<64x4x64xf32> to vector<64x2x32xf32>
    %7 = arith.subf %3, %6 : vector<64x2x32xf32>
    %c0_5 = arith.constant 0 : index
    %c0_6 = arith.constant 0 : index
    %c0_7 = arith.constant 0 : index
    %8 = vector.load %arg3[%c0_5, %c0_6, %c0_7] : memref<64x2x64xf32, #tpu.memory_space<vmem>>, vector<64x2x32xf32>
    tpu.vector_store %arg3[%c0_5, %c0_6, %c0_7], %7 {strides = array<i32>} : memref<64x2x64xf32, #tpu.memory_space<vmem>>, vector<64x2x32xf32>,
    %9 = arith.addf %4, %5 : vector<64x2x32xf32>
    %c0_8 = arith.constant 0 : index
    %c0_9 = arith.constant 0 : index
    %c32 = arith.constant 32 : index
    %10 = vector.load %arg3[%c0_8, %c0_9, %c32] : memref<64x2x64xf32, #tpu.memory_space<vmem>>, vector<64x2x32xf32>
    tpu.vector_store %arg3[%c0_8, %c0_9, %c32], %9 {strides = array<i32>} : memref<64x2x64xf32, #tpu.memory_space<vmem>>, vector<64x2x32xf32>,
    return
  }
  func.func @transform_0(%arg0: i32) -> (i32, i32, i32) {
    %c0_i32 = arith.constant 0 : i32
    %c0_i32_0 = arith.constant 0 : i32
    %c0_i32_1 = arith.constant 0 : i32
    return %arg0, %c0_i32, %c0_i32_0 : i32, i32, i32
  }
  func.func @transform_1(%arg0: i32) -> (i32, i32, i32) {
    %c0_i32 = arith.constant 0 : i32
    %c0_i32_0 = arith.constant 0 : i32
    %c0_i32_1 = arith.constant 0 : i32
    return %arg0, %c0_i32, %c0_i32_0 : i32, i32, i32
  }
  func.func @transform_2(%arg0: i32) -> (i32, i32, i32) {
    %c0_i32 = arith.constant 0 : i32
    %c0_i32_0 = arith.constant 0 : i32
    %c0_i32_1 = arith.constant 0 : i32
    return %arg0, %c0_i32, %c0_i32_0 : i32, i32, i32
  }
}

module attributes {stable_mosaic.version = 11 : i64} {
  func.func @_conv_add_gelu_kernel(%arg0: i32, %arg1: i32, %arg2: memref<1x32x256xf32, #tpu.memory_space<vmem>>, %arg3: memref<32x32xf32, #tpu.memory_space<vmem>>, %arg4: memref<32x1xf32, #tpu.memory_space<vmem>>, %arg5: memref<1x32x256xf32, #tpu.memory_space<vmem>>, %arg6: memref<1x32x256xf32, #tpu.memory_space<vmem>>) attributes {dimension_semantics = [#tpu.dimension_semantics<parallel>, #tpu.dimension_semantics<parallel>], iteration_bounds = array<i64: 2, 1>, scalar_prefetch = 0 : i64, scratch_operands = 0 : i64, tpu.core_type = #tpu.core_type<tc>, window_params = [{transform_indices = @transform_0, window_bounds = array<i64: 1, 32, 256>}, {pipeline_mode = #tpu.pipeline_mode<synchronous>, transform_indices = @transform_1, window_bounds = array<i64: 32, 32>}, {pipeline_mode = #tpu.pipeline_mode<synchronous>, transform_indices = @transform_2, window_bounds = array<i64: 32, 1>}, {transform_indices = @transform_3, window_bounds = array<i64: 1, 32, 256>}, {transform_indices = @transform_4, window_bounds = array<i64: 1, 32, 256>}]} {
    %c0 = arith.constant 0 : index
    %c0_0 = arith.constant 0 : index
    %0 = vector.load %arg3[%c0, %c0_0] : memref<32x32xf32, #tpu.memory_space<vmem>>, vector<32x32xf32>
    %c0_1 = arith.constant 0 : index
    %c0_2 = arith.constant 0 : index
    %c0_3 = arith.constant 0 : index
    %1 = vector.load %arg2[%c0_1, %c0_2, %c0_3] : memref<1x32x256xf32, #tpu.memory_space<vmem>>, vector<1x32x256xf32>
    %2 = vector.shape_cast %1 : vector<1x32x256xf32> to vector<32x256xf32>
    %cst = arith.constant dense<0.000000e+00> : vector<32x256xf32>
    %3 = tpu.matmul %0, %2, %cst {dimension_numbers = #tpu.dot_dimension_numbers<[1], [0], [0], [1], [0, 0, 1, 1], [], []>} : vector<32x32xf32>, vector<32x256xf32>, vector<32x256xf32> -> vector<32x256xf32>
    %c0_4 = arith.constant 0 : index
    %c0_5 = arith.constant 0 : index
    %c0_6 = arith.constant 0 : index
    %4 = vector.load %arg5[%c0_4, %c0_5, %c0_6] : memref<1x32x256xf32, #tpu.memory_space<vmem>>, vector<1x32x256xf32>
    %5 = vector.shape_cast %4 : vector<1x32x256xf32> to vector<32x256xf32>
    %6 = arith.addf %5, %3 : vector<32x256xf32>
    %c0_7 = arith.constant 0 : index
    %c0_8 = arith.constant 0 : index
    %7 = vector.load %arg4[%c0_7, %c0_8] : memref<32x1xf32, #tpu.memory_space<vmem>>, vector<32x1xf32>
    %8 = vector.broadcast %7 : vector<32x1xf32> to vector<32x256xf32>
    %9 = arith.addf %6, %8 : vector<32x256xf32>
    %cst_9 = arith.constant 5.000000e-01 : f32
    %10 = vector.broadcast %cst_9 : f32 to vector<32x256xf32>
    %11 = arith.mulf %10, %9 : vector<32x256xf32>
    %cst_10 = arith.constant 0.707106769 : f32
    %12 = vector.broadcast %cst_10 : f32 to vector<32x256xf32>
    %13 = arith.mulf %9, %12 : vector<32x256xf32>
    %14 = math.erf %13 : vector<32x256xf32>
    %cst_11 = arith.constant 1.000000e+00 : f32
    %15 = vector.broadcast %cst_11 : f32 to vector<32x256xf32>
    %16 = arith.addf %15, %14 : vector<32x256xf32>
    %17 = arith.mulf %11, %16 : vector<32x256xf32>
    %c0_12 = arith.constant 0 : index
    %c0_13 = arith.constant 0 : index
    %c0_14 = arith.constant 0 : index
    %18 = vector.load %arg6[%c0_12, %c0_13, %c0_14] : memref<1x32x256xf32, #tpu.memory_space<vmem>>, vector<1x32x256xf32>
    %19 = vector.shape_cast %18 : vector<1x32x256xf32> to vector<32x256xf32>
    %20 = vector.shape_cast %17 : vector<32x256xf32> to vector<1x32x256xf32>
    tpu.vector_store %arg6[%c0_12, %c0_13, %c0_14], %20 {strides = array<i32>} : memref<1x32x256xf32, #tpu.memory_space<vmem>>, vector<1x32x256xf32>,
    return
  }
  func.func @transform_0(%arg0: i32, %arg1: i32) -> (i32, i32, i32) {
    %c0_i32 = arith.constant 0 : i32
    %c0_i32_0 = arith.constant 0 : i32
    return %arg0, %c0_i32, %arg1 : i32, i32, i32
  }
  func.func @transform_1(%arg0: i32, %arg1: i32) -> (i32, i32) {
    %c0_i32 = arith.constant 0 : i32
    %c0_i32_0 = arith.constant 0 : i32
    %c0_i32_1 = arith.constant 0 : i32
    return %c0_i32, %c0_i32_0 : i32, i32
  }
  func.func @transform_2(%arg0: i32, %arg1: i32) -> (i32, i32) {
    %c0_i32 = arith.constant 0 : i32
    %c0_i32_0 = arith.constant 0 : i32
    %c0_i32_1 = arith.constant 0 : i32
    return %c0_i32, %c0_i32_0 : i32, i32
  }
  func.func @transform_3(%arg0: i32, %arg1: i32) -> (i32, i32, i32) {
    %c0_i32 = arith.constant 0 : i32
    %c0_i32_0 = arith.constant 0 : i32
    return %arg0, %c0_i32, %arg1 : i32, i32, i32
  }
  func.func @transform_4(%arg0: i32, %arg1: i32) -> (i32, i32, i32) {
    %c0_i32 = arith.constant 0 : i32
    %c0_i32_0 = arith.constant 0 : i32
    return %arg0, %c0_i32, %arg1 : i32, i32, i32
  }
}

module attributes {stable_mosaic.version = 11 : i64} {
  func.func @_matmul_bias_kernel(%arg0: i32, %arg1: i32, %arg2: memref<1x32x256xf32, #tpu.memory_space<vmem>>, %arg3: memref<3x32xf32, #tpu.memory_space<vmem>>, %arg4: memref<3x1xf32, #tpu.memory_space<vmem>>, %arg5: memref<1x3x256xf32, #tpu.memory_space<vmem>>) attributes {dimension_semantics = [#tpu.dimension_semantics<parallel>, #tpu.dimension_semantics<parallel>], iteration_bounds = array<i64: 2, 1>, scalar_prefetch = 0 : i64, scratch_operands = 0 : i64, tpu.core_type = #tpu.core_type<tc>, window_params = [{transform_indices = @transform_0, window_bounds = array<i64: 1, 32, 256>}, {pipeline_mode = #tpu.pipeline_mode<synchronous>, transform_indices = @transform_1, window_bounds = array<i64: 3, 32>}, {pipeline_mode = #tpu.pipeline_mode<synchronous>, transform_indices = @transform_2, window_bounds = array<i64: 3, 1>}, {transform_indices = @transform_3, window_bounds = array<i64: 1, 3, 256>}]} {
    %c0 = arith.constant 0 : index
    %c0_0 = arith.constant 0 : index
    %0 = vector.load %arg3[%c0, %c0_0] : memref<3x32xf32, #tpu.memory_space<vmem>>, vector<3x32xf32>
    %c0_1 = arith.constant 0 : index
    %c0_2 = arith.constant 0 : index
    %c0_3 = arith.constant 0 : index
    %1 = vector.load %arg2[%c0_1, %c0_2, %c0_3] : memref<1x32x256xf32, #tpu.memory_space<vmem>>, vector<1x32x256xf32>
    %2 = vector.shape_cast %1 : vector<1x32x256xf32> to vector<32x256xf32>
    %cst = arith.constant dense<0.000000e+00> : vector<3x256xf32>
    %3 = tpu.matmul %0, %2, %cst {dimension_numbers = #tpu.dot_dimension_numbers<[1], [0], [0], [1], [0, 0, 1, 1], [], []>} : vector<3x32xf32>, vector<32x256xf32>, vector<3x256xf32> -> vector<3x256xf32>
    %c0_4 = arith.constant 0 : index
    %c0_5 = arith.constant 0 : index
    %4 = vector.load %arg4[%c0_4, %c0_5] : memref<3x1xf32, #tpu.memory_space<vmem>>, vector<3x1xf32>
    %5 = vector.broadcast %4 : vector<3x1xf32> to vector<3x256xf32>
    %6 = arith.addf %3, %5 : vector<3x256xf32>
    %c0_6 = arith.constant 0 : index
    %c0_7 = arith.constant 0 : index
    %c0_8 = arith.constant 0 : index
    %7 = vector.load %arg5[%c0_6, %c0_7, %c0_8] : memref<1x3x256xf32, #tpu.memory_space<vmem>>, vector<1x3x256xf32>
    %8 = vector.shape_cast %7 : vector<1x3x256xf32> to vector<3x256xf32>
    %9 = vector.shape_cast %6 : vector<3x256xf32> to vector<1x3x256xf32>
    tpu.vector_store %arg5[%c0_6, %c0_7, %c0_8], %9 {strides = array<i32>} : memref<1x3x256xf32, #tpu.memory_space<vmem>>, vector<1x3x256xf32>,
    return
  }
  func.func @transform_0(%arg0: i32, %arg1: i32) -> (i32, i32, i32) {
    %c0_i32 = arith.constant 0 : i32
    %c0_i32_0 = arith.constant 0 : i32
    return %arg0, %c0_i32, %arg1 : i32, i32, i32
  }
  func.func @transform_1(%arg0: i32, %arg1: i32) -> (i32, i32) {
    %c0_i32 = arith.constant 0 : i32
    %c0_i32_0 = arith.constant 0 : i32
    %c0_i32_1 = arith.constant 0 : i32
    return %c0_i32, %c0_i32_0 : i32, i32
  }
  func.func @transform_2(%arg0: i32, %arg1: i32) -> (i32, i32) {
    %c0_i32 = arith.constant 0 : i32
    %c0_i32_0 = arith.constant 0 : i32
    %c0_i32_1 = arith.constant 0 : i32
    return %c0_i32, %c0_i32_0 : i32, i32
  }
  func.func @transform_3(%arg0: i32, %arg1: i32) -> (i32, i32, i32) {
    %c0_i32 = arith.constant 0 : i32
    %c0_i32_0 = arith.constant 0 : i32
    return %arg0, %c0_i32, %arg1 : i32, i32, i32
  }
}

</mosaic_0001>

<bundles_post_ra>
// kernel: fno_apply.6
= control target key start
LH: loop header
LB: loop body
LE: loop exit
PB: predicated region body
PF: predicated region fallthrough
CT: control target
= control target key end

     0   :  { %s511_s12 = smov 0   ;;  %s513_s13 = smov 0   ;;  %s580_s0 = inlined_call_operand.vmem [shape: f32[2,4,256], index: 0, kind: input, shape index: {}]   ;;  %s581_s1 = inlined_call_operand.vmem [shape: f32[32,4], index: 1, kind: input, shape index: {}]   ;;  %s582_s2 = inlined_call_operand.vmem [shape: f32[32,1], index: 2, kind: input, shape index: {}]   ;;  %s583_s3 = inlined_call_operand.vmem [shape: f32[2,32,256], index: 3, kind: output, shape index: {}]  }
   0x1   :  { %s515_s14 = smov 0  }
   0x2 LB: > { %s25_s15 = sadd.s32 1, %s484_s13  ;;  %p418_p0 = scmp.ge.s32.totalorder %s488_s14, 1  ;;  %s488_s14 = sphi %s515_s14, %s13_s14   ;;  %s484_s13 = sphi %s513_s13, %s585_s13   ;;  %s480_s12 = sphi %s511_s12, %s584_s12  }
   0x3   : > { %p27_p1 = scmp.ge.s32.totalorder %s25_s15, 2  ;;  %p158_p2 = scmp.lt.s32.totalorder %s488_s14, 3 }
   0x5   : > { %s587_s15 = smov (%p27_p1, %s25_s15), 0  ;;  %p159_p3 = pnand %p418_p0, %p158_p2 }
   0x6   : > { %p191_p4 = scmp.lt.s32.totalorder (!%p159_p3), %s480_s12, 1 }
   0x7   : > { %162 = sbr.rel (%p159_p3) target bundleno = 170 (0xaa), region = 32 }
   0xc   : > { %v490_v0 = vmov 0   ;;  %v217_v1 = vld [vmem:[%s582_s2 + $0x10] sm:$0xff]  ;;  %s589_s12 = smov (!%p191_p4, %s480_s12), 1  ;;  %v215_v2 = vld [vmem:[%s582_s2] sm:$0xff]  ;;  %v218_v4 = vld [vmem:[%s582_s2 + $0x18] sm:$0xff]  ;;  %vm256_vm0 = vcmask 1043456  }
   0xd   : > { %465 = vset.pattern.permute.xlu1 %v490_v0  ;;  %464 = vset.pattern.permute.xlu0 %v490_v0  ;;  %s435_s20 = sshll.u32 %s589_s12, 3  ;;  %v216_v5 = vld [vmem:[%s582_s2 + $0x8] sm:$0xff]  ;;  %v210_v6 = vld [vmem:[%s581_s1] sm:$0xff]  ;;  %vm243_vm1 = vcmask 31744   ;;  %v212_v7 = vld [vmem:[%s581_s1 + $0x10] sm:$0xff]  ;;  %s436_s9 = sshll.u32 %s589_s12, 6 }
   0xe   : > { %231 = vperm.xlu1 %465, %v217_v1   ;;  %221 = vperm.xlu0 %464, %v215_v2   ;;  %s198_s23 = scalar_lea.vmem %s580_s0, %s435_s20  ;;  %v211_v10 = vld [vmem:[%s581_s1 + $0x8] sm:$0xff]  ;;  %v213_v11 = vld [vmem:[%s581_s1 + $0x18] sm:$0xff]  ;;  %s208_s16 = scalar_lea.vmem %s583_s3, %s436_s9 }
   0xf   : > { %v214_v3 = vld [vmem:[%s198_s23] sm:$0xff] }
  0x10   : > { %240 = vst [vmem:[#allocation1] ss:$2 sm:$0xff] %v214_v3 }
  0x16   : > { %236 = vperm.xlu1 %465, %v218_v4   ;;  %226 = vperm.xlu0 %464, %v216_v5  }
  0x17   : > { %v241_v8 = vld.sshfl [vmem:[#allocation1] sm:$0xff pattern:$0x75316420]  ;;  %v242_v9 = vld.sshfl [vmem:[#allocation1 + $0x8] sm:$0xff pattern:$0x75316420] }
  0x18   : > { %423 = vmatpush.msk.msra.mxu0 %vm256_vm0, %v241_v8  ;;  %437 = vmatpush.msk.msra.mxu2 %vm256_vm0, %v241_v8 }
  0x19   : > { %428 = vmatpush.msk.msra.mxu1 %vm256_vm0, %v242_v9  ;;  %438 = vmatpush.msk.msra.mxu3 %vm256_vm0, %v242_v9 }
  0x1a   : > { %424 = vmatmul.msk.f32.vlgmr.msra.gmra.mxu0 %vm243_vm1, %v210_v6  ;;  %426 = vmatmul.msk.f32.vlgmr.msra.gmra.mxu2 %vm243_vm1, %v212_v7 }
  0x1b   : > { %429 = vmatmul.msk.f32.vlgmr.msra.gmra.mxu1 %vm243_vm1, %v210_v6  ;;  %431 = vmatmul.msk.f32.vlgmr.msra.gmra.mxu3 %vm243_vm1, %v212_v7 }
  0x22   : > { %425 = vmatmul.msk.f32.gmra.mxu0 %vm243_vm1, %v211_v10  ;;  %427 = vmatmul.msk.f32.gmra.mxu2 %vm243_vm1, %v213_v11 }
  0x23   : > { %430 = vmatmul.msk.f32.gmra.mxu1 %vm243_vm1, %v211_v10  ;;  %432 = vmatmul.msk.f32.gmra.mxu3 %vm243_vm1, %v213_v11 }
  0x80   : > { %v222_v12 = vpop.permute.xlu0 %221  ;;  %v232_v17 = vpop.permute.xlu1 %231 }
  0x88   : > { %v227_v21 = vpop.permute.xlu0 %226  ;;  %v237_v27 = vpop.permute.xlu1 %236 }
  0x97   : > { %v278_v13 = vpop.f32.mrf.mxu0 }
  0x98   : > { %v279_v14 = vadd.f32 %v278_v13, %v222_v12  ;;  %v307_v15 = vpop.f32.mrf.mxu1 }
  0x99   : > { %v308_v16 = vadd.f32 %v307_v15, %v222_v12 }
  0x9a   : > { %319 = vst [vmem:[%s208_s16] sm:$0xff] %v279_v14 }
  0x9b   : > { %320 = vst [vmem:[%s208_s16 + $0x8] sm:$0xff] %v308_v16 }
  0x9d   : > { %v284_v18 = vpop.f32.mrf.mxu2 }
  0x9e   : > { %v285_v19 = vadd.f32 %v284_v18, %v232_v17  ;;  %v313_v20 = vpop.f32.mrf.mxu3 }
  0x9f   : > { %v314_v22 = vadd.f32 %v313_v20, %v232_v17  ;;  %v281_v23 = vpop.f32.mrf.mxu0 }
  0xa0   : > { %323 = vst [vmem:[%s208_s16 + $0x20] sm:$0xff] %v285_v19  ;;  %v282_v24 = vadd.f32 %v281_v23, %v227_v21  ;;  %v310_v25 = vpop.f32.mrf.mxu1 }
  0xa1   : > { %324 = vst [vmem:[%s208_s16 + $0x28] sm:$0xff] %v314_v22  ;;  %v311_v26 = vadd.f32 %v310_v25, %v227_v21 }
  0xa2   : > { %321 = vst [vmem:[%s208_s16 + $0x10] sm:$0xff] %v282_v24 }
  0xa3   : > { %322 = vst [vmem:[%s208_s16 + $0x18] sm:$0xff] %v311_v26 }
  0xa5   : > { %v287_v28 = vpop.f32.mrf.mxu2 }
  0xa6   : > { %v288_v29 = vadd.f32 %v287_v28, %v237_v27  ;;  %v316_v30 = vpop.f32.mrf.mxu3 }
  0xa7   : > { %v317_v31 = vadd.f32 %v316_v30, %v237_v27 }
  0xa8   : > { %325 = vst [vmem:[%s208_s16 + $0x30] sm:$0xff] %v288_v29 }
  0xa9   : > { %326 = vst [vmem:[%s208_s16 + $0x38] sm:$0xff] %v317_v31 }
  0xaa PF: > { %s13_s14 = sadd.s32 1, %s488_s14   ;;  %s584_s12 = smov %s484_s13 }
  0xab   : > { %p10_p5 = scmp.ge.s32.totalorder %s13_s14, 4   ;;  %s585_s13 = smov %s587_s15 }
  0xad   :  { %12 = sbr.rel (!%p10_p5) target bundleno = 2 (0x2), region = 62 }

// kernel: fno_apply.8
= control target key start
LH: loop header
LB: loop body
LE: loop exit
PB: predicated region body
PF: predicated region fallthrough
CT: control target
= control target key end

     0   :  { %s1002_s15 = smov 0   ;;  %s1004_s16 = smov 0   ;;  %s1329_s0 = inlined_call_operand.vmem [shape: f32[2,32,256], index: 0, kind: input, shape index: {}]   ;;  %s1330_s1 = inlined_call_operand.vmem [shape: f32[32,32], index: 1, kind: input, shape index: {}]   ;;  %s1331_s2 = inlined_call_operand.vmem [shape: f32[32,1], index: 2, kind: input, shape index: {}]   ;;  %s1332_s3 = inlined_call_operand.vmem [shape: f32[2,32,256], index: 3, kind: input, shape index: {}]   ;;  %s1333_s4 = inlined_call_operand.vmem [shape: f32[2,32,256], index: 4, kind: output, shape index: {}]  }
   0x1   :  { %s1006_s17 = smov 0  }
   0x2 LB: > { %s26_s18 = sadd.s32 1, %s970_s16  ;;  %p873_p0 = scmp.ge.s32.totalorder %s974_s17, 1  ;;  %s974_s17 = sphi %s1006_s17, %s14_s17   ;;  %s970_s16 = sphi %s1004_s16, %s1339_s16   ;;  %s966_s15 = sphi %s1002_s15, %s1338_s15  }
   0x3   : > { %p28_p1 = scmp.ge.s32.totalorder %s26_s18, 2  ;;  %p200_p2 = scmp.lt.s32.totalorder %s974_s17, 3 }
   0x5   : > { %s1341_s18 = smov (%p28_p1, %s26_s18), 0  ;;  %p201_p3 = pnand %p873_p0, %p200_p2 }
   0x6   : > { %p244_p4 = scmp.lt.s32.totalorder (!%p201_p3), %s966_s15, 1 }
   0x7   : > { %204 = sbr.rel (%p201_p3) target bundleno = 267 (0x10b), region = 36 }
   0xc   : > { %v976_v0 = vmov 0   ;;  %v374_v1 = vld [vmem:[%s1331_s2 + $0x10] sm:$0xff]  ;;  %v372_v2 = vld [vmem:[%s1331_s2] sm:$0xff]  ;;  %s1343_s15 = smov (!%p244_p4, %s966_s15), 1  ;;  %vm285_vm0 = vcmask 261120   ;;  %v375_v13 = vld [vmem:[%s1331_s2 + $0x18] sm:$0xff] }
   0xd   : > { %935 = vset.pattern.permute.xlu1 %v976_v0  ;;  %934 = vset.pattern.permute.xlu0 %v976_v0  ;;  %s1026_s23 = sshll.u32 %s1343_s15, 6  ;;  %v273_v11 = vld [vmem:[%s1330_s1] sm:$0xff]  ;;  %v275_v12 = vld [vmem:[%s1330_s1 + $0x10] sm:$0xff]  ;;  %v373_v14 = vld [vmem:[%s1331_s2 + $0x8] sm:$0xff] }
   0xe   : > { %388 = vperm.xlu1 %935, %v374_v1   ;;  %378 = vperm.xlu0 %934, %v372_v2   ;;  %s251_s26 = scalar_lea.vmem %s1329_s0, %s1026_s23  ;;  %v274_v15 = vld [vmem:[%s1330_s1 + $0x8] sm:$0xff]  ;;  %v276_v16 = vld [vmem:[%s1330_s1 + $0x18] sm:$0xff]  ;;  %s1062_s15 = scalar_lea.vmem %s1332_s3, %s1026_s23 }
   0xf   : > { %v283_v3 = vld [vmem:[%s251_s26 + $0x30] sm:$0xff]  ;;  %v284_v4 = vld [vmem:[%s251_s26 + $0x38] sm:$0xff]  ;;  %v281_v5 = vld [vmem:[%s251_s26 + $0x20] sm:$0xff]  ;;  %s1229_s21 = scalar_lea.vmem %s1333_s4, %s1026_s23 }
  0x10   : > { %310 = vmatpush.msra.mxu0 %v283_v3  ;;  %901 = vmatpush.msra.mxu2 %v283_v3  ;;  %v282_v6 = vld [vmem:[%s251_s26 + $0x28] sm:$0xff]  ;;  %v279_v7 = vld [vmem:[%s251_s26 + $0x10] sm:$0xff]  ;;  %v280_v8 = vld [vmem:[%s251_s26 + $0x18] sm:$0xff] }
  0x11   : > { %339 = vmatpush.msra.mxu1 %v284_v4  ;;  %905 = vmatpush.msra.mxu3 %v284_v4  ;;  %v277_v9 = vld [vmem:[%s251_s26] sm:$0xff]  ;;  %v278_v10 = vld [vmem:[%s251_s26 + $0x8] sm:$0xff]  ;;  %v358_v38 = vld [vmem:[%s1062_s15 + $0x10] sm:$0xff] }
  0x12   : > { %311 = vmatpush.msra.mxu0 %v281_v5  ;;  %902 = vmatpush.msra.mxu2 %v281_v5  ;;  %v356_v17 = vld [vmem:[%s1062_s15] sm:$0xff]  ;;  %v357_v18 = vld [vmem:[%s1062_s15 + $0x8] sm:$0xff]  ;;  %v359_v51 = vld [vmem:[%s1062_s15 + $0x18] sm:$0xff] }
  0x13   : > { %340 = vmatpush.msra.mxu1 %v282_v6  ;;  %906 = vmatpush.msra.mxu3 %v282_v6  ;;  %v360_v26 = vld [vmem:[%s1062_s15 + $0x20] sm:$0xff]  ;;  %v361_v28 = vld [vmem:[%s1062_s15 + $0x28] sm:$0xff] }
  0x14   : > { %312 = vmatpush.msra.mxu0 %v279_v7  ;;  %903 = vmatpush.msra.mxu2 %v279_v7 }
  0x15   : > { %341 = vmatpush.msra.mxu1 %v280_v8  ;;  %907 = vmatpush.msra.mxu3 %v280_v8 }
  0x16   : > { %313 = vmatpush.msra.mxu0 %v277_v9  ;;  %904 = vmatpush.msra.mxu2 %v277_v9 }
  0x17   : > { %342 = vmatpush.msra.mxu1 %v278_v10  ;;  %908 = vmatpush.msra.mxu3 %v278_v10 }
  0x18   : > { %880 = vmatmul.msk.f32.vlgmr.msra.gmra.mxu0 %vm285_vm0, %v273_v11  ;;  %882 = vmatmul.msk.f32.vlgmr.msra.gmra.mxu2 %vm285_vm0, %v275_v12 }
  0x19   : > { %884 = vmatmul.msk.f32.vlgmr.msra.gmra.mxu1 %vm285_vm0, %v273_v11  ;;  %886 = vmatmul.msk.f32.vlgmr.msra.gmra.mxu3 %vm285_vm0, %v275_v12 }
  0x1a   : > { %393 = vperm.xlu1 %935, %v375_v13   ;;  %383 = vperm.xlu0 %934, %v373_v14  }
  0x20   : > { %881 = vmatmul.msk.f32.gmra.mxu0 %vm285_vm0, %v274_v15  ;;  %883 = vmatmul.msk.f32.gmra.mxu2 %vm285_vm0, %v276_v16 }
  0x21   : > { %885 = vmatmul.msk.f32.gmra.mxu1 %vm285_vm0, %v274_v15  ;;  %887 = vmatmul.msk.f32.gmra.mxu3 %vm285_vm0, %v276_v16 }
  0x80   : > { %v379_v22 = vpop.permute.xlu0 %378  ;;  %v389_v34 = vpop.permute.xlu1 %388 }
  0x8c   : > { %v384_v56 = vpop.permute.xlu0 %383 }
  0x95   : > { %v315_v19 = vpop.f32.mrf.mxu0 }
  0x96   : > { %v364_v20 = vadd.f32 %v356_v17, %v315_v19  ;;  %v344_v21 = vpop.f32.mrf.mxu1 }
  0x97   : > { %v365_v23 = vadd.f32 %v357_v18, %v344_v21 }
  0x98   : > { %v1066_v24 = vadd.f32 %v379_v22, %v364_v20 }
  0x99   : > { %v1068_v25 = vadd.f32 %v379_v22, %v365_v23 }
  0x9a   : > { %v1072_v27 = vmul.f32 0.70710677, %v1066_v24 }
  0x9b   : > { %v1076_v29 = vmul.f32 0.70710677, %v1068_v25  ;;  %v321_v30 = vpop.f32.mrf.mxu2 }
  0x9c   : > { %v420_v31 = vmul.f32 %v1072_v27, %v1072_v27  ;;  %v368_v32 = vadd.f32 %v360_v26, %v321_v30  ;;  %v350_v33 = vpop.f32.mrf.mxu3 }
  0x9d   : > { %v460_v35 = vmul.f32 %v1076_v29, %v1076_v29  ;;  %v369_v36 = vadd.f32 %v361_v28, %v350_v33  ;;  %v318_v37 = vpop.f32.mrf.mxu0 }
  0x9e   : > { %v1083_v39 = vmin.f32 %v420_v31, 16.0  ;;  %v1085_v40 = vadd.f32 %v389_v34, %v368_v32  ;;  %v366_v45 = vadd.f32 %v358_v38, %v318_v37  ;;  %v347_v57 = vpop.f32.mrf.mxu1 }
  0x9f   : > { %v1087_v41 = vmin.f32 %v460_v35, 16.0  ;;  %v1089_v42 = vadd.f32 %v389_v34, %v369_v36  ;;  %v367_v3 = vadd.f32 %v359_v51, %v347_v57  ;;  %v362_v57 = vld [vmem:[%s1062_s15 + $0x30] sm:$0xff] }
  0xa0   : > { %v422_v43 = vmul.f32 2.1237322e-06, %v1083_v39  ;;  %v433_v44 = vmul.f32 3.8918573e-05, %v1083_v39  ;;  %v1096_v48 = vmul.f32 0.70710677, %v1085_v40  ;;  %v1106_v60 = vadd.f32 %v384_v56, %v366_v45 }
  0xa1   : > { %v462_v46 = vmul.f32 2.1237322e-06, %v1087_v41  ;;  %v473_v47 = vmul.f32 3.8918573e-05, %v1087_v41  ;;  %v1102_v55 = vmul.f32 0.70710677, %v1089_v42  ;;  %v1125_v18 = vadd.f32 %v384_v56, %v367_v3 }
  0xa2   : > { %v423_v49 = vadd.f32 0.00028619796, %v422_v43  ;;  %v434_v50 = vadd.f32 0.001143296, %v433_v44  ;;  %v580_v54 = vmul.f32 %v1096_v48, %v1096_v48  ;;  %v1123_v14 = vmul.f32 0.70710677, %v1106_v60 }
  0xa3   : > { %v463_v52 = vadd.f32 0.00028619796, %v462_v46  ;;  %v474_v53 = vadd.f32 0.001143296, %v473_v47  ;;  %v620_v0 = vmul.f32 %v1102_v55, %v1102_v55  ;;  %v324_v56 = vpop.f32.mrf.mxu2 }
  0xa4   : > { %v424_v58 = vmul.f32 %v423_v49, %v1083_v39  ;;  %v435_v59 = vmul.f32 %v434_v50, %v1083_v39  ;;  %v1110_v63 = vmin.f32 %v580_v54, 16.0  ;;  %v500_v38 = vmul.f32 %v1123_v14, %v1123_v14 }
  0xa5   : > { %v464_v61 = vmul.f32 %v463_v52, %v1087_v41  ;;  %v475_v62 = vmul.f32 %v474_v53, %v1087_v41  ;;  %v1118_v10 = vmin.f32 %v620_v0, 16.0  ;;  %v370_v3 = vadd.f32 %v362_v57, %v324_v56 }
  0xa6   : > { %v425_v1 = vadd.f32 0.0036580483, %v424_v58  ;;  %v436_v2 = vadd.f32 0.014752088, %v435_v59  ;;  %v582_v6 = vmul.f32 2.1237322e-06, %v1110_v63 }
  0xa7   : > { %v465_v4 = vadd.f32 0.0036580483, %v464_v61  ;;  %v476_v5 = vadd.f32 0.014752088, %v475_v62  ;;  %v593_v9 = vmul.f32 3.8918573e-05, %v1110_v63 }
  0xa8   : > { %v426_v7 = vmul.f32 %v425_v1, %v1083_v39  ;;  %v437_v8 = vmul.f32 %v436_v2, %v1083_v39  ;;  %v583_v13 = vadd.f32 0.00028619796, %v582_v6  ;;  %v622_v22 = vmul.f32 2.1237322e-06, %v1118_v10 }
  0xa9   : > { %v466_v11 = vmul.f32 %v465_v4, %v1087_v41  ;;  %v477_v12 = vmul.f32 %v476_v5, %v1087_v41  ;;  %v594_v17 = vadd.f32 0.001143296, %v593_v9  ;;  %v633_v30 = vmul.f32 3.8918573e-05, %v1118_v10 }
  0xaa   : > { %v427_v15 = vadd.f32 0.05243302, %v426_v7  ;;  %v438_v16 = vadd.f32 0.112945676, %v437_v8  ;;  %v584_v21 = vmul.f32 %v583_v13, %v1110_v63  ;;  %v623_v34 = vadd.f32 0.00028619796, %v622_v22 }
  0xab   : > { %v467_v19 = vadd.f32 0.05243302, %v466_v11  ;;  %v478_v20 = vadd.f32 0.112945676, %v477_v12  ;;  %v595_v28 = vmul.f32 %v594_v17, %v1110_v63  ;;  %v634_v51 = vadd.f32 0.001143296, %v633_v30 }
  0xac   : > { %v428_v23 = vmul.f32 %v427_v15, %v1083_v39  ;;  %v439_v26 = vmul.f32 %v438_v16, %v1083_v39  ;;  %v585_v33 = vadd.f32 0.0036580483, %v584_v21  ;;  %v624_v46 = vmul.f32 %v623_v34, %v1118_v10  ;;  %v1170_v15 = vpop.permute.xlu1 %393 }
  0xad   : > { %v468_v31 = vmul.f32 %v467_v19, %v1087_v41  ;;  %v479_v32 = vmul.f32 %v478_v20, %v1087_v41  ;;  %v596_v37 = vadd.f32 0.014752088, %v595_v28  ;;  %v1148_v61 = vmul.f32 0.70710677, %v1125_v18 }
  0xae   : > { %v429_v35 = vadd.f32 0.18741608, %v428_v23  ;;  %v440_v36 = vadd.f32 0.4994258, %v439_v26  ;;  %v586_v45 = vmul.f32 %v585_v33, %v1110_v63  ;;  %v625_v54 = vadd.f32 0.0036580483, %v624_v46 }
  0xaf   : > { %v469_v43 = vadd.f32 0.18741608, %v468_v31  ;;  %v480_v44 = vadd.f32 0.4994258, %v479_v32  ;;  %v597_v50 = vmul.f32 %v596_v37, %v1110_v63  ;;  %v635_v1 = vmul.f32 %v634_v51, %v1118_v10 }
  0xb0   : > { %v430_v47 = vmul.f32 %v429_v35, %v1083_v39  ;;  %v441_v49 = vmul.f32 %v440_v36, %v1083_v39  ;;  %v587_v59 = vadd.f32 0.05243302, %v586_v45  ;;  %v626_v39 = vmul.f32 %v625_v54, %v1118_v10 }
  0xb1   : > { %v470_v52 = vmul.f32 %v469_v43, %v1087_v41  ;;  %v481_v53 = vmul.f32 %v480_v44, %v1087_v41  ;;  %v598_v0 = vadd.f32 0.112945676, %v597_v50  ;;  %v1155_v41 = vmin.f32 %v500_v38, 16.0 }
  0xb2   : > { %v1145_v58 = vadd.f32 1.0, %v441_v49  ;;  %v431_v2 = vadd.f32 1.1283791, %v430_v47  ;;  %v1159_v5 = vmul.f32 0.5, %v1066_v24  ;;  %v1162_v6 = vmul.f32 0.5, %v1068_v25 }
  0xb3   : > { %v1150_v62 = vadd.f32 1.0, %v481_v53  ;;  %v471_v4 = vadd.f32 1.1283791, %v470_v52  ;;  %v1165_v7 = vmul.f32 0.5, %v1085_v40  ;;  %v588_v8 = vmul.f32 %v587_v59, %v1110_v63 }
  0xb4   : > { %936 = vrcp.f32 %v1145_v58  ;;  %v452_v9 = vand.u32 2147483647, %v1145_v58  ;;  %v599_v11 = vmul.f32 %v598_v0, %v1110_v63  ;;  %v627_v12 = vadd.f32 0.05243302, %v626_v39 }
  0xb5   : > { %938 = vrcp.f32 %v1150_v62  ;;  %v636_v13 = vadd.f32 0.014752088, %v635_v1  ;;  %v432_v16 = vmul.f32 %v431_v2, %v1072_v27  ;;  %v502_v24 = vmul.f32 2.1237322e-06, %v1155_v41 }
  0xb6   : > { %v540_v25 = vmul.f32 %v1148_v61, %v1148_v61  ;;  %v1177_v40 = vadd.f32 %v1170_v15, %v370_v3  ;;  %vm448_vm1 = vweird.f32 %v1145_v58  ;;  %v454_v17 = vand.u32 2147483648, %v1145_v58 }
  0xb7   : > { %v472_v19 = vmul.f32 %v471_v4, %v1076_v29  ;;  %v600_v20 = vadd.f32 0.4994258, %v599_v11  ;;  %v637_v21 = vmul.f32 %v636_v13, %v1118_v10  ;;  %vm488_vm2 = vweird.f32 %v1150_v62 }
  0xb8   : > { %v589_v27 = vadd.f32 0.18741608, %v588_v8  ;;  %v503_v23 = vadd.f32 0.00028619796, %v502_v24  ;;  %v513_v26 = vmul.f32 3.8918573e-05, %v1155_v41  ;;  %v628_v29 = vmul.f32 %v627_v12, %v1118_v10 }
  0xb9   : > { %vm1186_vm3 = vcmp.eq.f32.partialorder %v452_v9, 8.507059e+37  ;;  %v601_v32 = vmul.f32 %v600_v20, %v1110_v63  ;;  %v492_v34 = vand.u32 2147483647, %v1150_v62  ;;  %v494_v35 = vand.u32 2147483648, %v1150_v62 }
  0xba   : > { %v937_v22 = vpop.eup %936  ;;  %v638_v36 = vadd.f32 0.112945676, %v637_v21  ;;  %v504_v43 = vmul.f32 %v503_v23, %v1155_v41  ;;  %v1198_v44 = vmin.f32 %v540_v25, 16.0  ;;  %v590_v46 = vmul.f32 %v589_v27, %v1110_v63 }
  0xbb   : > { %v939_v28 = vpop.eup %938  ;;  %v444_v30 = vmul.f32 %v937_v22, %v1145_v58  ;;  %v1195_v38 = vadd.f32 1.0, %v601_v32  ;;  %v514_v49 = vadd.f32 0.001143296, %v513_v26  ;;  %vm449_vm4 = vweird.f32 %v937_v22 }
  0xbc   : > { %v484_v33 = vmul.f32 %v939_v28, %v1150_v62  ;;  %v639_v47 = vmul.f32 %v638_v36, %v1118_v10  ;;  %v629_v51 = vadd.f32 0.18741608, %v628_v29  ;;  %v455_v52 = vor.u32 1.1754944e-38, %v454_v17  ;;  %vm450_vm6 = vmor %vm448_vm1, %vm449_vm4 }
  0xbd   : > { %v445_v37 = vsub.f32 1.0, %v444_v30  ;;  %940 = vrcp.f32 %v1195_v38  ;;  %vm489_vm5 = vweird.f32 %v939_v28  ;;  %v505_v57 = vadd.f32 0.0036580483, %v504_v43 }
  0xbe   : > { %v485_v45 = vsub.f32 1.0, %v484_v33  ;;  %v640_v54 = vadd.f32 0.4994258, %v639_v47  ;;  %v515_v59 = vmul.f32 %v514_v49, %v1155_v41  ;;  %v542_v0 = vmul.f32 2.1237322e-06, %v1198_v44  ;;  %vm490_vm8 = vmor %vm488_vm2, %vm489_vm5 }
  0xbf   : > { %v446_v50 = vmul.f32 %v937_v22, %v445_v37  ;;  %vm493_vm7 = vcmp.eq.f32.partialorder %v492_v34, 8.507059e+37  ;;  %v591_v39 = vadd.f32 1.1283791, %v590_v46  ;;  %v495_v3 = vor.u32 1.1754944e-38, %v494_v35 }
  0xc0   : > { %v486_v53 = vmul.f32 %v939_v28, %v485_v45  ;;  %v641_v1 = vmul.f32 %v640_v54, %v1118_v10  ;;  %v630_v4 = vmul.f32 %v629_v51, %v1118_v10  ;;  %v516_v8 = vadd.f32 0.014752088, %v515_v59 }
  0xc1   : > { %v447_v56 = vadd.f32 %v937_v22, %v446_v50  ;;  %v506_v58 = vmul.f32 %v505_v57, %v1155_v41  ;;  %v543_v20 = vadd.f32 0.00028619796, %v542_v0  ;;  %v592_v21 = vmul.f32 %v591_v39, %v1096_v48 }
  0xc2   : > { %v487_v63 = vadd.f32 %v939_v28, %v486_v53  ;;  %v1213_v12 = vadd.f32 1.0, %v641_v1  ;;  %v517_v17 = vmul.f32 %v516_v8, %v1155_v41  ;;  %vm608_vm9 = vweird.f32 %v1195_v38  ;;  %v363_v8 = vld [vmem:[%s1062_s15 + $0x38] sm:$0xff] }
  0xc3   : > { %v451_v2 = vsel %vm450_vm6, %v937_v22, %v447_v56  ;;  %v941_v13 = vpop.eup %940  ;;  %v612_v27 = vand.u32 2147483647, %v1195_v38  ;;  %v553_v23 = vmul.f32 3.8918573e-05, %v1198_v44  ;;  %v631_v32 = vadd.f32 1.1283791, %v630_v4  ;;  %v353_v4 = vpop.f32.mrf.mxu3 }
  0xc4   : > { %v456_v9 = vsel %vm1186_vm3, %v455_v52, %v451_v2  ;;  %v491_v11 = vsel %vm490_vm8, %v939_v28, %v487_v63  ;;  %v604_v10 = vmul.f32 %v941_v13, %v1195_v38  ;;  %942 = vrcp.f32 %v1213_v12 }
  0xc5   : > { %v457_v24 = vmul.f32 %v456_v9, %v432_v16  ;;  %v496_v25 = vsel %vm493_vm7, %v495_v3, %v491_v11  ;;  %v507_v28 = vadd.f32 0.05243302, %v506_v58  ;;  %v518_v30 = vadd.f32 0.112945676, %v517_v17 }
  0xc6   : > { %v497_v62 = vmul.f32 %v496_v25, %v472_v19  ;;  %v605_v26 = vsub.f32 1.0, %v604_v10  ;;  %v614_v19 = vand.u32 2147483648, %v1195_v38  ;;  %v544_v48 = vmul.f32 %v543_v20, %v1198_v44 }
  0xc7   : > { %v888_v22 = vclamps-f32 %v457_v24, 1.0  ;;  %vm609_vm10 = vweird.f32 %v941_v13  ;;  %v519_v34 = vmul.f32 %v518_v30, %v1155_v41  ;;  %vm1233_vm11 = vcmp.eq.f32.partialorder %v612_v27, 8.507059e+37 }
  0xc8   : > { %v889_v16 = vclamps-f32 %v497_v62, 1.0  ;;  %v606_v33 = vmul.f32 %v941_v13, %v605_v26  ;;  %v554_v37 = vadd.f32 0.001143296, %v553_v23  ;;  %v1238_v43 = vmul.f32 0.70710677, %v1177_v40  ;;  %vm610_vm12 = vmor %vm608_vm9, %vm609_vm10 }
  0xc9   : > { %v740_v31 = vadd.f32 1.0, %v888_v22  ;;  %v508_v49 = vmul.f32 %v507_v28, %v1155_v41  ;;  %v520_v50 = vadd.f32 0.4994258, %v519_v34  ;;  %v545_v52 = vadd.f32 0.0036580483, %v544_v48 }
  0xca   : > { %v741_v29 = vadd.f32 1.0, %v889_v16  ;;  %v943_v45 = vpop.eup %942  ;;  %v607_v47 = vadd.f32 %v941_v13, %v606_v33  ;;  %v555_v53 = vmul.f32 %v554_v37, %v1198_v44  ;;  %v652_v56 = vand.u32 2147483647, %v1213_v12 }
  0xcb   : > { %v748_v35 = vmul.f32 %v740_v31, %v1159_v5  ;;  %v615_v5 = vor.u32 1.1754944e-38, %v614_v19  ;;  %v644_v51 = vmul.f32 %v943_v45, %v1213_v12  ;;  %v660_v57 = vmul.f32 %v1238_v43, %v1238_v43 }
  0xcc   : > { %v749_v46 = vmul.f32 %v741_v29, %v1162_v6  ;;  %v611_v54 = vsel %vm610_vm12, %v941_v13, %v607_v47  ;;  %v521_v6 = vmul.f32 %v520_v50, %v1155_v41  ;;  %v654_v0 = vand.u32 2147483648, %v1213_v12 }
  0xcd   : > { %756 = vst [vmem:[%s1229_s21] sm:$0xff] %v748_v35  ;;  %v616_v38 = vsel %vm1233_vm11, %v615_v5, %v611_v54  ;;  %v645_v59 = vsub.f32 1.0, %v644_v51  ;;  %v556_v63 = vadd.f32 0.014752088, %v555_v53  ;;  %v509_v1 = vadd.f32 0.18741608, %v508_v49 }
  0xce   : > { %757 = vst [vmem:[%s1229_s21 + $0x8] sm:$0xff] %v749_v46  ;;  %v617_v39 = vmul.f32 %v616_v38, %v592_v21  ;;  %v1255_v2 = vadd.f32 1.0, %v521_v6  ;;  %v1257_v3 = vmin.f32 %v660_v57, 16.0  ;;  %vm649_vm13 = vweird.f32 %v943_v45 }
  0xcf   : > { %v646_v9 = vmul.f32 %v943_v45, %v645_v59  ;;  %v546_v11 = vmul.f32 %v545_v52, %v1198_v44  ;;  %v557_v58 = vmul.f32 %v556_v63, %v1198_v44  ;;  %v632_v24 = vmul.f32 %v631_v32, %v1102_v55 }
  0xd0   : > { %v892_v13 = vclamps-f32 %v617_v39, 1.0  ;;  %vm648_vm14 = vweird.f32 %v1213_v12  ;;  %944 = vrcp.f32 %v1255_v2  ;;  %vm653_vm15 = vcmp.eq.f32.partialorder %v652_v56, 8.507059e+37 }
  0xd1   : > { %v647_v25 = vadd.f32 %v943_v45, %v646_v9  ;;  %v558_v17 = vadd.f32 0.112945676, %v557_v58  ;;  %v371_v20 = vadd.f32 %v363_v8, %v353_v4  ;;  %vm650_vm0 = vmor %vm648_vm14, %vm649_vm13  ;;  %v655_v21 = vor.u32 1.1754944e-38, %v654_v0 }
  0xd2   : > { %v744_v62 = vadd.f32 1.0, %v892_v13  ;;  %v662_v10 = vmul.f32 2.1237322e-06, %v1257_v3  ;;  %v673_v22 = vmul.f32 3.8918573e-05, %v1257_v3  ;;  %v510_v23 = vmul.f32 %v509_v1, %v1155_v41 }
  0xd3   : > { %v651_v27 = vsel %vm650_vm0, %v943_v45, %v647_v25  ;;  %v547_v55 = vadd.f32 0.05243302, %v546_v11  ;;  %v559_v12 = vmul.f32 %v558_v17, %v1198_v44  ;;  %v1271_v32 = vadd.f32 %v1170_v15, %v371_v20 }
  0xd4   : > { %v752_v16 = vmul.f32 %v744_v62, %v1165_v7  ;;  %v656_v26 = vsel %vm653_vm15, %v655_v21, %v651_v27  ;;  %v663_v28 = vadd.f32 0.00028619796, %v662_v10  ;;  %v674_v30 = vadd.f32 0.001143296, %v673_v22 }
  0xd5   : > { %v657_v31 = vmul.f32 %v656_v26, %v632_v24  ;;  %v560_v19 = vadd.f32 0.4994258, %v559_v12  ;;  %v409_v41 = vmul.f32 0.5, %v1089_v42  ;;  %v511_v7 = vadd.f32 1.1283791, %v510_v23 }
  0xd6   : > { %v945_v48 = vpop.eup %944  ;;  %760 = vst [vmem:[%s1229_s21 + $0x20] sm:$0xff] %v752_v16  ;;  %v664_v29 = vmul.f32 %v663_v28, %v1257_v3  ;;  %v675_v33 = vmul.f32 %v674_v30, %v1257_v3  ;;  %v548_v36 = vmul.f32 %v547_v55, %v1198_v44  ;;  %v532_v47 = vand.u32 2147483647, %v1255_v2 }
  0xd7   : > { %v893_v34 = vclamps-f32 %v657_v31, 1.0  ;;  %v524_v35 = vmul.f32 %v945_v48, %v1255_v2  ;;  %v561_v37 = vmul.f32 %v560_v19, %v1198_v44  ;;  %v1282_v49 = vmul.f32 0.70710677, %v1271_v32 }
  0xd8   : > { %v676_v45 = vadd.f32 0.014752088, %v675_v33  ;;  %v534_v50 = vand.u32 2147483648, %v1255_v2  ;;  %v665_v5 = vadd.f32 0.0036580483, %v664_v29  ;;  %vm529_vm1 = vweird.f32 %v945_v48 }
  0xd9   : > { %v745_v15 = vadd.f32 1.0, %v893_v34  ;;  %v525_v46 = vsub.f32 1.0, %v524_v35  ;;  %v562_v42 = vadd.f32 1.0, %v561_v37  ;;  %v700_v54 = vmul.f32 %v1282_v49, %v1282_v49 }
  0xda   : > { %v677_v51 = vmul.f32 %v676_v45, %v1257_v3  ;;  %vm528_vm2 = vweird.f32 %v1255_v2  ;;  %v549_v6 = vadd.f32 0.18741608, %v548_v36  ;;  %v512_v59 = vmul.f32 %v511_v7, %v1123_v14 }
  0xdb   : > { %v753_v52 = vmul.f32 %v745_v15, %v409_v41  ;;  %v526_v53 = vmul.f32 %v945_v48, %v525_v46  ;;  %946 = vrcp.f32 %v562_v42  ;;  %v1290_v38 = vmin.f32 %v700_v54, 16.0  ;;  %vm530_vm3 = vmor %vm528_vm2, %vm529_vm1 }
  0xdc   : > { %v678_v57 = vadd.f32 0.112945676, %v677_v51  ;;  %v535_v0 = vor.u32 1.1754944e-38, %v534_v50  ;;  %v666_v63 = vmul.f32 %v665_v5, %v1257_v3  ;;  %vm533_vm4 = vcmp.eq.f32.partialorder %v532_v47, 8.507059e+37 }
  0xdd   : > { %761 = vst [vmem:[%s1229_s21 + $0x28] sm:$0xff] %v753_v52  ;;  %v527_v56 = vadd.f32 %v945_v48, %v526_v53  ;;  %v702_v4 = vmul.f32 2.1237322e-06, %v1290_v38  ;;  %v713_v8 = vmul.f32 3.8918573e-05, %v1290_v38  ;;  %v550_v11 = vmul.f32 %v549_v6, %v1198_v44 }
  0xde   : > { %v679_v1 = vmul.f32 %v678_v57, %v1257_v3  ;;  %v667_v14 = vadd.f32 0.05243302, %v666_v63  ;;  %v406_v62 = vmul.f32 0.5, %v1106_v60  ;;  %v574_v44 = vand.u32 2147483648, %v562_v42 }
  0xdf   : > { %v531_v39 = vsel %vm530_vm3, %v945_v48, %v527_v56  ;;  %v703_v13 = vadd.f32 0.00028619796, %v702_v4  ;;  %v714_v25 = vadd.f32 0.001143296, %v713_v8  ;;  %v551_v27 = vadd.f32 1.1283791, %v550_v11 }
  0xe0   : > { %v536_v2 = vsel %vm533_vm4, %v535_v0, %v531_v39  ;;  %v680_v58 = vadd.f32 0.4994258, %v679_v1  ;;  %v668_v12 = vmul.f32 %v667_v14, %v1257_v3  ;;  %v572_v31 = vand.u32 2147483647, %v562_v42 }
  0xe1   : > { %v537_v9 = vmul.f32 %v536_v2, %v512_v59  ;;  %v947_v24 = vpop.eup %946  ;;  %v715_v10 = vmul.f32 %v714_v25, %v1290_v38  ;;  %v704_v55 = vmul.f32 %v703_v13, %v1290_v38  ;;  %vm568_vm6 = vweird.f32 %v562_v42 }
  0xe2   : > { %v564_v20 = vmul.f32 %v947_v24, %v562_v42  ;;  %v681_v21 = vmul.f32 %v680_v58, %v1257_v3  ;;  %vm569_vm5 = vweird.f32 %v947_v24  ;;  %v575_v29 = vor.u32 1.1754944e-38, %v574_v44 }
  0xe3   : > { %v890_v17 = vclamps-f32 %v537_v9, 1.0  ;;  %v716_v26 = vadd.f32 0.014752088, %v715_v10  ;;  %v705_v19 = vadd.f32 0.0036580483, %v704_v55  ;;  %vm570_vm7 = vmor %vm568_vm6, %vm569_vm5  ;;  %v552_v41 = vmul.f32 %v551_v27, %v1148_v61 }
  0xe4   : > { %v565_v23 = vsub.f32 1.0, %v564_v20  ;;  %v682_v16 = vadd.f32 1.0, %v681_v21  ;;  %v669_v33 = vadd.f32 0.18741608, %v668_v12  ;;  %vm573_vm8 = vcmp.eq.f32.partialorder %v572_v31, 8.507059e+37 }
  0xe5   : > { %v742_v22 = vadd.f32 1.0, %v890_v17  ;;  %v717_v48 = vmul.f32 %v716_v26, %v1290_v38  ;;  %v706_v37 = vmul.f32 %v705_v19, %v1290_v38  ;;  %v407_v5 = vmul.f32 0.5, %v1125_v18 }
  0xe6   : > { %v566_v30 = vmul.f32 %v947_v24, %v565_v23  ;;  %948 = vrcp.f32 %v682_v16  ;;  %v670_v46 = vmul.f32 %v669_v33, %v1257_v3  ;;  %v694_v54 = vand.u32 2147483648, %v682_v16 }
  0xe7   : > { %v750_v28 = vmul.f32 %v742_v22, %v406_v62  ;;  %v718_v35 = vadd.f32 0.112945676, %v717_v48  ;;  %v707_v52 = vadd.f32 0.05243302, %v706_v37  ;;  %v692_v59 = vand.u32 2147483647, %v682_v16 }
  0xe8   : > { %v567_v60 = vadd.f32 %v947_v24, %v566_v30  ;;  %v671_v53 = vadd.f32 1.1283791, %v670_v46  ;;  %vm688_vm10 = vweird.f32 %v682_v16  ;;  %v695_v39 = vor.u32 1.1754944e-38, %v694_v54 }
  0xe9   : > { %758 = vst [vmem:[%s1229_s21 + $0x10] sm:$0xff] %v750_v28  ;;  %v719_v45 = vmul.f32 %v718_v35, %v1290_v38  ;;  %v708_v63 = vmul.f32 %v707_v52, %v1290_v38  ;;  %vm693_vm12 = vcmp.eq.f32.partialorder %v692_v59, 8.507059e+37  ;;  %v410_v58 = vmul.f32 0.5, %v1177_v40 }
  0xea   : > { %v571_v34 = vsel %vm570_vm7, %v947_v24, %v567_v60  ;;  %v672_v18 = vmul.f32 %v671_v53, %v1238_v43  ;;  %v411_v44 = vmul.f32 0.5, %v1271_v32 }
  0xeb   : > { %v576_v7 = vsel %vm573_vm8, %v575_v29, %v571_v34  ;;  %v720_v42 = vadd.f32 0.4994258, %v719_v45  ;;  %v709_v8 = vadd.f32 0.18741608, %v708_v63 }
  0xec   : > { %v577_v36 = vmul.f32 %v576_v7, %v552_v41  ;;  %v949_v15 = vpop.eup %948 }
  0xed   : > { %v684_v50 = vmul.f32 %v949_v15, %v682_v16  ;;  %v721_v56 = vmul.f32 %v720_v42, %v1290_v38  ;;  %vm689_vm9 = vweird.f32 %v949_v15  ;;  %v710_v24 = vmul.f32 %v709_v8, %v1290_v38 }
  0xee   : > { %v891_v47 = vclamps-f32 %v577_v36, 1.0  ;;  %vm690_vm11 = vmor %vm688_vm10, %vm689_vm9 }
  0xef   : > { %v685_v61 = vsub.f32 1.0, %v684_v50  ;;  %v722_v0 = vadd.f32 1.0, %v721_v56  ;;  %v711_v62 = vadd.f32 1.1283791, %v710_v24 }
  0xf0   : > { %v743_v51 = vadd.f32 1.0, %v891_v47 }
  0xf1   : > { %v686_v57 = vmul.f32 %v949_v15, %v685_v61  ;;  %950 = vrcp.f32 %v722_v0  ;;  %v734_v20 = vand.u32 2147483648, %v722_v0  ;;  %v732_v43 = vand.u32 2147483647, %v722_v0 }
  0xf2   : > { %v751_v6 = vmul.f32 %v743_v51, %v407_v5  ;;  %vm728_vm14 = vweird.f32 %v722_v0  ;;  %v712_v27 = vmul.f32 %v711_v62, %v1282_v49 }
  0xf3   : > { %v687_v3 = vadd.f32 %v949_v15, %v686_v57  ;;  %v735_v22 = vor.u32 1.1754944e-38, %v734_v20  ;;  %vm733_vm0 = vcmp.eq.f32.partialorder %v732_v43, 8.507059e+37 }
  0xf4   : > { %759 = vst [vmem:[%s1229_s21 + $0x18] sm:$0xff] %v751_v6 }
  0xf5   : > { %v691_v1 = vsel %vm690_vm11, %v949_v15, %v687_v3 }
  0xf6   : > { %v696_v4 = vsel %vm693_vm12, %v695_v39, %v691_v1 }
  0xf7   : > { %v697_v2 = vmul.f32 %v696_v4, %v672_v18  ;;  %v951_v11 = vpop.eup %950 }
  0xf8   : > { %v724_v14 = vmul.f32 %v951_v11, %v722_v0  ;;  %vm729_vm13 = vweird.f32 %v951_v11 }
  0xf9   : > { %v894_v9 = vclamps-f32 %v697_v2, 1.0  ;;  %vm730_vm15 = vmor %vm728_vm14, %vm729_vm13 }
  0xfa   : > { %v725_v17 = vsub.f32 1.0, %v724_v14 }
  0xfb   : > { %v746_v13 = vadd.f32 1.0, %v894_v9 }
  0xfc   : > { %v726_v21 = vmul.f32 %v951_v11, %v725_v17 }
  0xfd   : > { %v754_v25 = vmul.f32 %v746_v13, %v410_v58 }
  0xfe   : > { %v727_v10 = vadd.f32 %v951_v11, %v726_v21 }
  0xff   : > { %762 = vst [vmem:[%s1229_s21 + $0x30] sm:$0xff] %v754_v25 }
 0x100   : > { %v731_v40 = vsel %vm730_vm15, %v951_v11, %v727_v10 }
 0x101   : > { %v736_v23 = vsel %vm733_vm0, %v735_v22, %v731_v40 }
 0x102   : > { %v737_v38 = vmul.f32 %v736_v23, %v712_v27 }
 0x104   : > { %v895_v55 = vclamps-f32 %v737_v38, 1.0 }
 0x106   : > { %v747_v12 = vadd.f32 1.0, %v895_v55 }
 0x108   : > { %v755_v16 = vmul.f32 %v747_v12, %v411_v44 }
 0x10a   : > { %763 = vst [vmem:[%s1229_s21 + $0x38] sm:$0xff] %v755_v16 }
 0x10b PF: > { %s14_s17 = sadd.s32 1, %s974_s17   ;;  %s1338_s15 = smov %s970_s16 }
 0x10c   : > { %p11_p5 = scmp.ge.s32.totalorder %s14_s17, 4   ;;  %s1339_s16 = smov %s1341_s18 }
 0x10e   :  { %13 = sbr.rel (!%p11_p5) target bundleno = 2 (0x2), region = 69 }

// kernel: fno_apply.7
= control target key start
LH: loop header
LB: loop body
LE: loop exit
PB: predicated region body
PF: predicated region fallthrough
CT: control target
= control target key end

     0   :  { %vm331_vm0 = vcmask 261120   ;;  %s2644_s23 = smov 32   ;;  %s2645_s24 = smov 96   ;;  %vm2188_vm1 = vcmask 254976   ;;  %vm2509_vm2 = vcmask 517376   ;;  %s4764_s1 = inlined_call_operand.vmem [shape: f32[64,32,64], index: 1, kind: input, shape index: {}]   ;;  %s4765_s0 = inlined_call_operand.vmem [shape: f32[64,4,32], index: 0, kind: input, shape index: {}]   ;;  %s4766_s2 = inlined_call_operand.vmem [shape: f32[64,2,64], index: 2, kind: output, shape index: {}]  }
   0x1   :  { %v78_v0 = vld [vmem:[%s4764_s1 + $0x18] sm:$0xff]  ;;  %v77_v2 = vld [vmem:[%s4764_s1 + $0x10] sm:$0xff]  ;;  %v76_v5 = vld [vmem:[%s4764_s1 + $0x8] sm:$0xff] }
   0x2   :  { %v82_v1 = vld [vmem:[%s4764_s1 + $0x38] sm:$0xff]  ;;  %347 = vmatpush.msra.mxu0 %v78_v0  ;;  %v81_v3 = vld [vmem:[%s4764_s1 + $0x30] sm:$0xff]  ;;  %v80_v6 = vld [vmem:[%s4764_s1 + $0x28] sm:$0xff] }
   0x3   :  { %370 = vmatpush.msra.mxu1 %v82_v1  ;;  %v86_v4 = vld [vmem:[%s4764_s1 + $0x58] sm:$0xff]  ;;  %v85_v7 = vld [vmem:[%s4764_s1 + $0x50] sm:$0xff]  ;;  %v84_v8 = vld [vmem:[%s4764_s1 + $0x48] sm:$0xff] }
   0x4   :  { %393 = vmatpush.msra.mxu2 %v86_v4  ;;  %348 = vmatpush.msra.mxu0 %v77_v2  ;;  %v75_v9 = vld [vmem:[%s4764_s1] sm:$0xff]  ;;  %v90_v13 = vld [vmem:[%s4764_s1 + $0x78] sm:$0xff]  ;;  %v13_v16 = vld [vmem:[%s4765_s0 + $0x8] sm:$0xf] }
   0x5   :  { %371 = vmatpush.msra.mxu1 %v81_v3  ;;  %v79_v10 = vld [vmem:[%s4764_s1 + $0x20] sm:$0xff]  ;;  %v94_v15 = vld [vmem:[%s4764_s1 + $0x98] sm:$0xff]  ;;  %416 = vmatpush.msra.mxu3 %v90_v13  ;;  %v89_v17 = vld [vmem:[%s4764_s1 + $0x70] sm:$0xff] }
   0x6   :  { %394 = vmatpush.msra.mxu2 %v85_v7  ;;  %349 = vmatpush.msra.mxu0 %v76_v5  ;;  %v11_v11 = vld [vmem:[%s4765_s0] sm:$0xf]  ;;  %v12_v12 = vld [vmem:[%s4765_s0 + $0x4] sm:$0xf]  ;;  %v93_v18 = vld [vmem:[%s4764_s1 + $0x90] sm:$0xff] }
   0x7   :  { %372 = vmatpush.msra.mxu1 %v80_v6  ;;  %v83_v14 = vld [vmem:[%s4764_s1 + $0x40] sm:$0xff]  ;;  %v98_v19 = vld [vmem:[%s4764_s1 + $0xb8] sm:$0xff]  ;;  %v88_v20 = vld [vmem:[%s4764_s1 + $0x68] sm:$0xff]  ;;  %417 = vmatpush.msra.mxu3 %v89_v17 }
   0x8   :  { %395 = vmatpush.msra.mxu2 %v84_v8  ;;  %350 = vmatpush.msra.mxu0 %v75_v9  ;;  %v92_v21 = vld [vmem:[%s4764_s1 + $0x88] sm:$0xff]  ;;  %v97_v22 = vld [vmem:[%s4764_s1 + $0xb0] sm:$0xff]  ;;  %v102_v23 = vld [vmem:[%s4764_s1 + $0xd8] sm:$0xff] }
   0x9   :  { %373 = vmatpush.msra.mxu1 %v79_v10  ;;  %2578 = vmatmul.msk.f32.vlgmr.msra.gmra.mxu0 %vm331_vm0, %v11_v11  ;;  %v87_v24 = vld [vmem:[%s4764_s1 + $0x60] sm:$0xff]  ;;  %v101_v25 = vld [vmem:[%s4764_s1 + $0xd0] sm:$0xff]  ;;  %v14_v27 = vld [vmem:[%s4765_s0 + $0xc] sm:$0xf] }
   0xa   :  { %2579 = vmatmul.msk.f32.vlgmr.msra.gmra.mxu1 %vm331_vm0, %v12_v12  ;;  %396 = vmatpush.msra.mxu2 %v83_v14  ;;  %v91_v26 = vld [vmem:[%s4764_s1 + $0x80] sm:$0xff]  ;;  %v15_v28 = vld [vmem:[%s4765_s0 + $0x10] sm:$0xf]  ;;  %v96_v29 = vld [vmem:[%s4764_s1 + $0xa8] sm:$0xff] }
   0xb   :  { %439 = vmatpush.msrb.mxu0 %v94_v15  ;;  %2580 = vmatmul.msk.f32.vlgmr.msra.gmra.mxu2 %vm331_vm0, %v13_v16  ;;  %v106_v30 = vld [vmem:[%s4764_s1 + $0xf8] sm:$0xff]  ;;  %v100_v31 = vld [vmem:[%s4764_s1 + $0xc8] sm:$0xff]  ;;  %v95_v32 = vld [vmem:[%s4764_s1 + $0xa0] sm:$0xff] }
   0xc   :  { %462 = vmatpush.msrb.mxu1 %v98_v19  ;;  %418 = vmatpush.msra.mxu3 %v88_v20  ;;  %v110_v33 = vld [vmem:[%s4764_s1 + $0x118] sm:$0xff]  ;;  %v16_v34 = vld [vmem:[%s4765_s0 + $0x14] sm:$0xf]  ;;  %v99_v36 = vld [vmem:[%s4764_s1 + $0xc0] sm:$0xff] }
   0xd   :  { %440 = vmatpush.msrb.mxu0 %v93_v18  ;;  %485 = vmatpush.msrb.mxu2 %v102_v23  ;;  %v105_v35 = vld [vmem:[%s4764_s1 + $0xf0] sm:$0xff]  ;;  %v114_v37 = vld [vmem:[%s4764_s1 + $0x138] sm:$0xff]  ;;  %v104_v38 = vld [vmem:[%s4764_s1 + $0xe8] sm:$0xff] }
   0xe   :  { %463 = vmatpush.msrb.mxu1 %v97_v22  ;;  %419 = vmatpush.msra.mxu3 %v87_v24  ;;  %v17_v39 = vld [vmem:[%s4765_s0 + $0x18] sm:$0xf]  ;;  %v113_v40 = vld [vmem:[%s4764_s1 + $0x130] sm:$0xff]  ;;  %v103_v42 = vld [vmem:[%s4764_s1 + $0xe0] sm:$0xff] }
   0xf   :  { %441 = vmatpush.msrb.mxu0 %v92_v21  ;;  %486 = vmatpush.msrb.mxu2 %v101_v25  ;;  %v109_v41 = vld [vmem:[%s4764_s1 + $0x110] sm:$0xff]  ;;  %v118_v43 = vld [vmem:[%s4764_s1 + $0x158] sm:$0xff]  ;;  %v112_v45 = vld [vmem:[%s4764_s1 + $0x128] sm:$0xff] }
  0x10   :  { %2581 = vmatmul.msk.f32.vlgmr.msra.gmra.mxu3 %vm331_vm0, %v14_v27  ;;  %464 = vmatpush.msrb.mxu1 %v96_v29  ;;  %v18_v44 = vld [vmem:[%s4765_s0 + $0x1c] sm:$0xf]  ;;  %v108_v47 = vld [vmem:[%s4764_s1 + $0x108] sm:$0xff]  ;;  %v111_v48 = vld [vmem:[%s4764_s1 + $0x120] sm:$0xff] }
  0x11   :  { %442 = vmatpush.msrb.mxu0 %v91_v26  ;;  %508 = vmatpush.msrb.mxu3 %v106_v30  ;;  %v122_v46 = vld [vmem:[%s4764_s1 + $0x178] sm:$0xff]  ;;  %v117_v49 = vld [vmem:[%s4764_s1 + $0x150] sm:$0xff]  ;;  %v107_v51 = vld [vmem:[%s4764_s1 + $0x100] sm:$0xff] }
  0x12   :  { %2582 = vmatmul.msk.f32.vlgmr.msrb.gmra.mxu0 %vm331_vm0, %v15_v28  ;;  %487 = vmatpush.msrb.mxu2 %v100_v31  ;;  %v121_v50 = vld [vmem:[%s4764_s1 + $0x170] sm:$0xff]  ;;  %v19_v52 = vld [vmem:[%s4765_s0 + $0x20] sm:$0xf]  ;;  %v20_v53 = vld [vmem:[%s4765_s0 + $0x24] sm:$0xf] }
  0x13   :  { %465 = vmatpush.msrb.mxu1 %v95_v32  ;;  %531 = vmatpush.msra.mxu0 %v110_v33  ;;  %v120_v54 = vld [vmem:[%s4764_s1 + $0x168] sm:$0xff]  ;;  %v126_v56 = vld [vmem:[%s4764_s1 + $0x198] sm:$0xff]  ;;  %v119_v58 = vld [vmem:[%s4764_s1 + $0x160] sm:$0xff] }
  0x14   :  { %2583 = vmatmul.msk.f32.vlgmr.msrb.gmra.mxu1 %vm331_vm0, %v16_v34  ;;  %509 = vmatpush.msrb.mxu3 %v105_v35  ;;  %v116_v55 = vld [vmem:[%s4764_s1 + $0x148] sm:$0xff]  ;;  %v130_v57 = vld [vmem:[%s4764_s1 + $0x1b8] sm:$0xff]  ;;  %v115_v59 = vld [vmem:[%s4764_s1 + $0x140] sm:$0xff] }
  0x15   :  { %488 = vmatpush.msrb.mxu2 %v99_v36  ;;  %554 = vmatpush.msra.mxu1 %v114_v37  ;;  %v22_v60 = vld [vmem:[%s4765_s0 + $0x2c] sm:$0xf]  ;;  %v21_v61 = vld [vmem:[%s4765_s0 + $0x28] sm:$0xf]  ;;  %v125_v62 = vld [vmem:[%s4764_s1 + $0x190] sm:$0xff] }
  0x16   :  { %510 = vmatpush.msrb.mxu3 %v104_v38  ;;  %2584 = vmatmul.msk.f32.vlgmr.msrb.gmra.mxu2 %vm331_vm0, %v17_v39  ;;  %v129_v63 = vld [vmem:[%s4764_s1 + $0x1b0] sm:$0xff]  ;;  %v138_v0 = vld [vmem:[%s4764_s1 + $0x1f8] sm:$0xff]  ;;  %v124_v2 = vld [vmem:[%s4764_s1 + $0x188] sm:$0xff] }
  0x17   :  { %555 = vmatpush.msra.mxu1 %v113_v40  ;;  %532 = vmatpush.msra.mxu0 %v109_v41  ;;  %v134_v1 = vld [vmem:[%s4764_s1 + $0x1d8] sm:$0xff]  ;;  %v128_v3 = vld [vmem:[%s4764_s1 + $0x1a8] sm:$0xff]  ;;  %v137_v4 = vld [vmem:[%s4764_s1 + $0x1f0] sm:$0xff] }
  0x18   :  { %511 = vmatpush.msrb.mxu3 %v103_v42  ;;  %577 = vmatpush.msra.mxu2 %v118_v43  ;;  %v133_v5 = vld [vmem:[%s4764_s1 + $0x1d0] sm:$0xff]  ;;  %v123_v6 = vld [vmem:[%s4764_s1 + $0x180] sm:$0xff]  ;;  %v136_v8 = vld [vmem:[%s4764_s1 + $0x1e8] sm:$0xff] }
  0x19   :  { %2585 = vmatmul.msk.f32.vlgmr.msrb.gmra.mxu3 %vm331_vm0, %v18_v44  ;;  %556 = vmatpush.msra.mxu1 %v112_v45  ;;  %v127_v7 = vld [vmem:[%s4764_s1 + $0x1a0] sm:$0xff]  ;;  %v132_v9 = vld [vmem:[%s4764_s1 + $0x1c8] sm:$0xff]  ;;  %v23_v10 = vld [vmem:[%s4765_s0 + $0x30] sm:$0xf] }
  0x1a   :  { %600 = vmatpush.msra.mxu3 %v122_v46  ;;  %533 = vmatpush.msra.mxu0 %v108_v47  ;;  %v24_v11 = vld [vmem:[%s4765_s0 + $0x34] sm:$0xf]  ;;  %v135_v12 = vld [vmem:[%s4764_s1 + $0x1e0] sm:$0xff]  ;;  %v25_v14 = vld [vmem:[%s4765_s0 + $0x38] sm:$0xf] }
  0x1b   :  { %557 = vmatpush.msra.mxu1 %v111_v48  ;;  %578 = vmatpush.msra.mxu2 %v117_v49  ;;  %v131_v13 = vld [vmem:[%s4764_s1 + $0x1c0] sm:$0xff]  ;;  %v26_v15 = vld [vmem:[%s4765_s0 + $0x3c] sm:$0xf]  ;;  %v145_v20 = vld [vmem:[%s4764_s1 + $0x230] sm:$0xff] }
  0x1c   :  { %601 = vmatpush.msra.mxu3 %v121_v50  ;;  %534 = vmatpush.msra.mxu0 %v107_v51  ;;  %v146_v16 = vld [vmem:[%s4764_s1 + $0x238] sm:$0xff]  ;;  %v141_v21 = vld [vmem:[%s4764_s1 + $0x210] sm:$0xff]  ;;  %v144_v24 = vld [vmem:[%s4764_s1 + $0x228] sm:$0xff] }
  0x1d   :  { %2586 = vmatmul.msk.f32.vlgmr.msra.gmra.mxu0 %vm331_vm0, %v19_v52  ;;  %2587 = vmatmul.msk.f32.vlgmr.msra.gmra.mxu1 %vm331_vm0, %v20_v53  ;;  %v142_v17 = vld [vmem:[%s4764_s1 + $0x218] sm:$0xff]  ;;  %v149_v22 = vld [vmem:[%s4764_s1 + $0x250] sm:$0xff]  ;;  %v140_v25 = vld [vmem:[%s4764_s1 + $0x208] sm:$0xff] }
  0x1e   :  { %602 = vmatpush.msra.mxu3 %v120_v54  ;;  %579 = vmatpush.msra.mxu2 %v116_v55  ;;  %v150_v18 = vld [vmem:[%s4764_s1 + $0x258] sm:$0xff]  ;;  %v153_v23 = vld [vmem:[%s4764_s1 + $0x270] sm:$0xff]  ;;  %v148_v26 = vld [vmem:[%s4764_s1 + $0x248] sm:$0xff] }
  0x1f   :  { %623 = vmatpush.msrb.mxu0 %v126_v56  ;;  %646 = vmatpush.msrb.mxu1 %v130_v57  ;;  %v154_v19 = vld [vmem:[%s4764_s1 + $0x278] sm:$0xff]  ;;  %v152_v27 = vld [vmem:[%s4764_s1 + $0x268] sm:$0xff]  ;;  %v143_v28 = vld [vmem:[%s4764_s1 + $0x220] sm:$0xff] }
  0x20   :  { %603 = vmatpush.msra.mxu3 %v119_v58  ;;  %580 = vmatpush.msra.mxu2 %v115_v59  ;;  %v139_v29 = vld [vmem:[%s4764_s1 + $0x200] sm:$0xff]  ;;  %v29_v34 = vld [vmem:[%s4765_s0 + $0x48] sm:$0xf]  ;;  %v30_v35 = vld [vmem:[%s4765_s0 + $0x4c] sm:$0xf] }
  0x21   :  { %2589 = vmatmul.msk.f32.vlgmr.msra.gmra.mxu3 %vm331_vm0, %v22_v60  ;;  %2588 = vmatmul.msk.f32.vlgmr.msra.gmra.mxu2 %vm331_vm0, %v21_v61  ;;  %v28_v30 = vld [vmem:[%s4765_s0 + $0x44] sm:$0xf]  ;;  %v27_v31 = vld [vmem:[%s4765_s0 + $0x40] sm:$0xf]  ;;  %v162_v36 = vld [vmem:[%s4764_s1 + $0x2b8] sm:$0xff] }
  0x22   :  { %624 = vmatpush.msrb.mxu0 %v125_v62  ;;  %647 = vmatpush.msrb.mxu1 %v129_v63  ;;  %v147_v32 = vld [vmem:[%s4764_s1 + $0x240] sm:$0xff]  ;;  %v158_v37 = vld [vmem:[%s4764_s1 + $0x298] sm:$0xff]  ;;  %v161_v40 = vld [vmem:[%s4764_s1 + $0x2b0] sm:$0xff] }
  0x23   :  { %692 = vmatpush.msrb.mxu3 %v138_v0  ;;  %669 = vmatpush.msrb.mxu2 %v134_v1  ;;  %v151_v33 = vld [vmem:[%s4764_s1 + $0x260] sm:$0xff]  ;;  %v170_v38 = vld [vmem:[%s4764_s1 + $0x2f8] sm:$0xff]  ;;  %v157_v41 = vld [vmem:[%s4764_s1 + $0x290] sm:$0xff] }
  0x24   :  { %625 = vmatpush.msrb.mxu0 %v124_v2  ;;  %648 = vmatpush.msrb.mxu1 %v128_v3  ;;  %v166_v39 = vld [vmem:[%s4764_s1 + $0x2d8] sm:$0xff]  ;;  %v169_v42 = vld [vmem:[%s4764_s1 + $0x2f0] sm:$0xff]  ;;  %v160_v44 = vld [vmem:[%s4764_s1 + $0x2a8] sm:$0xff] }
  0x25   :  { %693 = vmatpush.msrb.mxu3 %v137_v4  ;;  %670 = vmatpush.msrb.mxu2 %v133_v5  ;;  %v165_v43 = vld [vmem:[%s4764_s1 + $0x2d0] sm:$0xff]  ;;  %v156_v45 = vld [vmem:[%s4764_s1 + $0x288] sm:$0xff]  ;;  %v159_v48 = vld [vmem:[%s4764_s1 + $0x2a0] sm:$0xff] }
  0x26   :  { %626 = vmatpush.msrb.mxu0 %v123_v6  ;;  %649 = vmatpush.msrb.mxu1 %v127_v7  ;;  %v168_v46 = vld [vmem:[%s4764_s1 + $0x2e8] sm:$0xff]  ;;  %v155_v49 = vld [vmem:[%s4764_s1 + $0x280] sm:$0xff]  ;;  %v31_v50 = vld [vmem:[%s4765_s0 + $0x50] sm:$0xf] }
  0x27   :  { %694 = vmatpush.msrb.mxu3 %v136_v8  ;;  %671 = vmatpush.msrb.mxu2 %v132_v9  ;;  %v164_v47 = vld [vmem:[%s4764_s1 + $0x2c8] sm:$0xff]  ;;  %v32_v51 = vld [vmem:[%s4765_s0 + $0x54] sm:$0xf]  ;;  %v167_v52 = vld [vmem:[%s4764_s1 + $0x2e0] sm:$0xff] }
  0x28   :  { %2590 = vmatmul.msk.f32.vlgmr.msrb.gmra.mxu0 %vm331_vm0, %v23_v10  ;;  %2591 = vmatmul.msk.f32.vlgmr.msrb.gmra.mxu1 %vm331_vm0, %v24_v11  ;;  %v163_v53 = vld [vmem:[%s4764_s1 + $0x2c0] sm:$0xff]  ;;  %v34_v54 = vld [vmem:[%s4765_s0 + $0x5c] sm:$0xf]  ;;  %v33_v55 = vld [vmem:[%s4765_s0 + $0x58] sm:$0xf] }
  0x29   :  { %695 = vmatpush.msrb.mxu3 %v135_v12  ;;  %672 = vmatpush.msrb.mxu2 %v131_v13  ;;  %v174_v56 = vld [vmem:[%s4764_s1 + $0x318] sm:$0xff]  ;;  %v173_v60 = vld [vmem:[%s4764_s1 + $0x310] sm:$0xff]  ;;  %v172_v63 = vld [vmem:[%s4764_s1 + $0x308] sm:$0xff] }
  0x2a   :  { %2592 = vmatmul.msk.f32.vlgmr.msrb.gmra.mxu2 %vm331_vm0, %v25_v14  ;;  %2593 = vmatmul.msk.f32.vlgmr.msrb.gmra.mxu3 %vm331_vm0, %v26_v15  ;;  %v178_v57 = vld [vmem:[%s4764_s1 + $0x338] sm:$0xff]  ;;  %v177_v61 = vld [vmem:[%s4764_s1 + $0x330] sm:$0xff]  ;;  %v176_v0 = vld [vmem:[%s4764_s1 + $0x328] sm:$0xff] }
  0x2b   :  { %738 = vmatpush.msra.mxu1 %v146_v16  ;;  %715 = vmatpush.msra.mxu0 %v142_v17  ;;  %v186_v58 = vld [vmem:[%s4764_s1 + $0x378] sm:$0xff]  ;;  %v185_v62 = vld [vmem:[%s4764_s1 + $0x370] sm:$0xff]  ;;  %v171_v2 = vld [vmem:[%s4764_s1 + $0x300] sm:$0xff] }
  0x2c   :  { %761 = vmatpush.msra.mxu2 %v150_v18  ;;  %784 = vmatpush.msra.mxu3 %v154_v19  ;;  %v182_v59 = vld [vmem:[%s4764_s1 + $0x358] sm:$0xff]  ;;  %v181_v1 = vld [vmem:[%s4764_s1 + $0x350] sm:$0xff]  ;;  %v175_v3 = vld [vmem:[%s4764_s1 + $0x320] sm:$0xff] }
  0x2d   :  { %739 = vmatpush.msra.mxu1 %v145_v20  ;;  %716 = vmatpush.msra.mxu0 %v141_v21  ;;  %v184_v4 = vld [vmem:[%s4764_s1 + $0x368] sm:$0xff]  ;;  %v36_v6 = vld [vmem:[%s4765_s0 + $0x64] sm:$0xf]  ;;  %v35_v8 = vld [vmem:[%s4765_s0 + $0x60] sm:$0xf] }
  0x2e   :  { %762 = vmatpush.msra.mxu2 %v149_v22  ;;  %785 = vmatpush.msra.mxu3 %v153_v23  ;;  %v180_v5 = vld [vmem:[%s4764_s1 + $0x348] sm:$0xff]  ;;  %v183_v7 = vld [vmem:[%s4764_s1 + $0x360] sm:$0xff]  ;;  %v194_v12 = vld [vmem:[%s4764_s1 + $0x3b8] sm:$0xff] }
  0x2f   :  { %740 = vmatpush.msra.mxu1 %v144_v24  ;;  %717 = vmatpush.msra.mxu0 %v140_v25  ;;  %v179_v9 = vld [vmem:[%s4764_s1 + $0x340] sm:$0xff]  ;;  %v37_v10 = vld [vmem:[%s4765_s0 + $0x68] sm:$0xf]  ;;  %v38_v11 = vld [vmem:[%s4765_s0 + $0x6c] sm:$0xf] }
  0x30   :  { %763 = vmatpush.msra.mxu2 %v148_v26  ;;  %786 = vmatpush.msra.mxu3 %v152_v27  ;;  %v193_v13 = vld [vmem:[%s4764_s1 + $0x3b0] sm:$0xff]  ;;  %v192_v14 = vld [vmem:[%s4764_s1 + $0x3a8] sm:$0xff]  ;;  %v190_v15 = vld [vmem:[%s4764_s1 + $0x398] sm:$0xff] }
  0x31   :  { %741 = vmatpush.msra.mxu1 %v143_v28  ;;  %718 = vmatpush.msra.mxu0 %v139_v29  ;;  %v191_v16 = vld [vmem:[%s4764_s1 + $0x3a0] sm:$0xff]  ;;  %v40_v17 = vld [vmem:[%s4765_s0 + $0x74] sm:$0xf]  ;;  %v198_v19 = vld [vmem:[%s4764_s1 + $0x3d8] sm:$0xff] }
  0x32   :  { %2595 = vmatmul.msk.f32.vlgmr.msra.gmra.mxu1 %vm331_vm0, %v28_v30  ;;  %2594 = vmatmul.msk.f32.vlgmr.msra.gmra.mxu0 %vm331_vm0, %v27_v31  ;;  %v189_v18 = vld [vmem:[%s4764_s1 + $0x390] sm:$0xff]  ;;  %v202_v20 = vld [vmem:[%s4764_s1 + $0x3f8] sm:$0xff]  ;;  %v188_v21 = vld [vmem:[%s4764_s1 + $0x388] sm:$0xff] }
  0x33   :  { %764 = vmatpush.msra.mxu2 %v147_v32  ;;  %787 = vmatpush.msra.mxu3 %v151_v33  ;;  %v197_v22 = vld [vmem:[%s4764_s1 + $0x3d0] sm:$0xff]  ;;  %v187_v24 = vld [vmem:[%s4764_s1 + $0x380] sm:$0xff]  ;;  %v196_v25 = vld [vmem:[%s4764_s1 + $0x3c8] sm:$0xff] }
  0x34   :  { %2596 = vmatmul.msk.f32.vlgmr.msra.gmra.mxu2 %vm331_vm0, %v29_v34  ;;  %2597 = vmatmul.msk.f32.vlgmr.msra.gmra.mxu3 %vm331_vm0, %v30_v35  ;;  %v201_v23 = vld [vmem:[%s4764_s1 + $0x3f0] sm:$0xff]  ;;  %v200_v26 = vld [vmem:[%s4764_s1 + $0x3e8] sm:$0xff]  ;;  %v195_v28 = vld [vmem:[%s4764_s1 + $0x3c0] sm:$0xff] }
  0x35   :  { %830 = vmatpush.msrb.mxu1 %v162_v36  ;;  %807 = vmatpush.msrb.mxu0 %v158_v37  ;;  %v39_v27 = vld [vmem:[%s4765_s0 + $0x70] sm:$0xf]  ;;  %v199_v29 = vld [vmem:[%s4764_s1 + $0x3e0] sm:$0xff]  ;;  %v41_v30 = vld [vmem:[%s4765_s0 + $0x78] sm:$0xf] }
  0x36   :  { %876 = vmatpush.msrb.mxu3 %v170_v38  ;;  %853 = vmatpush.msrb.mxu2 %v166_v39  ;;  %v42_v31 = vld [vmem:[%s4765_s0 + $0x7c] sm:$0xf]  ;;  %v209_v38 = vld [vmem:[%s4764_s1 + $0x430] sm:$0xff] }
  0x37   :  { %831 = vmatpush.msrb.mxu1 %v161_v40  ;;  %808 = vmatpush.msrb.mxu0 %v157_v41  ;;  %v210_v32 = vld [vmem:[%s4764_s1 + $0x438] sm:$0xff]  ;;  %v205_v39 = vld [vmem:[%s4764_s1 + $0x410] sm:$0xff]  ;;  %v208_v41 = vld [vmem:[%s4764_s1 + $0x428] sm:$0xff] }
  0x38   :  { %877 = vmatpush.msrb.mxu3 %v169_v42  ;;  %854 = vmatpush.msrb.mxu2 %v165_v43  ;;  %v206_v37 = vld [vmem:[%s4764_s1 + $0x418] sm:$0xff]  ;;  %v204_v42 = vld [vmem:[%s4764_s1 + $0x408] sm:$0xff]  ;;  %v217_v43 = vld [vmem:[%s4764_s1 + $0x470] sm:$0xff] }
  0x39   :  { %832 = vmatpush.msrb.mxu1 %v160_v44  ;;  %809 = vmatpush.msrb.mxu0 %v156_v45  ;;  %v218_v40 = vld [vmem:[%s4764_s1 + $0x478] sm:$0xff]  ;;  %v207_v44 = vld [vmem:[%s4764_s1 + $0x420] sm:$0xff]  ;;  %v216_v45 = vld [vmem:[%s4764_s1 + $0x468] sm:$0xff] }
  0x3a   :  { %878 = vmatpush.msrb.mxu3 %v168_v46  ;;  %855 = vmatpush.msrb.mxu2 %v164_v47  ;;  %v44_v46 = vld [vmem:[%s4765_s0 + $0x84] sm:$0xf] }
  0x3b   :  { %833 = vmatpush.msrb.mxu1 %v159_v48  ;;  %810 = vmatpush.msrb.mxu0 %v155_v49 }
  0x3c   :  { %2598 = vmatmul.msk.f32.vlgmr.msrb.gmra.mxu0 %vm331_vm0, %v31_v50  ;;  %2599 = vmatmul.msk.f32.vlgmr.msrb.gmra.mxu1 %vm331_vm0, %v32_v51  ;;  %v203_v51 = vld [vmem:[%s4764_s1 + $0x400] sm:$0xff] }
  0x3d   :  { %879 = vmatpush.msrb.mxu3 %v167_v52  ;;  %856 = vmatpush.msrb.mxu2 %v163_v53  ;;  %v43_v52 = vld [vmem:[%s4765_s0 + $0x80] sm:$0xf] }
  0x3e   :  { %2601 = vmatmul.msk.f32.vlgmr.msrb.gmra.mxu3 %vm331_vm0, %v34_v54  ;;  %2600 = vmatmul.msk.f32.vlgmr.msrb.gmra.mxu2 %vm331_vm0, %v33_v55  ;;  %v215_v54 = vld [vmem:[%s4764_s1 + $0x460] sm:$0xff]  ;;  %v214_v55 = vld [vmem:[%s4764_s1 + $0x458] sm:$0xff] }
  0x3f   :  { %899 = vmatpush.msra.mxu0 %v174_v56  ;;  %922 = vmatpush.msra.mxu1 %v178_v57  ;;  %v46_v56 = vld [vmem:[%s4765_s0 + $0x8c] sm:$0xf] }
  0x40   :  { %968 = vmatpush.msra.mxu3 %v186_v58  ;;  %945 = vmatpush.msra.mxu2 %v182_v59  ;;  %v213_v58 = vld [vmem:[%s4764_s1 + $0x450] sm:$0xff]  ;;  %v222_v59 = vld [vmem:[%s4764_s1 + $0x498] sm:$0xff] }
  0x41   :  { %900 = vmatpush.msra.mxu0 %v173_v60  ;;  %923 = vmatpush.msra.mxu1 %v177_v61 }
  0x42   :  { %969 = vmatpush.msra.mxu3 %v185_v62  ;;  %946 = vmatpush.msra.mxu2 %v181_v1  ;;  %v212_v62 = vld [vmem:[%s4764_s1 + $0x448] sm:$0xff]  ;;  %v221_v1 = vld [vmem:[%s4764_s1 + $0x490] sm:$0xff] }
  0x43   :  { %901 = vmatpush.msra.mxu0 %v172_v63  ;;  %924 = vmatpush.msra.mxu1 %v176_v0  ;;  %v211_v63 = vld [vmem:[%s4764_s1 + $0x440] sm:$0xff]  ;;  %v45_v0 = vld [vmem:[%s4765_s0 + $0x88] sm:$0xf] }
  0x44   :  { %970 = vmatpush.msra.mxu3 %v184_v4  ;;  %947 = vmatpush.msra.mxu2 %v180_v5  ;;  %v220_v4 = vld [vmem:[%s4764_s1 + $0x488] sm:$0xff]  ;;  %v229_v5 = vld [vmem:[%s4764_s1 + $0x4d0] sm:$0xff] }
  0x45   :  { %902 = vmatpush.msra.mxu0 %v171_v2  ;;  %925 = vmatpush.msra.mxu1 %v175_v3  ;;  %v230_v2 = vld [vmem:[%s4764_s1 + $0x4d8] sm:$0xff] }
  0x46   :  { %2603 = vmatmul.msk.f32.vlgmr.msra.gmra.mxu1 %vm331_vm0, %v36_v6  ;;  %2602 = vmatmul.msk.f32.vlgmr.msra.gmra.mxu0 %vm331_vm0, %v35_v8  ;;  %v234_v3 = vld [vmem:[%s4764_s1 + $0x4f8] sm:$0xff]  ;;  %v233_v6 = vld [vmem:[%s4764_s1 + $0x4f0] sm:$0xff]  ;;  %v228_v8 = vld [vmem:[%s4764_s1 + $0x4c8] sm:$0xff] }
  0x47   :  { %971 = vmatpush.msra.mxu3 %v183_v7  ;;  %948 = vmatpush.msra.mxu2 %v179_v9  ;;  %v219_v7 = vld [vmem:[%s4764_s1 + $0x480] sm:$0xff]  ;;  %v232_v9 = vld [vmem:[%s4764_s1 + $0x4e8] sm:$0xff] }
  0x48   :  { %2605 = vmatmul.msk.f32.vlgmr.msra.gmra.mxu3 %vm331_vm0, %v38_v11  ;;  %2604 = vmatmul.msk.f32.vlgmr.msra.gmra.mxu2 %vm331_vm0, %v37_v10  ;;  %v226_v10 = vld [vmem:[%s4764_s1 + $0x4b8] sm:$0xff]  ;;  %v47_v11 = vld [vmem:[%s4765_s0 + $0x90] sm:$0xf] }
  0x49   :  { %1014 = vmatpush.msrb.mxu1 %v194_v12  ;;  %991 = vmatpush.msrb.mxu0 %v190_v15  ;;  %v227_v12 = vld [vmem:[%s4764_s1 + $0x4c0] sm:$0xff]  ;;  %v225_v15 = vld [vmem:[%s4764_s1 + $0x4b0] sm:$0xff] }
  0x4a   :  { %1037 = vmatpush.msrb.mxu2 %v198_v19  ;;  %1060 = vmatpush.msrb.mxu3 %v202_v20  ;;  %v246_v19 = vld [vmem:[%s4764_s1 + $0x558] sm:$0xff]  ;;  %v224_v20 = vld [vmem:[%s4764_s1 + $0x4a8] sm:$0xff] }
  0x4b   :  { %1015 = vmatpush.msrb.mxu1 %v193_v13  ;;  %992 = vmatpush.msrb.mxu0 %v189_v18  ;;  %v231_v13 = vld [vmem:[%s4764_s1 + $0x4e0] sm:$0xff] }
  0x4c   :  { %1038 = vmatpush.msrb.mxu2 %v197_v22  ;;  %1061 = vmatpush.msrb.mxu3 %v201_v23  ;;  %v223_v23 = vld [vmem:[%s4764_s1 + $0x4a0] sm:$0xff] }
  0x4d   :  { %1016 = vmatpush.msrb.mxu1 %v192_v14  ;;  %993 = vmatpush.msrb.mxu0 %v188_v21  ;;  %v245_v21 = vld [vmem:[%s4764_s1 + $0x550] sm:$0xff] }
  0x4e   :  { %1039 = vmatpush.msrb.mxu2 %v196_v25  ;;  %1062 = vmatpush.msrb.mxu3 %v200_v26  ;;  %v244_v26 = vld [vmem:[%s4764_s1 + $0x548] sm:$0xff] }
  0x4f   :  { %1017 = vmatpush.msrb.mxu1 %v191_v16  ;;  %994 = vmatpush.msrb.mxu0 %v187_v24  ;;  %v49_v16 = vld [vmem:[%s4765_s0 + $0x98] sm:$0xf] }
  0x50   :  { %2607 = vmatmul.msk.f32.vlgmr.msrb.gmra.mxu1 %vm331_vm0, %v40_v17  ;;  %2606 = vmatmul.msk.f32.vlgmr.msrb.gmra.mxu0 %vm331_vm0, %v39_v27  ;;  %v50_v17 = vld [vmem:[%s4765_s0 + $0x9c] sm:$0xf]  ;;  %v48_v27 = vld [vmem:[%s4765_s0 + $0x94] sm:$0xf] }
  0x51   :  { %1040 = vmatpush.msrb.mxu2 %v195_v28  ;;  %1063 = vmatpush.msrb.mxu3 %v199_v29  ;;  %v238_v24 = vld [vmem:[%s4764_s1 + $0x518] sm:$0xff]  ;;  %v243_v29 = vld [vmem:[%s4764_s1 + $0x540] sm:$0xff] }
  0x52   :  { %2608 = vmatmul.msk.f32.vlgmr.msrb.gmra.mxu2 %vm331_vm0, %v41_v30  ;;  %2609 = vmatmul.msk.f32.vlgmr.msrb.gmra.mxu3 %vm331_vm0, %v42_v31  ;;  %v242_v28 = vld [vmem:[%s4764_s1 + $0x538] sm:$0xff]  ;;  %v237_v31 = vld [vmem:[%s4764_s1 + $0x510] sm:$0xff] }
  0x53   :  { %1106 = vmatpush.msra.mxu1 %v210_v32  ;;  %1083 = vmatpush.msra.mxu0 %v206_v37  ;;  %v53_v32 = vld [vmem:[%s4765_s0 + $0xa8] sm:$0xf]  ;;  %v250_v37 = vld [vmem:[%s4764_s1 + $0x578] sm:$0xff] }
  0x54   :  { %1152 = vmatpush.msra.mxu3 %v218_v40  ;;  %1129 = vmatpush.msra.mxu2 %v214_v55  ;;  %v54_v55 = vld [vmem:[%s4765_s0 + $0xac] sm:$0xf] }
  0x55   :  { %1107 = vmatpush.msra.mxu1 %v209_v38  ;;  %1084 = vmatpush.msra.mxu0 %v205_v39  ;;  %v236_v38 = vld [vmem:[%s4764_s1 + $0x508] sm:$0xff]  ;;  %v249_v39 = vld [vmem:[%s4764_s1 + $0x570] sm:$0xff] }
  0x56   :  { %1153 = vmatpush.msra.mxu3 %v217_v43  ;;  %1130 = vmatpush.msra.mxu2 %v213_v58  ;;  %v257_v58 = vld [vmem:[%s4764_s1 + $0x5b0] sm:$0xff] }
  0x57   :  { %1108 = vmatpush.msra.mxu1 %v208_v41  ;;  %1085 = vmatpush.msra.mxu0 %v204_v42  ;;  %v240_v41 = vld [vmem:[%s4764_s1 + $0x528] sm:$0xff]  ;;  %v235_v42 = vld [vmem:[%s4764_s1 + $0x500] sm:$0xff] }
  0x58   :  { %1154 = vmatpush.msra.mxu3 %v216_v45  ;;  %1131 = vmatpush.msra.mxu2 %v212_v62  ;;  %v248_v45 = vld [vmem:[%s4764_s1 + $0x568] sm:$0xff] }
  0x59   :  { %1109 = vmatpush.msra.mxu1 %v207_v44  ;;  %1086 = vmatpush.msra.mxu0 %v203_v51  ;;  %v239_v44 = vld [vmem:[%s4764_s1 + $0x520] sm:$0xff]  ;;  %v252_v62 = vld [vmem:[%s4764_s1 + $0x588] sm:$0xff] }
  0x5a   :  { %2611 = vmatmul.msk.f32.vlgmr.msra.gmra.mxu1 %vm331_vm0, %v44_v46  ;;  %2610 = vmatmul.msk.f32.vlgmr.msra.gmra.mxu0 %vm331_vm0, %v43_v52  ;;  %v51_v46 = vld [vmem:[%s4765_s0 + $0xa0] sm:$0xf] }
  0x5b   :  { %1155 = vmatpush.msra.mxu3 %v215_v54  ;;  %1175 = vmatpush.msrb.mxu0 %v222_v59  ;;  %v247_v52 = vld [vmem:[%s4764_s1 + $0x560] sm:$0xff]  ;;  %v258_v54 = vld [vmem:[%s4764_s1 + $0x5b8] sm:$0xff] }
  0x5c   :  { %2613 = vmatmul.msk.f32.vlgmr.msra.gmra.mxu3 %vm331_vm0, %v46_v56  ;;  %1132 = vmatpush.msra.mxu2 %v211_v63  ;;  %v253_v56 = vld [vmem:[%s4764_s1 + $0x590] sm:$0xff]  ;;  %v262_v59 = vld [vmem:[%s4764_s1 + $0x5d8] sm:$0xff]  ;;  %v256_v63 = vld [vmem:[%s4764_s1 + $0x5a8] sm:$0xff] }
  0x5d   :  { %2612 = vmatmul.msk.f32.vlgmr.msra.gmra.mxu2 %vm331_vm0, %v45_v0  ;;  %1176 = vmatpush.msrb.mxu0 %v221_v1  ;;  %v261_v0 = vld [vmem:[%s4764_s1 + $0x5d0] sm:$0xff] }
  0x5e   :  { %1221 = vmatpush.msrb.mxu2 %v230_v2  ;;  %1244 = vmatpush.msrb.mxu3 %v234_v3  ;;  %v265_v1 = vld [vmem:[%s4764_s1 + $0x5f0] sm:$0xff]  ;;  %v251_v2 = vld [vmem:[%s4764_s1 + $0x580] sm:$0xff] }
  0x5f   :  { %1177 = vmatpush.msrb.mxu0 %v220_v4  ;;  %1198 = vmatpush.msrb.mxu1 %v226_v10  ;;  %v255_v3 = vld [vmem:[%s4764_s1 + $0x5a0] sm:$0xff] }
  0x60   :  { %1222 = vmatpush.msrb.mxu2 %v229_v5  ;;  %1245 = vmatpush.msrb.mxu3 %v233_v6  ;;  %v260_v5 = vld [vmem:[%s4764_s1 + $0x5c8] sm:$0xff]  ;;  %v263_v10 = vld [vmem:[%s4764_s1 + $0x5e0] sm:$0xff] }
  0x61   :  { %1178 = vmatpush.msrb.mxu0 %v219_v7  ;;  %1199 = vmatpush.msrb.mxu1 %v225_v15  ;;  %v264_v6 = vld [vmem:[%s4764_s1 + $0x5e8] sm:$0xff]  ;;  %v55_v7 = vld [vmem:[%s4765_s0 + $0xb0] sm:$0xf]  ;;  %v58_v15 = vld [vmem:[%s4765_s0 + $0xbc] sm:$0xf] }
  0x62   :  { %1223 = vmatpush.msrb.mxu2 %v228_v8  ;;  %1246 = vmatpush.msrb.mxu3 %v232_v9  ;;  %v56_v8 = vld [vmem:[%s4765_s0 + $0xb4] sm:$0xf]  ;;  %v259_v9 = vld [vmem:[%s4764_s1 + $0x5c0] sm:$0xff] }
  0x63   :  { %2614 = vmatmul.msk.f32.vlgmr.msrb.gmra.mxu0 %vm331_vm0, %v47_v11  ;;  %1200 = vmatpush.msrb.mxu1 %v224_v20  ;;  %v274_v20 = vld [vmem:[%s4764_s1 + $0x638] sm:$0xff] }
  0x64   :  { %1224 = vmatpush.msrb.mxu2 %v227_v12  ;;  %1247 = vmatpush.msrb.mxu3 %v231_v13  ;;  %v270_v12 = vld [vmem:[%s4764_s1 + $0x618] sm:$0xff] }
  0x65   :  { %2616 = vmatmul.msk.f32.vlgmr.msrb.gmra.mxu2 %vm331_vm0, %v49_v16  ;;  %2617 = vmatmul.msk.f32.vlgmr.msrb.gmra.mxu3 %vm331_vm0, %v50_v17  ;;  %v57_v13 = vld [vmem:[%s4765_s0 + $0xb8] sm:$0xf]  ;;  %v269_v16 = vld [vmem:[%s4764_s1 + $0x610] sm:$0xff] }
  0x66   :  { %1313 = vmatpush.msra.mxu2 %v246_v19  ;;  %1267 = vmatpush.msra.mxu0 %v238_v24  ;;  %v278_v17 = vld [vmem:[%s4764_s1 + $0x658] sm:$0xff] }
  0x67   :  { %1201 = vmatpush.msrb.mxu1 %v223_v23  ;;  %1336 = vmatpush.msra.mxu3 %v250_v37  ;;  %v282_v19 = vld [vmem:[%s4764_s1 + $0x678] sm:$0xff]  ;;  %v277_v23 = vld [vmem:[%s4764_s1 + $0x650] sm:$0xff]  ;;  %v275_v37 = vld [vmem:[%s4764_s1 + $0x640] sm:$0xff] }
  0x68   :  { %1314 = vmatpush.msra.mxu2 %v245_v21  ;;  %2615 = vmatmul.msk.f32.vlgmr.msrb.gmra.mxu1 %vm331_vm0, %v48_v27  ;;  %v267_v27 = vld [vmem:[%s4764_s1 + $0x600] sm:$0xff] }
  0x69   :  { %1268 = vmatpush.msra.mxu0 %v237_v31  ;;  %1290 = vmatpush.msra.mxu1 %v242_v28  ;;  %v276_v28 = vld [vmem:[%s4764_s1 + $0x648] sm:$0xff] }
  0x6a   :  { %1315 = vmatpush.msra.mxu2 %v244_v26  ;;  %1337 = vmatpush.msra.mxu3 %v249_v39  ;;  %v273_v26 = vld [vmem:[%s4764_s1 + $0x630] sm:$0xff]  ;;  %v280_v31 = vld [vmem:[%s4764_s1 + $0x668] sm:$0xff] }
  0x6b   :  { %1269 = vmatpush.msra.mxu0 %v236_v38  ;;  %v279_v38 = vld [vmem:[%s4764_s1 + $0x660] sm:$0xff]  ;;  %v61_v39 = vld [vmem:[%s4765_s0 + $0xc8] sm:$0xf] }
  0x6c   :  { %1316 = vmatpush.msra.mxu2 %v243_v29  ;;  %1338 = vmatpush.msra.mxu3 %v248_v45 }
  0x6d   :  { %2620 = vmatmul.msk.f32.vlgmr.msra.gmra.mxu2 %vm331_vm0, %v53_v32  ;;  %1270 = vmatpush.msra.mxu0 %v235_v42  ;;  %v59_v32 = vld [vmem:[%s4765_s0 + $0xc0] sm:$0xf] }
  0x6e   :  { %2618 = vmatmul.msk.f32.vlgmr.msra.gmra.mxu0 %vm331_vm0, %v51_v46  ;;  %1339 = vmatpush.msra.mxu3 %v247_v52  ;;  %v293_v46 = vld [vmem:[%s4764_s1 + $0x6d0] sm:$0xff] }
  0x6f   :  { %2621 = vmatmul.msk.f32.vlgmr.msra.gmra.mxu3 %vm331_vm0, %v54_v55  ;;  %1405 = vmatpush.msrb.mxu2 %v262_v59  ;;  %v285_v52 = vld [vmem:[%s4764_s1 + $0x690] sm:$0xff]  ;;  %v292_v55 = vld [vmem:[%s4764_s1 + $0x6c8] sm:$0xff]  ;;  %v290_v59 = vld [vmem:[%s4764_s1 + $0x6b8] sm:$0xff] }
  0x71   :  { %1406 = vmatpush.msrb.mxu2 %v261_v0 }
  0x73   :  { %1407 = vmatpush.msrb.mxu2 %v260_v5  ;;  %v63_v5 = vld [vmem:[%s4765_s0 + $0xd0] sm:$0xf] }
  0x75   :  { %1408 = vmatpush.msrb.mxu2 %v259_v9  ;;  %v287_v9 = vld [vmem:[%s4764_s1 + $0x6a0] sm:$0xff] }
  0x76   :  { %2624 = vmatmul.msk.f32.vlgmr.msrb.gmra.mxu2 %vm331_vm0, %v57_v13  ;;  %v306_v13 = vld [vmem:[%s4764_s1 + $0x738] sm:$0xff] }
  0x77   :  { %1497 = vmatpush.msra.mxu2 %v278_v17 }
  0x79   :  { %1498 = vmatpush.msra.mxu2 %v277_v23  ;;  %v309_v23 = vld [vmem:[%s4764_s1 + $0x750] sm:$0xff] }
  0x7b   :  { %1499 = vmatpush.msra.mxu2 %v276_v28  ;;  %v299_v28 = vld [vmem:[%s4764_s1 + $0x700] sm:$0xff] }
  0x7d   :  { %1500 = vmatpush.msra.mxu2 %v275_v37  ;;  %v68_v37 = vld [vmem:[%s4765_s0 + $0xe4] sm:$0xf] }
  0x7e   :  { %2628 = vmatmul.msk.f32.vlgmr.msra.gmra.mxu2 %vm331_vm0, %v61_v39 }
  0x86   :  { %v3176_v33 = vpop.f32.mrf.mxu0 }
  0x87   :  { %v3178_v34 = vpop.f32.mrf.mxu1  ;;  %v1868_v36 = vrot.slane %v3176_v33, 2 }
  0x88   :  { %v1869_v35 = vrot.slane %v3178_v34, 2 }
  0x89   :  { %2253 = vrot.lane.b32.xlu1 %v1868_v36, %s2644_s23  ;;  %1932 = vrot.lane.b32.xlu0 %v1868_v36, %s2645_s24  ;;  %v241_v36 = vld [vmem:[%s4764_s1 + $0x530] sm:$0xff] }
  0x8a   :  { %2255 = vrot.lane.b32.xlu2 %v1869_v35, %s2644_s23  ;;  %1291 = vmatpush.msra.mxu1 %v241_v36 }
  0x8c   :  { %1292 = vmatpush.msra.mxu1 %v240_v41  ;;  %v294_v41 = vld [vmem:[%s4764_s1 + $0x6d8] sm:$0xff] }
  0x8d   :  { %1589 = vmatpush.msrb.mxu2 %v294_v41  ;;  %v318_v41 = vld [vmem:[%s4764_s1 + $0x798] sm:$0xff] }
  0x8e   :  { %v3215_v47 = vpop.f32.mrf.mxu2  ;;  %1293 = vmatpush.msra.mxu1 %v239_v44  ;;  %v286_v44 = vld [vmem:[%s4764_s1 + $0x698] sm:$0xff] }
  0x8f   :  { %v3217_v48 = vpop.f32.mrf.mxu0  ;;  %v1870_v49 = vrot.slane %v3215_v47, 2  ;;  %1590 = vmatpush.msrb.mxu2 %v293_v46  ;;  %v69_v46 = vld [vmem:[%s4765_s0 + $0xe8] sm:$0xf] }
  0x90   :  { %v1872_v50 = vrot.slane %v3217_v48, 2  ;;  %1382 = vmatpush.msrb.mxu1 %v258_v54 }
  0x91   :  { %1936 = vrot.lane.b32.xlu1 %v1870_v49, %s2645_s24  ;;  %1934 = vrot.lane.b32.xlu0 %v1869_v35, %s2645_s24  ;;  %v3231_v53 = vpop.f32.mrf.mxu1 }
  0x92   :  { %1940 = vrot.lane.b32.xlu2 %v1872_v50, %s2645_s24  ;;  %v1873_v61 = vrot.slane %v3231_v53, 2  ;;  %1383 = vmatpush.msrb.mxu1 %v257_v58 }
  0x93   :  { %v3242_v57 = vpop.f32.mrf.mxu3  ;;  %1591 = vmatpush.msrb.mxu2 %v292_v55  ;;  %v326_v55 = vld [vmem:[%s4764_s1 + $0x7d8] sm:$0xff] }
  0x94   :  { %v1871_v60 = vrot.slane %v3242_v57, 2  ;;  %1384 = vmatpush.msrb.mxu1 %v256_v63  ;;  %v65_v63 = vld [vmem:[%s4765_s0 + $0xd8] sm:$0xf] }
  0x96   :  { %1385 = vmatpush.msrb.mxu1 %v255_v3  ;;  %v288_v3 = vld [vmem:[%s4764_s1 + $0x6a8] sm:$0xff] }
  0x99   :  { %1938 = vrot.lane.b32.xlu1 %v1871_v60, %s2645_s24  ;;  %2257 = vrot.lane.b32.xlu0 %v1870_v49, %s2644_s23  ;;  %v3321_v18 = vpop.f32.mrf.mxu2  ;;  %v52_v49 = vld [vmem:[%s4765_s0 + $0xa4] sm:$0xf] }
  0x9a   :  { %1942 = vrot.lane.b32.xlu2 %v1873_v61, %s2645_s24  ;;  %v1874_v25 = vrot.slane %v3321_v18, 2  ;;  %v3357_v30 = vpop.f32.mrf.mxu0  ;;  %v3365_v35 = vpop.f32.mrf.mxu1  ;;  %2619 = vmatmul.msk.f32.vlgmr.msra.gmra.mxu1 %vm331_vm0, %v52_v49  ;;  %v298_v49 = vld [vmem:[%s4764_s1 + $0x6f8] sm:$0xff] }
  0x9b   :  { %v1876_v40 = vrot.slane %v3357_v30, 2  ;;  %v1877_v43 = vrot.slane %v3365_v35, 2  ;;  %1474 = vmatpush.msra.mxu1 %v274_v20  ;;  %v314_v20 = vld [vmem:[%s4764_s1 + $0x778] sm:$0xff] }
  0x9c   :  { %v3309_v14 = vpop.f32.mrf.mxu3 }
  0x9d   :  { %v1875_v22 = vrot.slane %v3309_v14, 2  ;;  %1475 = vmatpush.msra.mxu1 %v273_v26  ;;  %v313_v26 = vld [vmem:[%s4764_s1 + $0x770] sm:$0xff] }
  0xa1   :  { %2259 = vrot.lane.b32.xlu1 %v1871_v60, %s2644_s23  ;;  %2263 = vrot.lane.b32.xlu0 %v1873_v61, %s2644_s23  ;;  %v266_v61 = vld [vmem:[%s4764_s1 + $0x5f8] sm:$0xff] }
  0xa2   :  { %2261 = vrot.lane.b32.xlu2 %v1872_v50, %s2644_s23  ;;  %v254_v50 = vld [vmem:[%s4764_s1 + $0x598] sm:$0xff]  ;;  %1428 = vmatpush.msrb.mxu3 %v266_v61  ;;  %v284_v61 = vld [vmem:[%s4764_s1 + $0x688] sm:$0xff] }
  0xa3   :  { %1359 = vmatpush.msrb.mxu0 %v254_v50  ;;  %2623 = vmatmul.msk.f32.vlgmr.msrb.gmra.mxu1 %vm331_vm0, %v56_v8  ;;  %v271_v50 = vld [vmem:[%s4764_s1 + $0x620] sm:$0xff] }
  0xa4   :  { %v3407_v51 = vpop.f32.mrf.mxu3  ;;  %v3455_v4 = vpop.f32.mrf.mxu2  ;;  %1429 = vmatpush.msrb.mxu3 %v265_v1  ;;  %v297_v1 = vld [vmem:[%s4764_s1 + $0x6f0] sm:$0xff] }
  0xa5   :  { %v1879_v60 = vrot.slane %v3407_v51, 2  ;;  %1360 = vmatpush.msrb.mxu0 %v253_v56  ;;  %v1878_v11 = vrot.slane %v3455_v4, 2  ;;  %v3503_v21 = vpop.f32.mrf.mxu1  ;;  %v3512_v24 = vpop.f32.mrf.mxu0  ;;  %v60_v56 = vld [vmem:[%s4765_s0 + $0xc4] sm:$0xf] }
  0xa6   :  { %1430 = vmatpush.msrb.mxu3 %v264_v6  ;;  %v1881_v29 = vrot.slane %v3503_v21, 2  ;;  %v1880_v36 = vrot.slane %v3512_v24, 2  ;;  %v296_v6 = vld [vmem:[%s4764_s1 + $0x6e8] sm:$0xff] }
  0xa7   :  { %1361 = vmatpush.msrb.mxu0 %v252_v62  ;;  %v289_v62 = vld [vmem:[%s4764_s1 + $0x6b0] sm:$0xff] }
  0xa8   :  { %1431 = vmatpush.msrb.mxu3 %v263_v10  ;;  %v310_v10 = vld [vmem:[%s4764_s1 + $0x758] sm:$0xff] }
  0xa9   :  { %1946 = vrot.lane.b32.xlu1 %v1875_v22, %s2645_s24  ;;  %1944 = vrot.lane.b32.xlu0 %v1874_v25, %s2645_s24 }
  0xaa   :  { %2267 = vrot.lane.b32.xlu2 %v1875_v22, %s2644_s23  ;;  %1362 = vmatpush.msrb.mxu0 %v251_v2  ;;  %v268_v22 = vld [vmem:[%s4764_s1 + $0x608] sm:$0xff]  ;;  %v283_v2 = vld [vmem:[%s4764_s1 + $0x680] sm:$0xff] }
  0xab   :  { %2622 = vmatmul.msk.f32.vlgmr.msrb.gmra.mxu0 %vm331_vm0, %v55_v7  ;;  %2625 = vmatmul.msk.f32.vlgmr.msrb.gmra.mxu3 %vm331_vm0, %v58_v15  ;;  %v302_v7 = vld [vmem:[%s4764_s1 + $0x718] sm:$0xff] }
  0xac   :  { %1451 = vmatpush.msra.mxu0 %v270_v12  ;;  %1520 = vmatpush.msra.mxu3 %v282_v19  ;;  %v295_v12 = vld [vmem:[%s4764_s1 + $0x6e0] sm:$0xff]  ;;  %v66_v15 = vld [vmem:[%s4765_s0 + $0xdc] sm:$0xf]  ;;  %v305_v19 = vld [vmem:[%s4764_s1 + $0x730] sm:$0xff] }
  0xad   :  { %v3553_v42 = vpop.f32.mrf.mxu2  ;;  %v3561_v45 = vpop.f32.mrf.mxu3 }
  0xae   :  { %1452 = vmatpush.msra.mxu0 %v269_v16  ;;  %v1882_v54 = vrot.slane %v3553_v42, 2  ;;  %v1883_v58 = vrot.slane %v3561_v45, 2  ;;  %v301_v16 = vld [vmem:[%s4764_s1 + $0x710] sm:$0xff] }
  0xaf   :  { %v3604_v0 = vpop.f32.mrf.mxu1  ;;  %v3651_v17 = vpop.f32.mrf.mxu0 }
  0xb0   :  { %1453 = vmatpush.msra.mxu0 %v268_v22  ;;  %v1885_v8 = vrot.slane %v3604_v0, 2  ;;  %v300_v22 = vld [vmem:[%s4764_s1 + $0x708] sm:$0xff] }
  0xb1   :  { %2265 = vrot.lane.b32.xlu1 %v1874_v25, %s2644_s23  ;;  %1950 = vrot.lane.b32.xlu0 %v1877_v43, %s2645_s24  ;;  %v281_v25 = vld [vmem:[%s4764_s1 + $0x670] sm:$0xff] }
  0xb2   :  { %1948 = vrot.lane.b32.xlu2 %v1876_v40, %s2645_s24  ;;  %1521 = vmatpush.msra.mxu3 %v281_v25  ;;  %v304_v25 = vld [vmem:[%s4764_s1 + $0x728] sm:$0xff] }
  0xb3   :  { %1454 = vmatpush.msra.mxu0 %v267_v27  ;;  %v1884_v27 = vrot.slane %v3651_v17, 2 }
  0xb4   :  { %1522 = vmatpush.msra.mxu3 %v280_v31  ;;  %2626 = vmatmul.msk.f32.vlgmr.msra.gmra.mxu0 %vm331_vm0, %v59_v32  ;;  %v303_v31 = vld [vmem:[%s4764_s1 + $0x720] sm:$0xff]  ;;  %v312_v32 = vld [vmem:[%s4764_s1 + $0x768] sm:$0xff] }
  0xb5   :  { %1543 = vmatpush.msrb.mxu0 %v286_v44 }
  0xb6   :  { %1523 = vmatpush.msra.mxu3 %v279_v38  ;;  %v307_v38 = vld [vmem:[%s4764_s1 + $0x740] sm:$0xff] }
  0xb7   :  { %1544 = vmatpush.msrb.mxu0 %v285_v52  ;;  %v3698_v39 = vpop.f32.mrf.mxu3  ;;  %v3708_v44 = vpop.f32.mrf.mxu2  ;;  %v330_v52 = vld [vmem:[%s4764_s1 + $0x7f8] sm:$0xff] }
  0xb8   :  { %1612 = vmatpush.msrb.mxu3 %v298_v49  ;;  %v70_v49 = vld [vmem:[%s4765_s0 + $0xec] sm:$0xf] }
  0xb9   :  { %2271 = vrot.lane.b32.xlu1 %v1877_v43, %s2644_s23  ;;  %2269 = vrot.lane.b32.xlu0 %v1876_v40, %s2644_s23  ;;  %v62_v40 = vld [vmem:[%s4765_s0 + $0xcc] sm:$0xf] }
  0xba   :  { %1954 = vrot.lane.b32.xlu2 %v1879_v60, %s2645_s24  ;;  %v272_v43 = vld [vmem:[%s4764_s1 + $0x628] sm:$0xff]  ;;  %2629 = vmatmul.msk.f32.vlgmr.msra.gmra.mxu3 %vm331_vm0, %v62_v40  ;;  %v311_v40 = vld [vmem:[%s4764_s1 + $0x760] sm:$0xff] }
  0xbb   :  { %1476 = vmatpush.msra.mxu1 %v272_v43  ;;  %1545 = vmatpush.msrb.mxu0 %v284_v61  ;;  %v325_v61 = vld [vmem:[%s4764_s1 + $0x7d0] sm:$0xff] }
  0xbc   :  { %1613 = vmatpush.msrb.mxu3 %v297_v1  ;;  %v3752_v1 = vpop.f32.mrf.mxu0 }
  0xbd   :  { %1477 = vmatpush.msra.mxu1 %v271_v50  ;;  %1546 = vmatpush.msrb.mxu0 %v283_v2  ;;  %v317_v50 = vld [vmem:[%s4764_s1 + $0x790] sm:$0xff]  ;;  %v328_v2 = vld [vmem:[%s4764_s1 + $0x7e8] sm:$0xff] }
  0xbe   :  { %2627 = vmatmul.msk.f32.vlgmr.msra.gmra.mxu1 %vm331_vm0, %v60_v56  ;;  %2630 = vmatmul.msk.f32.vlgmr.msrb.gmra.mxu0 %vm331_vm0, %v63_v5  ;;  %v322_v56 = vld [vmem:[%s4764_s1 + $0x7b8] sm:$0xff] }
  0xbf   :  { %1566 = vmatpush.msrb.mxu1 %v290_v59  ;;  %1614 = vmatpush.msrb.mxu3 %v296_v6  ;;  %v316_v59 = vld [vmem:[%s4764_s1 + $0x788] sm:$0xff]  ;;  %v3760_v6 = vpop.f32.mrf.mxu1 }
  0xc0   :  { %1635 = vmatpush.msra.mxu0 %v302_v7  ;;  %v71_v7 = vld [vmem:[%s4765_s0 + $0xf0] sm:$0xf] }
  0xc1   :  { %1952 = vrot.lane.b32.xlu1 %v1878_v11, %s2645_s24  ;;  %2275 = vrot.lane.b32.xlu0 %v1879_v60, %s2644_s23  ;;  %v291_v60 = vld [vmem:[%s4764_s1 + $0x6c0] sm:$0xff] }
  0xc2   :  { %2273 = vrot.lane.b32.xlu2 %v1878_v11, %s2644_s23  ;;  %1592 = vmatpush.msrb.mxu2 %v291_v60  ;;  %v64_v11 = vld [vmem:[%s4765_s0 + $0xd4] sm:$0xf] }
  0xc3   :  { %1567 = vmatpush.msrb.mxu1 %v289_v62  ;;  %2632 = vmatmul.msk.f32.vlgmr.msrb.gmra.mxu2 %vm331_vm0, %v65_v63  ;;  %v329_v60 = vld [vmem:[%s4764_s1 + $0x7f0] sm:$0xff]  ;;  %v315_v62 = vld [vmem:[%s4764_s1 + $0x780] sm:$0xff] }
  0xc4   :  { %1681 = vmatpush.msra.mxu2 %v310_v10  ;;  %1615 = vmatpush.msrb.mxu3 %v295_v12  ;;  %v321_v63 = vld [vmem:[%s4764_s1 + $0x7b0] sm:$0xff]  ;;  %v327_v10 = vld [vmem:[%s4764_s1 + $0x7e0] sm:$0xff]  ;;  %v1888_v12 = vrot.slane %v3752_v1, 2 }
  0xc5   :  { %1568 = vmatpush.msrb.mxu1 %v288_v3  ;;  %2633 = vmatmul.msk.f32.vlgmr.msrb.gmra.mxu3 %vm331_vm0, %v66_v15  ;;  %v324_v3 = vld [vmem:[%s4764_s1 + $0x7c8] sm:$0xff]  ;;  %v74_v15 = vld [vmem:[%s4765_s0 + $0xfc] sm:$0xf] }
  0xc6   :  { %1636 = vmatpush.msra.mxu0 %v301_v16  ;;  %1704 = vmatpush.msra.mxu3 %v314_v20  ;;  %v1889_v16 = vrot.slane %v3760_v6, 2  ;;  %v72_v20 = vld [vmem:[%s4765_s0 + $0xf4] sm:$0xf] }
  0xc7   :  { %1569 = vmatpush.msrb.mxu1 %v287_v9  ;;  %1682 = vmatpush.msra.mxu2 %v309_v23 }
  0xc8   :  { %2631 = vmatmul.msk.f32.vlgmr.msrb.gmra.mxu1 %vm331_vm0, %v64_v11  ;;  %1637 = vmatpush.msra.mxu0 %v300_v22  ;;  %v323_v11 = vld [vmem:[%s4764_s1 + $0x7c0] sm:$0xff]  ;;  %v3799_v22 = vpop.f32.mrf.mxu3 }
  0xc9   :  { %1958 = vrot.lane.b32.xlu1 %v1881_v29, %s2645_s24  ;;  %1956 = vrot.lane.b32.xlu0 %v1880_v36, %s2645_s24 }
  0xca   :  { %2279 = vrot.lane.b32.xlu2 %v1881_v29, %s2644_s23  ;;  %1658 = vmatpush.msra.mxu1 %v306_v13  ;;  %v308_v29 = vld [vmem:[%s4764_s1 + $0x748] sm:$0xff]  ;;  %v73_v13 = vld [vmem:[%s4765_s0 + $0xf8] sm:$0xf] }
  0xcb   :  { %1705 = vmatpush.msra.mxu3 %v313_v26  ;;  %1638 = vmatpush.msra.mxu0 %v299_v28  ;;  %v1891_v26 = vrot.slane %v3799_v22, 2 }
  0xcc   :  { %1659 = vmatpush.msra.mxu1 %v305_v19  ;;  %1683 = vmatpush.msra.mxu2 %v308_v29  ;;  %v319_v19 = vld [vmem:[%s4764_s1 + $0x7a0] sm:$0xff] }
  0xcd   :  { %1706 = vmatpush.msra.mxu3 %v312_v32  ;;  %1727 = vmatpush.msrb.mxu0 %v318_v41 }
  0xce   :  { %1660 = vmatpush.msra.mxu1 %v304_v25  ;;  %1684 = vmatpush.msra.mxu2 %v307_v38 }
  0xcf   :  { %1707 = vmatpush.msra.mxu3 %v311_v40  ;;  %2636 = vmatmul.msk.f32.vlgmr.msra.gmra.mxu2 %vm331_vm0, %v69_v46 }
  0xd0   :  { %1661 = vmatpush.msra.mxu1 %v303_v31  ;;  %2637 = vmatmul.msk.f32.vlgmr.msra.gmra.mxu3 %vm331_vm0, %v70_v49 }
  0xd1   :  { %2277 = vrot.lane.b32.xlu1 %v1880_v36, %s2644_s23  ;;  %1962 = vrot.lane.b32.xlu0 %v1883_v58, %s2645_s24  ;;  %v67_v36 = vld [vmem:[%s4765_s0 + $0xe0] sm:$0xf] }
  0xd2   :  { %1960 = vrot.lane.b32.xlu2 %v1882_v54, %s2645_s24  ;;  %2634 = vmatmul.msk.f32.vlgmr.msra.gmra.mxu0 %vm331_vm0, %v67_v36 }
  0xd3   :  { %2635 = vmatmul.msk.f32.vlgmr.msra.gmra.mxu1 %vm331_vm0, %v68_v37  ;;  %1728 = vmatpush.msrb.mxu0 %v317_v50 }
  0xd4   :  { %1796 = vmatpush.msrb.mxu3 %v330_v52  ;;  %1773 = vmatpush.msrb.mxu2 %v326_v55 }
  0xd5   :  { %1750 = vmatpush.msrb.mxu1 %v322_v56  ;;  %1729 = vmatpush.msrb.mxu0 %v316_v59 }
  0xd6   :  { %1797 = vmatpush.msrb.mxu3 %v329_v60  ;;  %1774 = vmatpush.msrb.mxu2 %v325_v61 }
  0xd7   :  { %1730 = vmatpush.msrb.mxu0 %v315_v62  ;;  %1751 = vmatpush.msrb.mxu1 %v321_v63 }
  0xd8   :  { %1798 = vmatpush.msrb.mxu3 %v328_v2  ;;  %1775 = vmatpush.msrb.mxu2 %v324_v3 }
  0xd9   :  { %2283 = vrot.lane.b32.xlu1 %v1883_v58, %s2644_s23  ;;  %2281 = vrot.lane.b32.xlu0 %v1882_v54, %s2644_s23  ;;  %v1887_v54 = vrot.slane %v3698_v39, 2  ;;  %v1886_v58 = vrot.slane %v3708_v44, 2 }
  0xda   :  { %1966 = vrot.lane.b32.xlu2 %v1885_v8, %s2645_s24  ;;  %2638 = vmatmul.msk.f32.vlgmr.msrb.gmra.mxu0 %vm331_vm0, %v71_v7 }
  0xdb   :  { %1799 = vmatpush.msrb.mxu3 %v327_v10  ;;  %1776 = vmatpush.msrb.mxu2 %v323_v11 }
  0xdc   :  { %2640 = vmatmul.msk.f32.vlgmr.msrb.gmra.mxu2 %vm331_vm0, %v73_v13  ;;  %2641 = vmatmul.msk.f32.vlgmr.msrb.gmra.mxu3 %vm331_vm0, %v74_v15 }
  0xe1   :  { %1964 = vrot.lane.b32.xlu1 %v1884_v27, %s2645_s24  ;;  %2287 = vrot.lane.b32.xlu0 %v1885_v8, %s2644_s23  ;;  %v320_v8 = vld [vmem:[%s4764_s1 + $0x7a8] sm:$0xff] }
  0xe2   :  { %2285 = vrot.lane.b32.xlu2 %v1884_v27, %s2644_s23  ;;  %1752 = vmatpush.msrb.mxu1 %v320_v8  ;;  %v3811_v27 = vpop.f32.mrf.mxu2 }
  0xe3   :  { %v1890_v38 = vrot.slane %v3811_v27, 2 }
  0xe4   :  { %v3706_v43 = vpop.permute.xlu2 %2255  ;;  %1753 = vmatpush.msrb.mxu1 %v319_v19 }
  0xe5   :  { %2639 = vmatmul.msk.f32.vlgmr.msrb.gmra.mxu1 %vm331_vm0, %v72_v20 }
  0xe9   :  { %1970 = vrot.lane.b32.xlu1 %v1887_v54, %s2645_s24  ;;  %1968 = vrot.lane.b32.xlu0 %v1886_v58, %s2645_s24 }
  0xea   :  { %2291 = vrot.lane.b32.xlu2 %v1887_v54, %s2644_s23  ;;  %v2446_v54 = vadd.f32 %v3706_v43, %v3178_v34  ;;  %v3859_v43 = vpop.f32.mrf.mxu3 }
  0xeb   :  { %v1895_v2 = vrot.slane %v3859_v43, 2 }
  0xec   :  { %v1941_v5 = vpop.permute.xlu2 %1940 }
  0xed   :  { %v2128_v9 = vsub.f32 %v3217_v48, %v1941_v5 }
  0xef   :  { %2193 = vst.msk [vmem:[%s4766_s2 + $0x8] sm:$0x3] %vm2188_vm1, %v2128_v9 }
  0xf1   :  { %2289 = vrot.lane.b32.xlu1 %v1886_v58, %s2644_s23  ;;  %1974 = vrot.lane.b32.xlu0 %v1889_v16, %s2645_s24 }
  0xf2   :  { %1972 = vrot.lane.b32.xlu2 %v1888_v12, %s2645_s24 }
  0xf4   :  { %v1943_v23 = vpop.permute.xlu2 %1942 }
  0xf5   :  { %v2129_v25 = vsub.f32 %v3231_v53, %v1943_v23  ;;  %v3925_v23 = vpop.f32.mrf.mxu3 }
  0xf7   :  { %2194 = vst.msk [vmem:[%s4766_s2 + $0xa] sm:$0x3] %vm2188_vm1, %v2129_v25 }
  0xf9   :  { %2295 = vrot.lane.b32.xlu1 %v1889_v16, %s2644_s23  ;;  %2293 = vrot.lane.b32.xlu0 %v1888_v12, %s2644_s23 }
  0xfa   :  { %1978 = vrot.lane.b32.xlu2 %v1891_v26, %s2645_s24 }
  0xfb   :  { %v2254_v28 = vpop.permute.xlu1 %2253  ;;  %v1933_v32 = vpop.permute.xlu0 %1932 }
  0xfc   :  { %v2262_v29 = vpop.permute.xlu2 %2261  ;;  %v2445_v31 = vadd.f32 %v2254_v28, %v3176_v33  ;;  %v2124_v37 = vsub.f32 %v3176_v33, %v1933_v32  ;;  %v3832_v33 = vpop.f32.mrf.mxu0  ;;  %v1899_v32 = vrot.slane %v3925_v23, 2 }
  0xfd   :  { %v2449_v36 = vadd.f32 %v2262_v29, %v3217_v48  ;;  %v3834_v48 = vpop.f32.mrf.mxu1  ;;  %v1892_v55 = vrot.slane %v3832_v33, 2 }
  0xfe   :  { %2189 = vst.msk [vmem:[%s4766_s2] sm:$0x3] %vm2188_vm1, %v2124_v37  ;;  %v1893_v52 = vrot.slane %v3834_v48, 2 }
  0xff   :  { %2514 = vst.msk [vmem:[%s4766_s2 + $0x8] sm:$0x3] %vm2509_vm2, %v2449_v36 }
 0x100   :  { %2510 = vst.msk [vmem:[%s4766_s2] sm:$0x3] %vm2509_vm2, %v2445_v31 }
 0x101   :  { %1976 = vrot.lane.b32.xlu1 %v1890_v38, %s2645_s24  ;;  %2299 = vrot.lane.b32.xlu0 %v1891_v26, %s2644_s23 }
 0x102   :  { %2297 = vrot.lane.b32.xlu2 %v1890_v38, %s2644_s23 }
 0x103   :  { %v1937_v40 = vpop.permute.xlu1 %1936  ;;  %v1935_v49 = vpop.permute.xlu0 %1934 }
 0x104   :  { %v2268_v41 = vpop.permute.xlu2 %2267  ;;  %v2126_v46 = vsub.f32 %v3215_v47, %v1937_v40  ;;  %v2125_v50 = vsub.f32 %v3178_v34, %v1935_v49  ;;  %v3857_v34 = vpop.f32.mrf.mxu2 }
 0x105   :  { %v1894_v63 = vrot.slane %v3857_v34, 2  ;;  %v2452_v16 = vadd.f32 %v2268_v41, %v3309_v14 }
 0x106   :  { %2191 = vst.msk [vmem:[%s4766_s2 + $0x4] sm:$0x3] %vm2188_vm1, %v2126_v46 }
 0x107   :  { %2190 = vst.msk [vmem:[%s4766_s2 + $0x2] sm:$0x3] %vm2188_vm1, %v2125_v50 }
 0x108   :  { %2511 = vst.msk [vmem:[%s4766_s2 + $0x2] sm:$0x3] %vm2509_vm2, %v2446_v54 }
 0x109   :  { %1982 = vrot.lane.b32.xlu1 %v1893_v52, %s2645_s24  ;;  %1980 = vrot.lane.b32.xlu0 %v1892_v55, %s2645_s24 }
 0x10a   :  { %2303 = vrot.lane.b32.xlu2 %v1893_v52, %s2644_s23 }
 0x10b   :  { %v1939_v56 = vpop.permute.xlu1 %1938  ;;  %v2258_v60 = vpop.permute.xlu0 %2257 }
 0x10c   :  { %v1949_v58 = vpop.permute.xlu2 %1948  ;;  %v2127_v59 = vsub.f32 %v3242_v57, %v1939_v56  ;;  %v2447_v62 = vadd.f32 %v2258_v60, %v3215_v47  ;;  %v3881_v47 = vpop.f32.mrf.mxu1 }
 0x10d   :  { %v2132_v61 = vsub.f32 %v3357_v30, %v1949_v58  ;;  %v1897_v11 = vrot.slane %v3881_v47, 2 }
 0x10e   :  { %2192 = vst.msk [vmem:[%s4766_s2 + $0x6] sm:$0x3] %vm2188_vm1, %v2127_v59 }
 0x10f   :  { %2512 = vst.msk [vmem:[%s4766_s2 + $0x4] sm:$0x3] %vm2509_vm2, %v2447_v62 }
 0x110   :  { %2197 = vst.msk [vmem:[%s4766_s2 + $0x10] sm:$0x3] %vm2188_vm1, %v2132_v61 }
 0x111   :  { %2301 = vrot.lane.b32.xlu1 %v1892_v55, %s2644_s23  ;;  %1986 = vrot.lane.b32.xlu0 %v1895_v2, %s2645_s24 }
 0x112   :  { %1984 = vrot.lane.b32.xlu2 %v1894_v63, %s2645_s24 }
 0x113   :  { %v2260_v3 = vpop.permute.xlu1 %2259  ;;  %v2264_v8 = vpop.permute.xlu0 %2263 }
 0x114   :  { %v1955_v5 = vpop.permute.xlu2 %1954  ;;  %v2448_v7 = vadd.f32 %v2260_v3, %v3242_v57  ;;  %v2450_v10 = vadd.f32 %v2264_v8, %v3231_v53  ;;  %v3902_v53 = vpop.f32.mrf.mxu0 }
 0x115   :  { %v2135_v9 = vsub.f32 %v3407_v51, %v1955_v5  ;;  %v1896_v20 = vrot.slane %v3902_v53, 2  ;;  %v3944_v37 = vpop.f32.mrf.mxu1 }
 0x116   :  { %2513 = vst.msk [vmem:[%s4766_s2 + $0x6] sm:$0x3] %vm2509_vm2, %v2448_v7  ;;  %v1901_v54 = vrot.slane %v3944_v37, 2 }
 0x117   :  { %2515 = vst.msk [vmem:[%s4766_s2 + $0xa] sm:$0x3] %vm2509_vm2, %v2450_v10 }
 0x118   :  { %2200 = vst.msk [vmem:[%s4766_s2 + $0x16] sm:$0x3] %vm2188_vm1, %v2135_v9 }
 0x119   :  { %2307 = vrot.lane.b32.xlu1 %v1895_v2, %s2644_s23  ;;  %2305 = vrot.lane.b32.xlu0 %v1894_v63, %s2644_s23 }
 0x11a   :  { %1990 = vrot.lane.b32.xlu2 %v1897_v11, %s2645_s24 }
 0x11b   :  { %v1947_v57 = vpop.permute.xlu1 %1946  ;;  %v1945_v15 = vpop.permute.xlu0 %1944 }
 0x11c   :  { %v2274_v12 = vpop.permute.xlu2 %2273  ;;  %v2131_v13 = vsub.f32 %v3309_v14, %v1947_v57  ;;  %v2130_v19 = vsub.f32 %v3321_v18, %v1945_v15  ;;  %v3923_v14 = vpop.f32.mrf.mxu2 }
 0x11d   :  { %v1898_v36 = vrot.slane %v3923_v14, 2  ;;  %v2455_v59 = vadd.f32 %v2274_v12, %v3455_v4 }
 0x11e   :  { %2196 = vst.msk [vmem:[%s4766_s2 + $0xe] sm:$0x3] %vm2188_vm1, %v2131_v13 }
 0x11f   :  { %2517 = vst.msk [vmem:[%s4766_s2 + $0xe] sm:$0x3] %vm2509_vm2, %v2452_v16 }
 0x120   :  { %2195 = vst.msk [vmem:[%s4766_s2 + $0xc] sm:$0x3] %vm2188_vm1, %v2130_v19 }
 0x121   :  { %1988 = vrot.lane.b32.xlu1 %v1896_v20, %s2645_s24  ;;  %2311 = vrot.lane.b32.xlu0 %v1897_v11, %s2644_s23  ;;  %v4007_v11 = vpop.f32.mrf.mxu1 }
 0x122   :  { %2309 = vrot.lane.b32.xlu2 %v1896_v20, %s2644_s23  ;;  %v1905_v20 = vrot.slane %v4007_v11, 2 }
 0x123   :  { %v2266_v25 = vpop.permute.xlu1 %2265  ;;  %v1951_v29 = vpop.permute.xlu0 %1950 }
 0x124   :  { %v2280_v26 = vpop.permute.xlu2 %2279  ;;  %v2451_v28 = vadd.f32 %v2266_v25, %v3321_v18  ;;  %v2133_v31 = vsub.f32 %v3365_v35, %v1951_v29  ;;  %v3942_v18 = vpop.f32.mrf.mxu0 }
 0x125   :  { %v1900_v52 = vrot.slane %v3942_v18, 2  ;;  %v3977_v63 = vpop.f32.mrf.mxu2  ;;  %v2458_v7 = vadd.f32 %v2280_v26, %v3503_v21 }
 0x126   :  { %2516 = vst.msk [vmem:[%s4766_s2 + $0xc] sm:$0x3] %vm2509_vm2, %v2451_v28  ;;  %v1902_v9 = vrot.slane %v3977_v63, 2 }
 0x127   :  { %2198 = vst.msk [vmem:[%s4766_s2 + $0x12] sm:$0x3] %vm2188_vm1, %v2133_v31 }
 0x129   :  { %1994 = vrot.lane.b32.xlu1 %v1899_v32, %s2645_s24  ;;  %1992 = vrot.lane.b32.xlu0 %v1898_v36, %s2645_s24 }
 0x12a   :  { %2315 = vrot.lane.b32.xlu2 %v1899_v32, %s2644_s23 }
 0x12b   :  { %v2272_v38 = vpop.permute.xlu1 %2271  ;;  %v2270_v46 = vpop.permute.xlu0 %2269 }
 0x12c   :  { %v1961_v40 = vpop.permute.xlu2 %1960  ;;  %v2454_v41 = vadd.f32 %v2272_v38, %v3365_v35  ;;  %v2453_v50 = vadd.f32 %v2270_v46, %v3357_v30  ;;  %v3966_v30 = vpop.f32.mrf.mxu3 }
 0x12d   :  { %v2138_v49 = vsub.f32 %v3553_v42, %v1961_v40  ;;  %v1903_v62 = vrot.slane %v3966_v30, 2 }
 0x12e   :  { %2519 = vst.msk [vmem:[%s4766_s2 + $0x12] sm:$0x3] %vm2509_vm2, %v2454_v41 }
 0x12f   :  { %2518 = vst.msk [vmem:[%s4766_s2 + $0x10] sm:$0x3] %vm2509_vm2, %v2453_v50 }
 0x130   :  { %2203 = vst.msk [vmem:[%s4766_s2 + $0x1c] sm:$0x3] %vm2188_vm1, %v2138_v49 }
 0x131   :  { %2313 = vrot.lane.b32.xlu1 %v1898_v36, %s2644_s23  ;;  %1998 = vrot.lane.b32.xlu0 %v1901_v54, %s2645_s24 }
 0x132   :  { %1996 = vrot.lane.b32.xlu2 %v1900_v52, %s2645_s24 }
 0x133   :  { %v1953_v35 = vpop.permute.xlu1 %1952  ;;  %v2276_v58 = vpop.permute.xlu0 %2275 }
 0x134   :  { %v1967_v55 = vpop.permute.xlu2 %1966  ;;  %v2134_v56 = vsub.f32 %v3455_v4, %v1953_v35  ;;  %v2456_v60 = vadd.f32 %v2276_v58, %v3407_v51  ;;  %v3996_v51 = vpop.f32.mrf.mxu0 }
 0x135   :  { %v2141_v61 = vsub.f32 %v3604_v0, %v1967_v55  ;;  %v1904_v10 = vrot.slane %v3996_v51, 2  ;;  %v4024_v57 = vpop.f32.mrf.mxu3 }
 0x136   :  { %2199 = vst.msk [vmem:[%s4766_s2 + $0x14] sm:$0x3] %vm2188_vm1, %v2134_v56  ;;  %v1907_v26 = vrot.slane %v4024_v57, 2 }
 0x137   :  { %2520 = vst.msk [vmem:[%s4766_s2 + $0x14] sm:$0x3] %vm2509_vm2, %v2455_v59 }
 0x138   :  { %2521 = vst.msk [vmem:[%s4766_s2 + $0x16] sm:$0x3] %vm2509_vm2, %v2456_v60 }
 0x139   :  { %2206 = vst.msk [vmem:[%s4766_s2 + $0x22] sm:$0x3] %vm2188_vm1, %v2141_v61  ;;  %2319 = vrot.lane.b32.xlu1 %v1901_v54, %s2644_s23  ;;  %2317 = vrot.lane.b32.xlu0 %v1900_v52, %s2644_s23 }
 0x13a   :  { %2002 = vrot.lane.b32.xlu2 %v1903_v62, %s2645_s24 }
 0x13b   :  { %v1959_v4 = vpop.permute.xlu1 %1958  ;;  %v1957_v5 = vpop.permute.xlu0 %1956 }
 0x13c   :  { %v2286_v2 = vpop.permute.xlu2 %2285  ;;  %v2137_v3 = vsub.f32 %v3503_v21, %v1959_v4  ;;  %v2136_v8 = vsub.f32 %v3512_v24, %v1957_v5  ;;  %v4017_v21 = vpop.f32.mrf.mxu2 }
 0x13d   :  { %v1906_v25 = vrot.slane %v4017_v21, 2  ;;  %v4035_v28 = vpop.f32.mrf.mxu0  ;;  %v4064_v52 = vpop.f32.mrf.mxu3  ;;  %v2461_v4 = vadd.f32 %v2286_v2, %v3651_v17 }
 0x13e   :  { %2202 = vst.msk [vmem:[%s4766_s2 + $0x1a] sm:$0x3] %vm2188_vm1, %v2137_v3  ;;  %v1908_v46 = vrot.slane %v4035_v28, 2  ;;  %v1911_v60 = vrot.slane %v4064_v52, 2 }
 0x13f   :  { %2523 = vst.msk [vmem:[%s4766_s2 + $0x1a] sm:$0x3] %vm2509_vm2, %v2458_v7 }
 0x140   :  { %2201 = vst.msk [vmem:[%s4766_s2 + $0x18] sm:$0x3] %vm2188_vm1, %v2136_v8 }
 0x141   :  { %2000 = vrot.lane.b32.xlu1 %v1902_v9, %s2645_s24  ;;  %2004 = vrot.lane.b32.xlu0 %v1904_v10, %s2645_s24 }
 0x142   :  { %2321 = vrot.lane.b32.xlu2 %v1902_v9, %s2644_s23 }
 0x143   :  { %v2278_v12 = vpop.permute.xlu1 %2277  ;;  %v1963_v16 = vpop.permute.xlu0 %1962 }
 0x144   :  { %v2292_v13 = vpop.permute.xlu2 %2291  ;;  %v2457_v15 = vadd.f32 %v2278_v12, %v3512_v24  ;;  %v2139_v19 = vsub.f32 %v3561_v45, %v1963_v16  ;;  %v4041_v24 = vpop.f32.mrf.mxu1 }
 0x145   :  { %v4052_v29 = vpop.f32.mrf.mxu2  ;;  %v1909_v49 = vrot.slane %v4041_v24, 2 }
 0x146   :  { %2522 = vst.msk [vmem:[%s4766_s2 + $0x18] sm:$0x3] %vm2509_vm2, %v2457_v15  ;;  %v1910_v50 = vrot.slane %v4052_v29, 2 }
 0x147   :  { %2204 = vst.msk [vmem:[%s4766_s2 + $0x1e] sm:$0x3] %vm2188_vm1, %v2139_v19  ;;  %v2464_v19 = vadd.f32 %v2292_v13, %v3698_v39 }
 0x149   :  { %2006 = vrot.lane.b32.xlu1 %v1905_v20, %s2645_s24  ;;  %2010 = vrot.lane.b32.xlu0 %v1907_v26, %s2645_s24 }
 0x14a   :  { %2008 = vrot.lane.b32.xlu2 %v1906_v25, %s2645_s24 }
 0x14b   :  { %v2284_v31 = vpop.permute.xlu1 %2283  ;;  %v2282_v38 = vpop.permute.xlu0 %2281 }
 0x14c   :  { %v1973_v32 = vpop.permute.xlu2 %1972  ;;  %v2460_v36 = vadd.f32 %v2284_v31, %v3561_v45  ;;  %v2459_v41 = vadd.f32 %v2282_v38, %v3553_v42  ;;  %v4074_v42 = vpop.f32.mrf.mxu0 }
 0x14d   :  { %v2144_v40 = vsub.f32 %v3752_v1, %v1973_v32  ;;  %v4085_v45 = vpop.f32.mrf.mxu1  ;;  %v1912_v61 = vrot.slane %v4074_v42, 2  ;;  %v4098_v5 = vpop.f32.mrf.mxu2 }
 0x14e   :  { %2525 = vst.msk [vmem:[%s4766_s2 + $0x1e] sm:$0x3] %vm2509_vm2, %v2460_v36  ;;  %v1913_v3 = vrot.slane %v4085_v45, 2  ;;  %v1914_v15 = vrot.slane %v4098_v5, 2 }
 0x14f   :  { %2524 = vst.msk [vmem:[%s4766_s2 + $0x1c] sm:$0x3] %vm2509_vm2, %v2459_v41 }
 0x150   :  { %2209 = vst.msk [vmem:[%s4766_s2 + $0x28] sm:$0x3] %vm2188_vm1, %v2144_v40 }
 0x151   :  { %2012 = vrot.lane.b32.xlu1 %v1908_v46, %s2645_s24  ;;  %2016 = vrot.lane.b32.xlu0 %v1910_v50, %s2645_s24 }
 0x152   :  { %2014 = vrot.lane.b32.xlu2 %v1909_v49, %s2645_s24 }
 0x153   :  { %v1965_v54 = vpop.permute.xlu1 %1964  ;;  %v2288_v55 = vpop.permute.xlu0 %2287 }
 0x154   :  { %v1979_v35 = vpop.permute.xlu2 %1978  ;;  %v2140_v56 = vsub.f32 %v3651_v17, %v1965_v54  ;;  %v2462_v58 = vadd.f32 %v2288_v55, %v3604_v0  ;;  %v4108_v0 = vpop.f32.mrf.mxu3 }
 0x155   :  { %v2147_v59 = vsub.f32 %v3799_v22, %v1979_v35  ;;  %v4123_v17 = vpop.f32.mrf.mxu0  ;;  %v1915_v16 = vrot.slane %v4108_v0, 2  ;;  %v4135_v32 = vpop.f32.mrf.mxu1 }
 0x156   :  { %2205 = vst.msk [vmem:[%s4766_s2 + $0x20] sm:$0x3] %vm2188_vm1, %v2140_v56  ;;  %v1916_v31 = vrot.slane %v4123_v17, 2  ;;  %v1917_v35 = vrot.slane %v4135_v32, 2 }
 0x157   :  { %2527 = vst.msk [vmem:[%s4766_s2 + $0x22] sm:$0x3] %vm2509_vm2, %v2462_v58 }
 0x158   :  { %2526 = vst.msk [vmem:[%s4766_s2 + $0x20] sm:$0x3] %vm2509_vm2, %v2461_v4 }
 0x159   :  { %2212 = vst.msk [vmem:[%s4766_s2 + $0x2e] sm:$0x3] %vm2188_vm1, %v2147_v59  ;;  %2018 = vrot.lane.b32.xlu1 %v1911_v60, %s2645_s24  ;;  %2022 = vrot.lane.b32.xlu0 %v1913_v3, %s2645_s24 }
 0x15a   :  { %2020 = vrot.lane.b32.xlu2 %v1912_v61, %s2645_s24 }
 0x15b   :  { %v1971_v2 = vpop.permute.xlu1 %1970  ;;  %v1969_v8 = vpop.permute.xlu0 %1968 }
 0x15c   :  { %v2298_v7 = vpop.permute.xlu2 %2297  ;;  %v2143_v9 = vsub.f32 %v3698_v39, %v1971_v2  ;;  %v2142_v12 = vsub.f32 %v3708_v44, %v1969_v8  ;;  %v4145_v39 = vpop.f32.mrf.mxu2 }
 0x15d   :  { %v4156_v13 = vpop.f32.mrf.mxu3  ;;  %v4768_v55 = vrot.slane %v4145_v39, 2  ;;  %v4167_v58 = vpop.f32.mrf.mxu0 }
 0x15e   :  { %2208 = vst.msk [vmem:[%s4766_s2 + $0x26] sm:$0x3] %vm2188_vm1, %v2143_v9  ;;  %v4777_v56 = vrot.slane %v4156_v13, 2 }
 0x15f   :  { %2207 = vst.msk [vmem:[%s4766_s2 + $0x24] sm:$0x3] %vm2188_vm1, %v2142_v12 }
 0x160   :  { %2529 = vst.msk [vmem:[%s4766_s2 + $0x26] sm:$0x3] %vm2509_vm2, %v2464_v19 }
 0x161   :  { %2024 = vrot.lane.b32.xlu1 %v1914_v15, %s2645_s24  ;;  %2028 = vrot.lane.b32.xlu0 %v1916_v31, %s2645_s24 }
 0x162   :  { %2026 = vrot.lane.b32.xlu2 %v1915_v16, %s2645_s24 }
 0x163   :  { %v2290_v36 = vpop.permute.xlu1 %2289  ;;  %v1975_v40 = vpop.permute.xlu0 %1974 }
 0x164   :  { %v2304_v38 = vpop.permute.xlu2 %2303  ;;  %v2463_v41 = vadd.f32 %v2290_v36, %v3708_v44  ;;  %v2145_v54 = vsub.f32 %v3760_v6, %v1975_v40  ;;  %v4173_v44 = vpop.f32.mrf.mxu1  ;;  %v4769_v36 = vrot.slane %v4167_v58, 2 }
 0x165   :  { %v4184_v59 = vpop.f32.mrf.mxu2  ;;  %v4767_v40 = vrot.slane %v4173_v44, 2 }
 0x166   :  { %2528 = vst.msk [vmem:[%s4766_s2 + $0x24] sm:$0x3] %vm2509_vm2, %v2463_v41  ;;  %v4770_v41 = vrot.slane %v4184_v59, 2 }
 0x167   :  { %2210 = vst.msk [vmem:[%s4766_s2 + $0x2a] sm:$0x3] %vm2188_vm1, %v2145_v54  ;;  %v4196_v54 = vpop.f32.mrf.mxu3 }
 0x169   :  { %2030 = vrot.lane.b32.xlu1 %v1917_v35, %s2645_s24  ;;  %2034 = vrot.lane.b32.xlu0 %v4777_v56, %s2645_s24 }
 0x16a   :  { %2032 = vrot.lane.b32.xlu2 %v4768_v55, %s2645_s24  ;;  %v4771_v55 = vrot.slane %v4196_v54, 2 }
 0x16b   :  { %v2296_v4 = vpop.permute.xlu1 %2295  ;;  %v2294_v9 = vpop.permute.xlu0 %2293 }
 0x16c   :  { %v1985_v2 = vpop.permute.xlu2 %1984  ;;  %v2466_v8 = vadd.f32 %v2296_v4, %v3760_v6  ;;  %v2465_v19 = vadd.f32 %v2294_v9, %v3752_v1  ;;  %v4206_v1 = vpop.f32.mrf.mxu0 }
 0x16d   :  { %v2150_v12 = vsub.f32 %v3857_v34, %v1985_v2  ;;  %v4217_v6 = vpop.f32.mrf.mxu1 }
 0x16e   :  { %2531 = vst.msk [vmem:[%s4766_s2 + $0x2a] sm:$0x3] %vm2509_vm2, %v2466_v8  ;;  %v2467_v8 = vadd.f32 %v2298_v7, %v3811_v27 }
 0x16f   :  { %2530 = vst.msk [vmem:[%s4766_s2 + $0x28] sm:$0x3] %vm2509_vm2, %v2465_v19 }
 0x170   :  { %2215 = vst.msk [vmem:[%s4766_s2 + $0x34] sm:$0x3] %vm2188_vm1, %v2150_v12 }
 0x171   :  { %2036 = vrot.lane.b32.xlu1 %v4769_v36, %s2645_s24  ;;  %2040 = vrot.lane.b32.xlu0 %v4770_v41, %s2645_s24  ;;  %v4772_v36 = vrot.slane %v4206_v1, 2  ;;  %v4774_v41 = vrot.slane %v4217_v6, 2 }
 0x172   :  { %2038 = vrot.lane.b32.xlu2 %v4767_v40, %s2645_s24 }
 0x173   :  { %v1977_v4 = vpop.permute.xlu1 %1976  ;;  %v2300_v12 = vpop.permute.xlu0 %2299 }
 0x174   :  { %v1991_v2 = vpop.permute.xlu2 %1990  ;;  %v2146_v9 = vsub.f32 %v3811_v27, %v1977_v4  ;;  %v2468_v19 = vadd.f32 %v2300_v12, %v3799_v22  ;;  %v4238_v22 = vpop.f32.mrf.mxu2 }
 0x175   :  { %v2153_v40 = vsub.f32 %v3881_v47, %v1991_v2  ;;  %v4240_v27 = vpop.f32.mrf.mxu3  ;;  %v4255_v7 = vpop.f32.mrf.mxu0 }
 0x176   :  { %2211 = vst.msk [vmem:[%s4766_s2 + $0x2c] sm:$0x3] %vm2188_vm1, %v2146_v9 }
 0x177   :  { %2532 = vst.msk [vmem:[%s4766_s2 + $0x2c] sm:$0x3] %vm2509_vm2, %v2467_v8 }
 0x178   :  { %2533 = vst.msk [vmem:[%s4766_s2 + $0x2e] sm:$0x3] %vm2509_vm2, %v2468_v19  ;;  %v4773_v19 = vrot.slane %v4238_v22, 2 }
 0x179   :  { %2218 = vst.msk [vmem:[%s4766_s2 + $0x3a] sm:$0x3] %vm2188_vm1, %v2153_v40  ;;  %2042 = vrot.lane.b32.xlu1 %v4771_v55, %s2645_s24  ;;  %2046 = vrot.lane.b32.xlu0 %v4774_v41, %s2645_s24  ;;  %v2470_v40 = vadd.f32 %v2304_v38, %v3834_v48  ;;  %v4775_v55 = vrot.slane %v4240_v27, 2 }
 0x17a   :  { %2044 = vrot.lane.b32.xlu2 %v4772_v36, %s2645_s24  ;;  %v4776_v36 = vrot.slane %v4255_v7, 2 }
 0x17b   :  { %v1983_v4 = vpop.permute.xlu1 %1982  ;;  %v1981_v9 = vpop.permute.xlu0 %1980 }
 0x17c   :  { %v2310_v2 = vpop.permute.xlu2 %2309  ;;  %v2149_v8 = vsub.f32 %v3834_v48, %v1983_v4  ;;  %v2148_v12 = vsub.f32 %v3832_v33, %v1981_v9  ;;  %v4281_v48 = vpop.f32.mrf.mxu1 }
 0x17d   :  { %v4286_v38 = vpop.f32.mrf.mxu2  ;;  %v4288_v4 = vpop.f32.mrf.mxu3  ;;  %v1929_v41 = vrot.slane %v4281_v48, 2 }
 0x17e   :  { %2214 = vst.msk [vmem:[%s4766_s2 + $0x32] sm:$0x3] %vm2188_vm1, %v2149_v8 }
 0x17f   :  { %2535 = vst.msk [vmem:[%s4766_s2 + $0x32] sm:$0x3] %vm2509_vm2, %v2470_v40 }
 0x180   :  { %2213 = vst.msk [vmem:[%s4766_s2 + $0x30] sm:$0x3] %vm2188_vm1, %v2148_v12 }
 0x181   :  { %2048 = vrot.lane.b32.xlu1 %v4773_v19, %s2645_s24  ;;  %2052 = vrot.lane.b32.xlu0 %v4776_v36, %s2645_s24  ;;  %v1931_v36 = vrot.slane %v4288_v4, 2 }
 0x182   :  { %2050 = vrot.lane.b32.xlu2 %v4775_v55, %s2645_s24  ;;  %v1930_v55 = vrot.slane %v4286_v38, 2 }
 0x183   :  { %v2302_v8 = vpop.permute.xlu1 %2301  ;;  %v1987_v12 = vpop.permute.xlu0 %1986 }
 0x184   :  { %v2316_v9 = vpop.permute.xlu2 %2315  ;;  %v2469_v40 = vadd.f32 %v2302_v8, %v3832_v33  ;;  %v2151_v19 = vsub.f32 %v3859_v43, %v1987_v12 }
 0x186   :  { %2534 = vst.msk [vmem:[%s4766_s2 + $0x30] sm:$0x3] %vm2509_vm2, %v2469_v40 }
 0x187   :  { %2216 = vst.msk [vmem:[%s4766_s2 + $0x36] sm:$0x3] %vm2188_vm1, %v2151_v19 }
 0x189   :  { %2054 = vrot.lane.b32.xlu1 %v1929_v41, %s2645_s24  ;;  %2058 = vrot.lane.b32.xlu0 %v1931_v36, %s2645_s24 }
 0x18a   :  { %2056 = vrot.lane.b32.xlu2 %v1930_v55, %s2645_s24 }
 0x18b   :  { %v2308_v33 = vpop.permute.xlu1 %2307  ;;  %v2306_v12 = vpop.permute.xlu0 %2305 }
 0x18c   :  { %v1997_v8 = vpop.permute.xlu2 %1996  ;;  %v2472_v40 = vadd.f32 %v2308_v33, %v3859_v43  ;;  %v2471_v19 = vadd.f32 %v2306_v12, %v3857_v34  ;;  %v2473_v12 = vadd.f32 %v2310_v2, %v3902_v53  ;;  %v2476_v2 = vadd.f32 %v2316_v9, %v3925_v23 }
 0x18d   :  { %v2156_v56 = vsub.f32 %v3942_v18, %v1997_v8 }
 0x18e   :  { %2537 = vst.msk [vmem:[%s4766_s2 + $0x36] sm:$0x3] %vm2509_vm2, %v2472_v40 }
 0x18f   :  { %2536 = vst.msk [vmem:[%s4766_s2 + $0x34] sm:$0x3] %vm2509_vm2, %v2471_v19 }
 0x190   :  { %2221 = vst.msk [vmem:[%s4766_s2 + $0x40] sm:$0x3] %vm2188_vm1, %v2156_v56 }
 0x191   :  { %2325 = vrot.lane.b32.xlu1 %v1904_v10, %s2644_s23  ;;  %2323 = vrot.lane.b32.xlu0 %v1903_v62, %s2644_s23 }
 0x192   :  { %2327 = vrot.lane.b32.xlu2 %v1905_v20, %s2644_s23 }
 0x193   :  { %v1989_v34 = vpop.permute.xlu1 %1988  ;;  %v2312_v33 = vpop.permute.xlu0 %2311 }
 0x194   :  { %v2003_v43 = vpop.permute.xlu2 %2002  ;;  %v2152_v8 = vsub.f32 %v3902_v53, %v1989_v34  ;;  %v2474_v40 = vadd.f32 %v2312_v33, %v3881_v47 }
 0x195   :  { %v2159_v56 = vsub.f32 %v3966_v30, %v2003_v43 }
 0x196   :  { %2217 = vst.msk [vmem:[%s4766_s2 + $0x38] sm:$0x3] %vm2188_vm1, %v2152_v8 }
 0x197   :  { %2539 = vst.msk [vmem:[%s4766_s2 + $0x3a] sm:$0x3] %vm2509_vm2, %v2474_v40 }
 0x198   :  { %2538 = vst.msk [vmem:[%s4766_s2 + $0x38] sm:$0x3] %vm2509_vm2, %v2473_v12 }
 0x199   :  { %2224 = vst.msk [vmem:[%s4766_s2 + $0x46] sm:$0x3] %vm2188_vm1, %v2159_v56  ;;  %2331 = vrot.lane.b32.xlu1 %v1907_v26, %s2644_s23  ;;  %2329 = vrot.lane.b32.xlu0 %v1906_v25, %s2644_s23 }
 0x19a   :  { %2333 = vrot.lane.b32.xlu2 %v1908_v46, %s2644_s23 }
 0x19b   :  { %v1995_v47 = vpop.permute.xlu1 %1994  ;;  %v1993_v62 = vpop.permute.xlu0 %1992 }
 0x19c   :  { %v2322_v53 = vpop.permute.xlu2 %2321  ;;  %v2155_v10 = vsub.f32 %v3925_v23, %v1995_v47  ;;  %v2154_v20 = vsub.f32 %v3923_v14, %v1993_v62  ;;  %v4781_v62 = vrot.slane %v4184_v59, 2 }
 0x19e   :  { %2220 = vst.msk [vmem:[%s4766_s2 + $0x3e] sm:$0x3] %vm2188_vm1, %v2155_v10  ;;  %v4782_v10 = vrot.slane %v4196_v54, 2 }
 0x19f   :  { %2219 = vst.msk [vmem:[%s4766_s2 + $0x3c] sm:$0x3] %vm2188_vm1, %v2154_v20  ;;  %v4783_v20 = vrot.slane %v4173_v44, 2 }
 0x1a0   :  { %2541 = vst.msk [vmem:[%s4766_s2 + $0x3e] sm:$0x3] %vm2509_vm2, %v2476_v2 }
 0x1a1   :  { %2337 = vrot.lane.b32.xlu1 %v1910_v50, %s2644_s23  ;;  %2335 = vrot.lane.b32.xlu0 %v1909_v49, %s2644_s23 }
 0x1a2   :  { %2339 = vrot.lane.b32.xlu2 %v1911_v60, %s2644_s23 }
 0x1a3   :  { %v2314_v23 = vpop.permute.xlu1 %2313  ;;  %v1999_v26 = vpop.permute.xlu0 %1998 }
 0x1a4   :  { %v2009_v25 = vpop.permute.xlu2 %2008  ;;  %v2475_v46 = vadd.f32 %v2314_v23, %v3923_v14  ;;  %v2157_v19 = vsub.f32 %v3944_v37, %v1999_v26 }
 0x1a5   :  { %v2162_v9 = vsub.f32 %v4017_v21, %v2009_v25 }
 0x1a6   :  { %2540 = vst.msk [vmem:[%s4766_s2 + $0x3c] sm:$0x3] %vm2509_vm2, %v2475_v46 }
 0x1a7   :  { %2222 = vst.msk [vmem:[%s4766_s2 + $0x42] sm:$0x3] %vm2188_vm1, %v2157_v19  ;;  %v4784_v19 = vrot.slane %v4217_v6, 2 }
 0x1a8   :  { %2227 = vst.msk [vmem:[%s4766_s2 + $0x4c] sm:$0x3] %vm2188_vm1, %v2162_v9 }
 0x1a9   :  { %2343 = vrot.lane.b32.xlu1 %v1913_v3, %s2644_s23  ;;  %2341 = vrot.lane.b32.xlu0 %v1912_v61, %s2644_s23 }
 0x1aa   :  { %2345 = vrot.lane.b32.xlu2 %v1914_v15, %s2644_s23  ;;  %v2479_v15 = vadd.f32 %v2322_v53, %v3977_v63 }
 0x1ab   :  { %v2320_v14 = vpop.permute.xlu1 %2319  ;;  %v2318_v60 = vpop.permute.xlu0 %2317 }
 0x1ac   :  { %v2015_v49 = vpop.permute.xlu2 %2014  ;;  %v2478_v50 = vadd.f32 %v2320_v14, %v3944_v37  ;;  %v2477_v43 = vadd.f32 %v2318_v60, %v3942_v18  ;;  %v4785_v14 = vrot.slane %v4238_v22, 2 }
 0x1ad   :  { %v2165_v34 = vsub.f32 %v4041_v24, %v2015_v49  ;;  %v4786_v49 = vrot.slane %v4206_v1, 2 }
 0x1ae   :  { %2543 = vst.msk [vmem:[%s4766_s2 + $0x42] sm:$0x3] %vm2509_vm2, %v2478_v50 }
 0x1af   :  { %2542 = vst.msk [vmem:[%s4766_s2 + $0x40] sm:$0x3] %vm2509_vm2, %v2477_v43 }
 0x1b0   :  { %2230 = vst.msk [vmem:[%s4766_s2 + $0x52] sm:$0x3] %vm2188_vm1, %v2165_v34 }
 0x1b1   :  { %2349 = vrot.lane.b32.xlu1 %v1916_v31, %s2644_s23  ;;  %2347 = vrot.lane.b32.xlu0 %v1915_v16, %s2644_s23  ;;  %v4779_v16 = vrot.slane %v4167_v58, 2  ;;  %v4780_v31 = vrot.slane %v4145_v39, 2 }
 0x1b2   :  { %2351 = vrot.lane.b32.xlu2 %v1917_v35, %s2644_s23 }
 0x1b3   :  { %v2001_v18 = vpop.permute.xlu1 %2000  ;;  %v2005_v3 = vpop.permute.xlu0 %2004 }
 0x1b4   :  { %v2021_v37 = vpop.permute.xlu2 %2020  ;;  %v2158_v61 = vsub.f32 %v3977_v63, %v2001_v18  ;;  %v2160_v33 = vsub.f32 %v3996_v51, %v2005_v3  ;;  %v4778_v63 = vrot.slane %v4156_v13, 2  ;;  %v4788_v3 = vrot.slane %v4240_v27, 2 }
 0x1b5   :  { %v2168_v8 = vsub.f32 %v4074_v42, %v2021_v37 }
 0x1b6   :  { %2223 = vst.msk [vmem:[%s4766_s2 + $0x44] sm:$0x3] %vm2188_vm1, %v2158_v61  ;;  %v4787_v61 = vrot.slane %v4255_v7, 2 }
 0x1b7   :  { %2544 = vst.msk [vmem:[%s4766_s2 + $0x44] sm:$0x3] %vm2509_vm2, %v2479_v15 }
 0x1b8   :  { %2225 = vst.msk [vmem:[%s4766_s2 + $0x48] sm:$0x3] %vm2188_vm1, %v2160_v33 }
 0x1b9   :  { %2233 = vst.msk [vmem:[%s4766_s2 + $0x58] sm:$0x3] %vm2188_vm1, %v2168_v8  ;;  %2355 = vrot.lane.b32.xlu1 %v4778_v63, %s2644_s23  ;;  %2353 = vrot.lane.b32.xlu0 %v4780_v31, %s2644_s23 }
 0x1ba   :  { %2357 = vrot.lane.b32.xlu2 %v4779_v16, %s2644_s23 }
 0x1bb   :  { %v2007_v35 = vpop.permute.xlu1 %2006  ;;  %v2011_v12 = vpop.permute.xlu0 %2010 }
 0x1bc   :  { %v2027_v40 = vpop.permute.xlu2 %2026  ;;  %v2161_v56 = vsub.f32 %v4007_v11, %v2007_v35  ;;  %v2163_v53 = vsub.f32 %v4024_v57, %v2011_v12 }
 0x1bd   :  { %v2171_v47 = vsub.f32 %v4108_v0, %v2027_v40 }
 0x1be   :  { %2226 = vst.msk [vmem:[%s4766_s2 + $0x4a] sm:$0x3] %vm2188_vm1, %v2161_v56 }
 0x1bf   :  { %2228 = vst.msk [vmem:[%s4766_s2 + $0x4e] sm:$0x3] %vm2188_vm1, %v2163_v53 }
 0x1c0   :  { %2236 = vst.msk [vmem:[%s4766_s2 + $0x5e] sm:$0x3] %vm2188_vm1, %v2171_v47 }
 0x1c1   :  { %2361 = vrot.lane.b32.xlu1 %v4781_v62, %s2644_s23  ;;  %2359 = vrot.lane.b32.xlu0 %v4783_v20, %s2644_s23 }
 0x1c2   :  { %2363 = vrot.lane.b32.xlu2 %v4782_v10, %s2644_s23 }
 0x1c3   :  { %v2013_v2 = vpop.permute.xlu1 %2012  ;;  %v2017_v25 = vpop.permute.xlu0 %2016 }
 0x1c4   :  { %v2033_v23 = vpop.permute.xlu2 %2032  ;;  %v2164_v26 = vsub.f32 %v4035_v28, %v2013_v2  ;;  %v2166_v9 = vsub.f32 %v4052_v29, %v2017_v25 }
 0x1c5   :  { %v2174_v46 = vsub.f32 %v4145_v39, %v2033_v23 }
 0x1c6   :  { %2229 = vst.msk [vmem:[%s4766_s2 + $0x50] sm:$0x3] %vm2188_vm1, %v2164_v26 }
 0x1c7   :  { %2231 = vst.msk [vmem:[%s4766_s2 + $0x54] sm:$0x3] %vm2188_vm1, %v2166_v9 }
 0x1c8   :  { %2239 = vst.msk [vmem:[%s4766_s2 + $0x64] sm:$0x3] %vm2188_vm1, %v2174_v46 }
 0x1c9   :  { %2367 = vrot.lane.b32.xlu1 %v4784_v19, %s2644_s23  ;;  %2365 = vrot.lane.b32.xlu0 %v4786_v49, %s2644_s23 }
 0x1ca   :  { %2369 = vrot.lane.b32.xlu2 %v4785_v14, %s2644_s23 }
 0x1cb   :  { %v2019_v50 = vpop.permute.xlu1 %2018  ;;  %v2023_v34 = vpop.permute.xlu0 %2022 }
 0x1cc   :  { %v2039_v60 = vpop.permute.xlu2 %2038  ;;  %v2167_v43 = vsub.f32 %v4064_v52, %v2019_v50  ;;  %v2169_v37 = vsub.f32 %v4085_v45, %v2023_v34 }
 0x1cd   :  { %v2177_v18 = vsub.f32 %v4173_v44, %v2039_v60 }
 0x1ce   :  { %2232 = vst.msk [vmem:[%s4766_s2 + $0x56] sm:$0x3] %vm2188_vm1, %v2167_v43 }
 0x1cf   :  { %2234 = vst.msk [vmem:[%s4766_s2 + $0x5a] sm:$0x3] %vm2188_vm1, %v2169_v37 }
 0x1d0   :  { %2242 = vst.msk [vmem:[%s4766_s2 + $0x6a] sm:$0x3] %vm2188_vm1, %v2177_v18 }
 0x1d1   :  { %2373 = vrot.lane.b32.xlu1 %v4787_v61, %s2644_s23  ;;  %2371 = vrot.lane.b32.xlu0 %v4788_v3, %s2644_s23 }
 0x1d2   :  { %2375 = vrot.lane.b32.xlu2 %v1929_v41, %s2644_s23 }
 0x1d3   :  { %v2025_v15 = vpop.permute.xlu1 %2024  ;;  %v2029_v63 = vpop.permute.xlu0 %2028 }
 0x1d4   :  { %v2045_v33 = vpop.permute.xlu2 %2044  ;;  %v2170_v8 = vsub.f32 %v4098_v5, %v2025_v15  ;;  %v2172_v31 = vsub.f32 %v4123_v17, %v2029_v63 }
 0x1d5   :  { %v2180_v16 = vsub.f32 %v4206_v1, %v2045_v33 }
 0x1d6   :  { %2235 = vst.msk [vmem:[%s4766_s2 + $0x5c] sm:$0x3] %vm2188_vm1, %v2170_v8 }
 0x1d7   :  { %2237 = vst.msk [vmem:[%s4766_s2 + $0x60] sm:$0x3] %vm2188_vm1, %v2172_v31 }
 0x1d8   :  { %2245 = vst.msk [vmem:[%s4766_s2 + $0x70] sm:$0x3] %vm2188_vm1, %v2180_v16 }
 0x1d9   :  { %2379 = vrot.lane.b32.xlu1 %v1931_v36, %s2644_s23  ;;  %2377 = vrot.lane.b32.xlu0 %v1930_v55, %s2644_s23 }
 0x1db   :  { %v2031_v41 = vpop.permute.xlu1 %2030  ;;  %v2035_v56 = vpop.permute.xlu0 %2034 }
 0x1dc   :  { %v2051_v35 = vpop.permute.xlu2 %2050  ;;  %v2173_v40 = vsub.f32 %v4135_v32, %v2031_v41  ;;  %v2175_v47 = vsub.f32 %v4156_v13, %v2035_v56 }
 0x1dd   :  { %v2183_v12 = vsub.f32 %v4240_v27, %v2051_v35 }
 0x1de   :  { %2238 = vst.msk [vmem:[%s4766_s2 + $0x62] sm:$0x3] %vm2188_vm1, %v2173_v40 }
 0x1df   :  { %2240 = vst.msk [vmem:[%s4766_s2 + $0x66] sm:$0x3] %vm2188_vm1, %v2175_v47 }
 0x1e0   :  { %2248 = vst.msk [vmem:[%s4766_s2 + $0x76] sm:$0x3] %vm2188_vm1, %v2183_v12 }
 0x1e3   :  { %v2037_v55 = vpop.permute.xlu1 %2036  ;;  %v2041_v53 = vpop.permute.xlu0 %2040 }
 0x1e4   :  { %v2057_v36 = vpop.permute.xlu2 %2056  ;;  %v2176_v62 = vsub.f32 %v4167_v58, %v2037_v55  ;;  %v2178_v20 = vsub.f32 %v4184_v59, %v2041_v53 }
 0x1e5   :  { %v2186_v10 = vsub.f32 %v4286_v38, %v2057_v36 }
 0x1e6   :  { %2241 = vst.msk [vmem:[%s4766_s2 + $0x68] sm:$0x3] %vm2188_vm1, %v2176_v62 }
 0x1e7   :  { %2243 = vst.msk [vmem:[%s4766_s2 + $0x6c] sm:$0x3] %vm2188_vm1, %v2178_v20 }
 0x1e8   :  { %2251 = vst.msk [vmem:[%s4766_s2 + $0x7c] sm:$0x3] %vm2188_vm1, %v2186_v10 }
 0x1eb   :  { %v2043_v2 = vpop.permute.xlu1 %2042  ;;  %v2047_v25 = vpop.permute.xlu0 %2046 }
 0x1ec   :  { %v2328_v23 = vpop.permute.xlu2 %2327  ;;  %v2179_v26 = vsub.f32 %v4196_v54, %v2043_v2  ;;  %v2181_v9 = vsub.f32 %v4217_v6, %v2047_v25 }
 0x1ed   :  { %v2482_v46 = vadd.f32 %v2328_v23, %v4007_v11 }
 0x1ee   :  { %2244 = vst.msk [vmem:[%s4766_s2 + $0x6e] sm:$0x3] %vm2188_vm1, %v2179_v26 }
 0x1ef   :  { %2246 = vst.msk [vmem:[%s4766_s2 + $0x72] sm:$0x3] %vm2188_vm1, %v2181_v9 }
 0x1f0   :  { %2547 = vst.msk [vmem:[%s4766_s2 + $0x4a] sm:$0x3] %vm2509_vm2, %v2482_v46 }
 0x1f3   :  { %v2049_v19 = vpop.permute.xlu1 %2048  ;;  %v2053_v50 = vpop.permute.xlu0 %2052 }
 0x1f4   :  { %v2334_v14 = vpop.permute.xlu2 %2333  ;;  %v2182_v11 = vsub.f32 %v4238_v22, %v2049_v19  ;;  %v2184_v60 = vsub.f32 %v4255_v7, %v2053_v50 }
 0x1f5   :  { %v2485_v49 = vadd.f32 %v2334_v14, %v4035_v28 }
 0x1f6   :  { %2247 = vst.msk [vmem:[%s4766_s2 + $0x74] sm:$0x3] %vm2188_vm1, %v2182_v11 }
 0x1f7   :  { %2550 = vst.msk [vmem:[%s4766_s2 + $0x50] sm:$0x3] %vm2509_vm2, %v2485_v49 }
 0x1f8   :  { %2249 = vst.msk [vmem:[%s4766_s2 + $0x78] sm:$0x3] %vm2188_vm1, %v2184_v60 }
 0x1fb   :  { %v2055_v34 = vpop.permute.xlu1 %2054  ;;  %v2059_v37 = vpop.permute.xlu0 %2058 }
 0x1fc   :  { %v2340_v28 = vpop.permute.xlu2 %2339  ;;  %v2185_v43 = vsub.f32 %v4281_v48, %v2055_v34  ;;  %v2187_v61 = vsub.f32 %v4288_v4, %v2059_v37 }
 0x1fd   :  { %v2488_v18 = vadd.f32 %v2340_v28, %v4064_v52 }
 0x1fe   :  { %2250 = vst.msk [vmem:[%s4766_s2 + $0x7a] sm:$0x3] %vm2188_vm1, %v2185_v43 }
 0x1ff   :  { %2553 = vst.msk [vmem:[%s4766_s2 + $0x56] sm:$0x3] %vm2509_vm2, %v2488_v18 }
 0x200   :  { %2252 = vst.msk [vmem:[%s4766_s2 + $0x7e] sm:$0x3] %vm2188_vm1, %v2187_v61 }
 0x203   :  { %v2326_v3 = vpop.permute.xlu1 %2325  ;;  %v2324_v8 = vpop.permute.xlu0 %2323 }
 0x204   :  { %v2346_v52 = vpop.permute.xlu2 %2345  ;;  %v2481_v15 = vadd.f32 %v2326_v3, %v3996_v51  ;;  %v2480_v63 = vadd.f32 %v2324_v8, %v3966_v30 }
 0x205   :  { %v2491_v33 = vadd.f32 %v2346_v52, %v4098_v5 }
 0x206   :  { %2546 = vst.msk [vmem:[%s4766_s2 + $0x48] sm:$0x3] %vm2509_vm2, %v2481_v15 }
 0x207   :  { %2556 = vst.msk [vmem:[%s4766_s2 + $0x5c] sm:$0x3] %vm2509_vm2, %v2491_v33 }
 0x208   :  { %2545 = vst.msk [vmem:[%s4766_s2 + $0x46] sm:$0x3] %vm2509_vm2, %v2480_v63 }
 0x20b   :  { %v2332_v51 = vpop.permute.xlu1 %2331  ;;  %v2330_v31 = vpop.permute.xlu0 %2329 }
 0x20c   :  { %v2352_v5 = vpop.permute.xlu2 %2351  ;;  %v2484_v16 = vadd.f32 %v2332_v51, %v4024_v57  ;;  %v2483_v41 = vadd.f32 %v2330_v31, %v4017_v21 }
 0x20d   :  { %v2494_v30 = vadd.f32 %v2352_v5, %v4135_v32 }
 0x20e   :  { %2549 = vst.msk [vmem:[%s4766_s2 + $0x4e] sm:$0x3] %vm2509_vm2, %v2484_v16 }
 0x20f   :  { %2559 = vst.msk [vmem:[%s4766_s2 + $0x62] sm:$0x3] %vm2509_vm2, %v2494_v30 }
 0x210   :  { %2548 = vst.msk [vmem:[%s4766_s2 + $0x4c] sm:$0x3] %vm2509_vm2, %v2483_v41 }
 0x213   :  { %v2338_v57 = vpop.permute.xlu1 %2337  ;;  %v2336_v40 = vpop.permute.xlu0 %2335 }
 0x214   :  { %v2358_v32 = vpop.permute.xlu2 %2357  ;;  %v2487_v35 = vadd.f32 %v2338_v57, %v4052_v29  ;;  %v2486_v56 = vadd.f32 %v2336_v40, %v4041_v24 }
 0x215   :  { %v2497_v21 = vadd.f32 %v2358_v32, %v4167_v58 }
 0x216   :  { %2552 = vst.msk [vmem:[%s4766_s2 + $0x54] sm:$0x3] %vm2509_vm2, %v2487_v35 }
 0x217   :  { %2562 = vst.msk [vmem:[%s4766_s2 + $0x68] sm:$0x3] %vm2509_vm2, %v2497_v21 }
 0x218   :  { %2551 = vst.msk [vmem:[%s4766_s2 + $0x52] sm:$0x3] %vm2509_vm2, %v2486_v56 }
 0x21b   :  { %v2344_v29 = vpop.permute.xlu1 %2343  ;;  %v2342_v47 = vpop.permute.xlu0 %2341 }
 0x21c   :  { %v2364_v58 = vpop.permute.xlu2 %2363  ;;  %v2490_v12 = vadd.f32 %v2344_v29, %v4085_v45  ;;  %v2489_v55 = vadd.f32 %v2342_v47, %v4074_v42 }
 0x21d   :  { %v2500_v24 = vadd.f32 %v2364_v58, %v4196_v54 }
 0x21e   :  { %2555 = vst.msk [vmem:[%s4766_s2 + $0x5a] sm:$0x3] %vm2509_vm2, %v2490_v12 }
 0x21f   :  { %2565 = vst.msk [vmem:[%s4766_s2 + $0x6e] sm:$0x3] %vm2509_vm2, %v2500_v24 }
 0x220   :  { %2554 = vst.msk [vmem:[%s4766_s2 + $0x58] sm:$0x3] %vm2509_vm2, %v2489_v55 }
 0x223   :  { %v2350_v45 = vpop.permute.xlu1 %2349  ;;  %v2348_v53 = vpop.permute.xlu0 %2347 }
 0x224   :  { %v2370_v54 = vpop.permute.xlu2 %2369  ;;  %v2493_v36 = vadd.f32 %v2350_v45, %v4123_v17  ;;  %v2492_v62 = vadd.f32 %v2348_v53, %v4108_v0 }
 0x225   :  { %v2503_v42 = vadd.f32 %v2370_v54, %v4238_v22 }
 0x226   :  { %2558 = vst.msk [vmem:[%s4766_s2 + $0x60] sm:$0x3] %vm2509_vm2, %v2493_v36 }
 0x227   :  { %2568 = vst.msk [vmem:[%s4766_s2 + $0x74] sm:$0x3] %vm2509_vm2, %v2503_v42 }
 0x228   :  { %2557 = vst.msk [vmem:[%s4766_s2 + $0x5e] sm:$0x3] %vm2509_vm2, %v2492_v62 }
 0x22b   :  { %v2356_v17 = vpop.permute.xlu1 %2355  ;;  %v2354_v20 = vpop.permute.xlu0 %2353 }
 0x22c   :  { %v2376_v22 = vpop.permute.xlu2 %2375  ;;  %v2496_v10 = vadd.f32 %v2356_v17, %v4156_v13  ;;  %v2495_v2 = vadd.f32 %v2354_v20, %v4145_v39 }
 0x22d   :  { %v2506_v0 = vadd.f32 %v2376_v22, %v4281_v48 }
 0x22e   :  { %2561 = vst.msk [vmem:[%s4766_s2 + $0x66] sm:$0x3] %vm2509_vm2, %v2496_v10 }
 0x22f   :  { %2571 = vst.msk [vmem:[%s4766_s2 + $0x7a] sm:$0x3] %vm2509_vm2, %v2506_v0 }
 0x230   :  { %2560 = vst.msk [vmem:[%s4766_s2 + $0x64] sm:$0x3] %vm2509_vm2, %v2495_v2 }
 0x233   :  { %v2362_v13 = vpop.permute.xlu1 %2361  ;;  %v2360_v23 = vpop.permute.xlu0 %2359 }
 0x234   :  { %v2499_v48 = vadd.f32 %v2362_v13, %v4184_v59  ;;  %v2498_v39 = vadd.f32 %v2360_v23, %v4173_v44 }
 0x236   :  { %2564 = vst.msk [vmem:[%s4766_s2 + $0x6c] sm:$0x3] %vm2509_vm2, %v2499_v48 }
 0x237   :  { %2563 = vst.msk [vmem:[%s4766_s2 + $0x6a] sm:$0x3] %vm2509_vm2, %v2498_v39 }
 0x23b   :  { %v2368_v25 = vpop.permute.xlu1 %2367  ;;  %v2366_v46 = vpop.permute.xlu0 %2365 }
 0x23c   :  { %v2502_v26 = vadd.f32 %v2368_v25, %v4217_v6  ;;  %v2501_v9 = vadd.f32 %v2366_v46, %v4206_v1 }
 0x23e   :  { %2567 = vst.msk [vmem:[%s4766_s2 + $0x72] sm:$0x3] %vm2509_vm2, %v2502_v26 }
 0x23f   :  { %2566 = vst.msk [vmem:[%s4766_s2 + $0x70] sm:$0x3] %vm2509_vm2, %v2501_v9 }
 0x243   :  { %v2374_v44 = vpop.permute.xlu1 %2373  ;;  %v2372_v19 = vpop.permute.xlu0 %2371 }
 0x244   :  { %v2505_v59 = vadd.f32 %v2374_v44, %v4255_v7  ;;  %v2504_v14 = vadd.f32 %v2372_v19, %v4240_v27 }
 0x246   :  { %2570 = vst.msk [vmem:[%s4766_s2 + $0x78] sm:$0x3] %vm2509_vm2, %v2505_v59 }
 0x247   :  { %2569 = vst.msk [vmem:[%s4766_s2 + $0x76] sm:$0x3] %vm2509_vm2, %v2504_v14 }
 0x24b   :  { %v2380_v1 = vpop.permute.xlu1 %2379  ;;  %v2378_v11 = vpop.permute.xlu0 %2377 }
 0x24c   :  { %v2508_v6 = vadd.f32 %v2380_v1, %v4288_v4  ;;  %v2507_v49 = vadd.f32 %v2378_v11, %v4286_v38 }
 0x24e   :  { %2573 = vst.msk [vmem:[%s4766_s2 + $0x7e] sm:$0x3] %vm2509_vm2, %v2508_v6 }
 0x24f   :  { %2572 = vst.msk [vmem:[%s4766_s2 + $0x7c] sm:$0x3] %vm2509_vm2, %v2507_v49 }

// kernel: fno_apply.11
= control target key start
LH: loop header
LB: loop body
LE: loop exit
PB: predicated region body
PF: predicated region fallthrough
CT: control target
= control target key end

     0   :  { %s449_s12 = smov 0   ;;  %s451_s13 = smov 0   ;;  %s492_s0 = inlined_call_operand.vmem [shape: f32[2,32,256], index: 0, kind: input, shape index: {}]   ;;  %s493_s1 = inlined_call_operand.vmem [shape: f32[3,32], index: 1, kind: input, shape index: {}]   ;;  %s494_s2 = inlined_call_operand.vmem [shape: f32[3,1], index: 2, kind: input, shape index: {}]   ;;  %s495_s3 = inlined_call_operand.vmem [shape: f32[2,3,256], index: 3, kind: output, shape index: {}]  }
   0x1   :  { %s453_s14 = smov 0  }
   0x2 LB: > { %s25_s15 = sadd.s32 1, %s422_s13  ;;  %p367_p0 = scmp.ge.s32.totalorder %s426_s14, 1  ;;  %s426_s14 = sphi %s453_s14, %s13_s14   ;;  %s422_s13 = sphi %s451_s13, %s497_s13   ;;  %s418_s12 = sphi %s449_s12, %s496_s12  }
   0x3   : > { %p27_p1 = scmp.ge.s32.totalorder %s25_s15, 2  ;;  %p158_p2 = scmp.lt.s32.totalorder %s426_s14, 3 }
   0x5   : > { %s499_s15 = smov (%p27_p1, %s25_s15), 0  ;;  %p159_p3 = pnand %p367_p0, %p158_p2 }
   0x6   : > { %p191_p4 = scmp.lt.s32.totalorder (!%p159_p3), %s418_s12, 1 }
   0x7   : > { %162 = sbr.rel (%p159_p3) target bundleno = 155 (0x9b), region = 32 }
   0xc   : > { %v428_v0 = vmov 0   ;;  %v219_v1 = vld [vmem:[%s494_s2] sm:$0x7]  ;;  %s501_s12 = smov (!%p191_p4, %s418_s12), 1  ;;  %vm225_vm0 = vcmask 261120   ;;  %vm272_vm1 = vcmask 1043456  }
   0xd   : > { %403 = vset.pattern.permute.xlu0 %v428_v0  ;;  %s376_s18 = sshll.u32 %s501_s12, 6  ;;  %v210_v10 = vld [vmem:[%s493_s1] sm:$0x7]  ;;  %s377_s24 = sshll.u32 %s501_s12, 3 }
   0xe   : > { %222 = vperm.xlu0 %403, %v219_v1   ;;  %s198_s21 = scalar_lea.vmem %s492_s0, %s376_s18  ;;  %s208_s27 = scalar_lea.vmem %s495_s3, %s377_s24 }
   0xf   : > { %v217_v2 = vld [vmem:[%s198_s21 + $0x30] sm:$0xff]  ;;  %v218_v3 = vld [vmem:[%s198_s21 + $0x38] sm:$0xff]  ;;  %v215_v4 = vld [vmem:[%s198_s21 + $0x20] sm:$0xff] }
  0x10   : > { %241 = vmatpush.msra.mxu0 %v217_v2  ;;  %261 = vmatpush.msra.mxu1 %v218_v3  ;;  %v216_v5 = vld [vmem:[%s198_s21 + $0x28] sm:$0xff]  ;;  %v213_v6 = vld [vmem:[%s198_s21 + $0x10] sm:$0xff]  ;;  %v214_v7 = vld [vmem:[%s198_s21 + $0x18] sm:$0xff] }
  0x11   : > { %v211_v8 = vld [vmem:[%s198_s21] sm:$0xff]  ;;  %v212_v9 = vld [vmem:[%s198_s21 + $0x8] sm:$0xff] }
  0x12   : > { %242 = vmatpush.msra.mxu0 %v215_v4  ;;  %262 = vmatpush.msra.mxu1 %v216_v5 }
  0x14   : > { %243 = vmatpush.msra.mxu0 %v213_v6  ;;  %263 = vmatpush.msra.mxu1 %v214_v7 }
  0x16   : > { %244 = vmatpush.msra.mxu0 %v211_v8  ;;  %264 = vmatpush.msra.mxu1 %v212_v9 }
  0x17   : > { %372 = vmatmul.msk.f32.vlgmr.msra.gmra.mxu0 %vm225_vm0, %v210_v10  ;;  %373 = vmatmul.msk.f32.vlgmr.msra.gmra.mxu1 %vm225_vm0, %v210_v10 }
  0x80   : > { %v223_v11 = vpop.permute.xlu0 %222 }
  0x94   : > { %v246_v12 = vpop.f32.mrf.mxu0  ;;  %v266_v13 = vpop.f32.mrf.mxu1 }
  0x95   : > { %v267_v14 = vadd.f32 %v266_v13, %v223_v11  ;;  %v247_v15 = vadd.f32 %v246_v12, %v223_v11 }
  0x97   : > { %v271_v16 = vrot.slane %v267_v14, 4 }
  0x99   : > { %v273_v17 = vsel %vm272_vm1, %v247_v15, %v271_v16 }
  0x9a   : > { %275 = vst [vmem:[%s208_s27] sm:$0x77] %v273_v17 }
  0x9b PF: > { %s13_s14 = sadd.s32 1, %s426_s14   ;;  %s496_s12 = smov %s422_s13 }
  0x9c   : > { %p10_p5 = scmp.ge.s32.totalorder %s13_s14, 4   ;;  %s497_s13 = smov %s499_s15 }
  0x9e   :  { %12 = sbr.rel (!%p10_p5) target bundleno = 2 (0x2), region = 62 }

</bundles_post_ra>
